<compile_context>
chip_gen: v7x
topology: tpu7x:2x2x1
jax: 0.10.0
libtpu: 0.0.40
codegen_flags: <defaults>
</compile_context>

<pallas_src>
import functools
import math

import jax
import jax.numpy as jnp
from jax import lax
from jax.experimental import pallas as pl
from jax.experimental.pallas import tpu as pltpu

# ----------------------------- configuration -------------------------------
CONFIG = dict(
    src_pad_idx=1,
    trg_pad_idx=1,
    vocab_size=50,
    d_model=32,
    max_length=16,
    head_nums=4,
    hidden_size=64,
    n_layers=2,
    decoder_size=50,   # output vocab of the final linear
)

LOGIT_PAD = 128        # lane-dense padded width of the logits output
EPS = 1e-12


# ----------------------------- packed layouts -------------------------------
def _build_layout(cfg):
    """Static column/row offsets for the three packed operand slabs."""
    D, Hid, L = cfg["d_model"], cfg["hidden_size"], cfg["n_layers"]
    colA, colB, rowV = {}, {}, {}
    a = b = r = 0

    def addA(name, w):
        nonlocal a
        colA[name] = (a, w)
        a += w

    def addB(name, w):
        nonlocal b
        colB[name] = (b, w)
        b += w

    def addV(name, w):
        nonlocal r
        rowV[name] = (r, w)
        r += 1

    for l in range(L):                                   # encoder layers
        addA(f"e{l}_wqkv", 3 * D); addA(f"e{l}_wo", D); addA(f"e{l}_w1", Hid)
        addB(f"e{l}_w2", D)
        addV(f"e{l}_bqkv", 3 * D); addV(f"e{l}_bo", D)
        addV(f"e{l}_ln1g", D); addV(f"e{l}_ln1b", D)
        addV(f"e{l}_b1", Hid); addV(f"e{l}_b2", D)
        addV(f"e{l}_ln2g", D); addV(f"e{l}_ln2b", D)
    for l in range(L):                                   # decoder layers
        addA(f"d{l}_wqkv", 3 * D); addA(f"d{l}_wo1", D); addA(f"d{l}_wq2", D)
        addA(f"d{l}_wkv2", 2 * D); addA(f"d{l}_wo2", D); addA(f"d{l}_w1", Hid)
        addB(f"d{l}_w2", D)
        addV(f"d{l}_bqkv", 3 * D); addV(f"d{l}_bo1", D)
        addV(f"d{l}_ln1g", D); addV(f"d{l}_ln1b", D)
        addV(f"d{l}_bq2", D); addV(f"d{l}_bkv2", 2 * D); addV(f"d{l}_bo2", D)
        addV(f"d{l}_ln2g", D); addV(f"d{l}_ln2b", D)
        addV(f"d{l}_b1", Hid); addV(f"d{l}_b2", D)
        addV(f"d{l}_ln3g", D); addV(f"d{l}_ln3b", D)
    addA("out_w", LOGIT_PAD)
    addV("out_b", LOGIT_PAD)

    return dict(
        colA=colA, colB=colB, rowV=rowV,
        A_cols=-(-a // 128) * 128,
        B_cols=-(-b // 128) * 128,
        V_rows=-(-r // 8) * 8,
    )


_LAYOUT = _build_layout(CONFIG)


# ------------------------------ fused kernel --------------------------------
def _fused_transformer_kernel(src_x_ref, trg_x_ref, src_keep_ref, trg_keep_ref,
                              wa_ref, wb_ref, vec_ref, logits_ref, *,
                              lay, Ss, St, D, H, Dh, Hid, L):
    colA, colB, rowV = lay["colA"], lay["colB"], lay["rowV"]

    # static-offset slices into the packed slabs (loads only the needed window)
    def gA(name):
        o, w = colA[name]
        return wa_ref[:, o:o + w]

    def gB(name):
        o, w = colB[name]
        return wb_ref[:, o:o + w]

    def gV(name):
        r, w = rowV[name]
        return vec_ref[r:r + 1, :w]

    def linear(x, w, b, relu=False):
        y = jnp.dot(x, w, preferred_element_type=jnp.float32) + b
        return jnp.maximum(y, 0.0) if relu else y

    def layer_norm(x, g, b):
        mean = jnp.mean(x, axis=-1, keepdims=True)
        var = jnp.mean(jnp.square(x - mean), axis=-1, keepdims=True)
        # rsqrt lands on the EUP slot; same math as (x-mean)/sqrt(var+eps)
        return (x - mean) * lax.rsqrt(var + EPS) * g + b

    # masks built in-kernel from 1-D keep vectors (no broadcasted mask DMAs)
    src_keep = src_keep_ref[...].reshape(1, Ss) > 0.5            # [1, Ss] bool
    trg_keep = trg_keep_ref[...].reshape(1, St) > 0.5            # [1, St] bool
    row_i = lax.broadcasted_iota(jnp.int32, (St, St), 0)
    col_i = lax.broadcasted_iota(jnp.int32, (St, St), 1)
    dec_keep = trg_keep & (row_i >= col_i)                       # [St, St] bool

    def mask_enc(s):                                             # [H, Ss, Ss]
        return jnp.where(src_keep, s, -10000.0)

    def mask_dec(s):                                             # [H, St, St]
        return jnp.where(dec_keep, s, -10000.0)

    def mask_cross(s):                                           # [H, St, Ss]
        return jnp.where(src_keep, s, -10000.0)

    def attention(q, k, v, mask_fn, Sq, Sk):
        # q: [Sq, D], k/v: [Sk, D]; heads folded into the dot_general batch dim
        qh = q.reshape(Sq, H, Dh)
        kh = k.reshape(Sk, H, Dh)
        vh = v.reshape(Sk, H, Dh)
        # NOTE: 1/sqrt(Dh) already folded into the Q weights/bias at pack time
        s = jnp.einsum("qhd,khd->hqk", qh, kh,
                       preferred_element_type=jnp.float32)
        s = mask_fn(s)
        s = s - jnp.max(s, axis=-1, keepdims=True)
        p = jnp.exp(s)
        p = p * pl.reciprocal(jnp.sum(p, axis=-1, keepdims=True), approx=True)
        o = jnp.einsum("hqk,khd->qhd", p, vh,
                       preferred_element_type=jnp.float32)
        return o.reshape(Sq, D)

    # -------------------------------- encoder -------------------------------
    x = src_x_ref[...].reshape(Ss, D)
    for l in range(L):
        res = x
        qkv = linear(x, gA(f"e{l}_wqkv"), gV(f"e{l}_bqkv"))      # fused QKV
        a = attention(qkv[:, 0:D], qkv[:, D:2 * D], qkv[:, 2 * D:3 * D],
                      mask_enc, Ss, Ss)
        a = linear(a, gA(f"e{l}_wo"), gV(f"e{l}_bo"))
        x = layer_norm(a + res, gV(f"e{l}_ln1g"), gV(f"e{l}_ln1b"))
        res = x
        h = linear(x, gA(f"e{l}_w1"), gV(f"e{l}_b1"), relu=True)
        f = linear(h, gB(f"e{l}_w2"), gV(f"e{l}_b2"))
        x = layer_norm(f + res, gV(f"e{l}_ln2g"), gV(f"e{l}_ln2b"))
    enc = x                                                      # stays in VMEM

    # -------------------------------- decoder -------------------------------
    y = trg_x_ref[...].reshape(St, D)
    for l in range(L):
        res = y
        qkv = linear(y, gA(f"d{l}_wqkv"), gV(f"d{l}_bqkv"))      # fused QKV
        a = attention(qkv[:, 0:D], qkv[:, D:2 * D], qkv[:, 2 * D:3 * D],
                      mask_dec, St, St)
        a = linear(a, gA(f"d{l}_wo1"), gV(f"d{l}_bo1"))
        y = layer_norm(a + res, gV(f"d{l}_ln1g"), gV(f"d{l}_ln1b"))

        res = y
        q = linear(y, gA(f"d{l}_wq2"), gV(f"d{l}_bq2"))
        kv = linear(enc, gA(f"d{l}_wkv2"), gV(f"d{l}_bkv2"))     # fused KV
        a = attention(q, kv[:, 0:D], kv[:, D:2 * D], mask_cross, St, Ss)
        a = linear(a, gA(f"d{l}_wo2"), gV(f"d{l}_bo2"))
        y = layer_norm(a + res, gV(f"d{l}_ln2g"), gV(f"d{l}_ln2b"))

        res = y
        h = linear(y, gA(f"d{l}_w1"), gV(f"d{l}_b1"), relu=True)
        f = linear(h, gB(f"d{l}_w2"), gV(f"d{l}_b2"))
        y = layer_norm(f + res, gV(f"d{l}_ln3g"), gV(f"d{l}_ln3b"))

    # lane-dense (128-wide) padded logits -> single unmasked HBM store
    logits = linear(y, gA("out_w"), gV("out_b"))                 # [St, 128]
    logits_ref[...] = logits[None].astype(logits_ref.dtype)


# ----------------------------- model wrapper ---------------------------------
def transformer_forward(packed, src, trg):
    cfg = CONFIG
    D, H, Hid, L = (cfg["d_model"], cfg["head_nums"],
                    cfg["hidden_size"], cfg["n_layers"])
    B, Ss = src.shape
    St = trg.shape[1]
    lay = _LAYOUT

    # TODO(synk): token-embedding gather + positional add stay in plain JAX
    # (a single tiny gather); everything downstream is one fused Pallas kernel.
    src_x = (packed["enc_tok_emb"][src] + packed["pos_emb"][:Ss][None]
             ).astype(jnp.float32)                               # [B, Ss, D]
    trg_x = (packed["dec_tok_emb"][trg] + packed["pos_emb"][:St][None]
             ).astype(jnp.float32)                               # [B, St, D]
    src_keep = (src != cfg["src_pad_idx"]).astype(jnp.float32).reshape(B, 1, Ss)
    trg_keep = (trg != cfg["trg_pad_idx"]).astype(jnp.float32).reshape(B, 1, St)

    kernel = functools.partial(
        _fused_transformer_kernel, lay=lay,
        Ss=Ss, St=St, D=D, H=H, Dh=D // H, Hid=Hid, L=L)

    logits_pad = pl.pallas_call(
        kernel,
        out_shape=jax.ShapeDtypeStruct((B, St, LOGIT_PAD), jnp.float32),
        grid=(B,),
        in_specs=[
            pl.BlockSpec((1, Ss, D), lambda b: (b, 0, 0)),           # src_x
            pl.BlockSpec((1, St, D), lambda b: (b, 0, 0)),           # trg_x
            pl.BlockSpec((1, 1, Ss), lambda b: (b, 0, 0)),           # src_keep
            pl.BlockSpec((1, 1, St), lambda b: (b, 0, 0)),           # trg_keep
            pl.BlockSpec((D, lay["A_cols"]), lambda b: (0, 0)),      # W slab A
            pl.BlockSpec((Hid, lay["B_cols"]), lambda b: (0, 0)),    # W slab B
            pl.BlockSpec((lay["V_rows"], 128), lambda b: (0, 0)),    # bias/LN
        ],
        out_specs=pl.BlockSpec((1, St, LOGIT_PAD), lambda b: (b, 0, 0)),
        compiler_params=pltpu.CompilerParams(
            dimension_semantics=("parallel",)),   # both v7x TCs, 1 batch each
    )(src_x, trg_x, src_keep, trg_keep,
      packed["wa"], packed["wb"], packed["vec"])

    return logits_pad[..., :cfg["decoder_size"]]                 # [B, St, V_out]


# ------------------------------ parameter init -------------------------------
def _init_linear(key, fan_in, fan_out):
    kw, kb = jax.random.split(key)
    w = jax.random.normal(kw, (fan_in, fan_out), jnp.float32) * 0.02
    b = jax.random.normal(kb, (1, fan_out), jnp.float32) * 0.02
    return w, b


def _init_attn(key, d_model):
    ks = jax.random.split(key, 4)
    p = {}
    for name, k in zip(("q", "k", "v", "o"), ks):
        w, b = _init_linear(k, d_model, d_model)
        p["w" + name] = w
        p["b" + name] = b
    return p


def _init_ffn(key, d_model, hidden):
    k1, k2 = jax.random.split(key)
    w1, b1 = _init_linear(k1, d_model, hidden)
    w2, b2 = _init_linear(k2, hidden, d_model)
    return {"w1": w1, "b1": b1, "w2": w2, "b2": b2}


def _sinusoidal_pe(max_len, d_model):
    pos = jnp.arange(max_len, dtype=jnp.float32)[:, None]
    i = jnp.arange(0, d_model, 2, dtype=jnp.float32)
    angle = pos / jnp.power(10000.0, i / d_model)
    pe = jnp.zeros((max_len, d_model), jnp.float32)
    pe = pe.at[:, 0::2].set(jnp.sin(angle))
    pe = pe.at[:, 1::2].set(jnp.cos(angle))
    return pe


def init_params(key):
    cfg = CONFIG
    D, H, V = cfg["d_model"], cfg["hidden_size"], cfg["vocab_size"]
    keys = jax.random.split(key, 8)

    def emb(k):
        e = jax.random.normal(k, (V, D), jnp.float32) * 0.02
        return e.at[1].set(0.0)   # padding_idx=1 like reference TokenEmbedding

    params = {
        "enc_tok_emb": emb(keys[0]),
        "dec_tok_emb": emb(keys[1]),
        "pos_emb": _sinusoidal_pe(cfg["max_length"], D),
        "enc_layers": [],
        "dec_layers": [],
    }
    ek = jax.random.split(keys[2], cfg["n_layers"])
    for lk in ek:
        k1, k2 = jax.random.split(lk)
        params["enc_layers"].append({
            "attn": _init_attn(k1, D),
            "ffn": _init_ffn(k2, D, H),
            "ln1_g": jnp.ones((1, D), jnp.float32), "ln1_b": jnp.zeros((1, D), jnp.float32),
            "ln2_g": jnp.ones((1, D), jnp.float32), "ln2_b": jnp.zeros((1, D), jnp.float32),
        })
    dk = jax.random.split(keys[3], cfg["n_layers"])
    for lk in dk:
        k1, k2, k3 = jax.random.split(lk, 3)
        params["dec_layers"].append({
            "self_attn": _init_attn(k1, D),
            "cross_attn": _init_attn(k2, D),
            "ffn": _init_ffn(k3, D, H),
            "ln1_g": jnp.ones((1, D), jnp.float32), "ln1_b": jnp.zeros((1, D), jnp.float32),
            "ln2_g": jnp.ones((1, D), jnp.float32), "ln2_b": jnp.zeros((1, D), jnp.float32),
            "ln3_g": jnp.ones((1, D), jnp.float32), "ln3_b": jnp.zeros((1, D), jnp.float32),
        })
    ow, ob = _init_linear(keys[4], D, cfg["decoder_size"])
    params["out_w"] = ow
    params["out_b"] = ob
    return params
    # NOTE: dropout is intentionally omitted (eval-mode identity).


def pack_params(params):
    """Pack all weights into three lane-dense slabs; fold 1/sqrt(Dh) into Q."""
    cfg = CONFIG
    D, Hid = cfg["d_model"], cfg["hidden_size"]
    lay = _LAYOUT
    scale = 1.0 / math.sqrt(D // cfg["head_nums"])

    WA = jnp.zeros((D, lay["A_cols"]), jnp.float32)     # fan-in = d_model
    WB = jnp.zeros((Hid, lay["B_cols"]), jnp.float32)   # fan-in = hidden_size
    VEC = jnp.zeros((lay["V_rows"], 128), jnp.float32)  # all biases / LN params

    def putA(name, w):
        nonlocal WA
        o, _ = lay["colA"][name]
        WA = WA.at[:, o:o + w.shape[1]].set(w)

    def putB(name, w):
        nonlocal WB
        o, _ = lay["colB"][name]
        WB = WB.at[:, o:o + w.shape[1]].set(w)

    def putV(name, v):
        nonlocal VEC
        r, _ = lay["rowV"][name]
        v = v.reshape(-1)
        VEC = VEC.at[r, :v.shape[0]].set(v)

    for l, lp in enumerate(params["enc_layers"]):
        at, fn = lp["attn"], lp["ffn"]
        putA(f"e{l}_wqkv", jnp.concatenate([at["wq"] * scale, at["wk"], at["wv"]], axis=1))
        putV(f"e{l}_bqkv", jnp.concatenate([at["bq"] * scale, at["bk"], at["bv"]], axis=1))
        putA(f"e{l}_wo", at["wo"]); putV(f"e{l}_bo", at["bo"])
        putV(f"e{l}_ln1g", lp["ln1_g"]); putV(f"e{l}_ln1b", lp["ln1_b"])
        putA(f"e{l}_w1", fn["w1"]); putV(f"e{l}_b1", fn["b1"])
        putB(f"e{l}_w2", fn["w2"]); putV(f"e{l}_b2", fn["b2"])
        putV(f"e{l}_ln2g", lp["ln2_g"]); putV(f"e{l}_ln2b", lp["ln2_b"])

    for l, lp in enumerate(params["dec_layers"]):
        sa, ca, fn = lp["self_attn"], lp["cross_attn"], lp["ffn"]
        putA(f"d{l}_wqkv", jnp.concatenate([sa["wq"] * scale, sa["wk"], sa["wv"]], axis=1))
        putV(f"d{l}_bqkv", jnp.concatenate([sa["bq"] * scale, sa["bk"], sa["bv"]], axis=1))
        putA(f"d{l}_wo1", sa["wo"]); putV(f"d{l}_bo1", sa["bo"])
        putV(f"d{l}_ln1g", lp["ln1_g"]); putV(f"d{l}_ln1b", lp["ln1_b"])
        putA(f"d{l}_wq2", ca["wq"] * scale); putV(f"d{l}_bq2", ca["bq"] * scale)
        putA(f"d{l}_wkv2", jnp.concatenate([ca["wk"], ca["wv"]], axis=1))
        putV(f"d{l}_bkv2", jnp.concatenate([ca["bk"], ca["bv"]], axis=1))
        putA(f"d{l}_wo2", ca["wo"]); putV(f"d{l}_bo2", ca["bo"])
        putV(f"d{l}_ln2g", lp["ln2_g"]); putV(f"d{l}_ln2b", lp["ln2_b"])
        putA(f"d{l}_w1", fn["w1"]); putV(f"d{l}_b1", fn["b1"])
        putB(f"d{l}_w2", fn["w2"]); putV(f"d{l}_b2", fn["b2"])
        putV(f"d{l}_ln3g", lp["ln3_g"]); putV(f"d{l}_ln3b", lp["ln3_b"])

    putA("out_w", params["out_w"])       # zero-padded to 128 lanes in the slab
    putV("out_b", params["out_b"])

    return {
        "enc_tok_emb": params["enc_tok_emb"],
        "dec_tok_emb": params["dec_tok_emb"],
        "pos_emb": params["pos_emb"],
        "wa": WA, "wb": WB, "vec": VEC,
    }


# ------------------------- pure-JAX reference (check) ------------------------
def _ref_forward(params, src, trg):
    cfg = CONFIG
    D, H = cfg["d_model"], cfg["head_nums"]
    Dh = D // H
    hp = lax.Precision.HIGHEST

    def lin(x, w, b):
        return jnp.dot(x, w, precision=hp) + b

    def ln(x, g, b):
        m = jnp.mean(x, -1, keepdims=True)
        v = jnp.mean((x - m) ** 2, -1, keepdims=True)
        return (x - m) / jnp.sqrt(v + EPS) * g + b

    def mha(xq, xkv, mask, p):
        B, Sq, _ = xq.shape
        Sk = xkv.shape[1]
        q = lin(xq, p["wq"], p["bq"]).reshape(B, Sq, H, Dh).transpose(0, 2, 1, 3)
        k = lin(xkv, p["wk"], p["bk"]).reshape(B, Sk, H, Dh).transpose(0, 2, 1, 3)
        v = lin(xkv, p["wv"], p["bv"]).reshape(B, Sk, H, Dh).transpose(0, 2, 1, 3)
        s = jnp.einsum("bhqd,bhkd->bhqk", q, k, precision=hp) / math.sqrt(Dh)
        s = jnp.where(mask, s, -10000.0)
        a = jax.nn.softmax(s, axis=-1)
        c = jnp.einsum("bhqk,bhkd->bhqd", a, v, precision=hp)
        c = c.transpose(0, 2, 1, 3).reshape(B, Sq, D)
        return lin(c, p["wo"], p["bo"])

    def ffn(x, p):
        return lin(jnp.maximum(lin(x, p["w1"], p["b1"]), 0.0), p["w2"], p["b2"])

    Ss, St = src.shape[1], trg.shape[1]
    src_mask = (src != cfg["src_pad_idx"])[:, None, None, :]
    trg_mask = ((trg != cfg["trg_pad_idx"])[:, None, None, :]
                & jnp.tril(jnp.ones((St, St), dtype=bool)))

    x = params["enc_tok_emb"][src] + params["pos_emb"][:Ss][None]
    for lp in params["enc_layers"]:
        x = ln(mha(x, x, src_mask, lp["attn"]) + x, lp["ln1_g"], lp["ln1_b"])
        x = ln(ffn(x, lp["ffn"]) + x, lp["ln2_g"], lp["ln2_b"])
    enc = x

    y = params["dec_tok_emb"][trg] + params["pos_emb"][:St][None]
    for lp in params["dec_layers"]:
        y = ln(mha(y, y, trg_mask, lp["self_attn"]) + y, lp["ln1_g"], lp["ln1_b"])
        y = ln(mha(y, enc, src_mask, lp["cross_attn"]) + y, lp["ln2_g"], lp["ln2_b"])
        y = ln(ffn(y, lp["ffn"]) + y, lp["ln3_g"], lp["ln3_b"])
    return lin(y, params["out_w"], params["out_b"])


# ---------------------------------- main -------------------------------------
if __name__ == "__main__":
    key = jax.random.PRNGKey(0)
    pkey, skey, tkey = jax.random.split(key, 3)

    params = init_params(pkey)
    packed = pack_params(params)

    B, S = 2, 8
    src = jax.random.randint(skey, (B, S), 0, CONFIG["vocab_size"], dtype=jnp.int32)
    trg = jax.random.randint(tkey, (B, S), 0, CONFIG["vocab_size"], dtype=jnp.int32)
    # force a few pad tokens so masks are non-trivial
    src = src.at[:, -2:].set(CONFIG["src_pad_idx"])
    trg = trg.at[:, -1:].set(CONFIG["trg_pad_idx"])

    fwd = jax.jit(transformer_forward)
    out = jax.block_until_ready(fwd(packed, src, trg))

    assert out.shape == (B, S, CONFIG["decoder_size"]), out.shape
    assert bool(jnp.all(jnp.isfinite(out)))

    ref = _ref_forward(params, src, trg)
    max_err = float(jnp.max(jnp.abs(out - ref)))
    assert jnp.allclose(out, ref, rtol=2e-2, atol=2e-2), max_err

    print("KERNEL_OK")
</pallas_src>

<mosaic_0001>
module attributes {stable_mosaic.version = 11 : i64} {
  func.func @_fused_transformer_kernel(%arg0: i32, %arg1: memref<1x8x32xf32, #tpu.memory_space<vmem>>, %arg2: memref<1x8x32xf32, #tpu.memory_space<vmem>>, %arg3: memref<1x1x8xf32, #tpu.memory_space<vmem>>, %arg4: memref<1x1x8xf32, #tpu.memory_space<vmem>>, %arg5: memref<32x1152xf32, #tpu.memory_space<vmem>>, %arg6: memref<64x128xf32, #tpu.memory_space<vmem>>, %arg7: memref<48x128xf32, #tpu.memory_space<vmem>>, %arg8: memref<1x8x128xf32, #tpu.memory_space<vmem>>) attributes {dimension_semantics = [#tpu.dimension_semantics<parallel>], iteration_bounds = array<i64: 2>, scalar_prefetch = 0 : i64, scratch_operands = 0 : i64, tpu.core_type = #tpu.core_type<tc>, window_params = [{transform_indices = @transform_0, window_bounds = array<i64: 1, 8, 32>}, {transform_indices = @transform_1, window_bounds = array<i64: 1, 8, 32>}, {transform_indices = @transform_2, window_bounds = array<i64: 1, 1, 8>}, {transform_indices = @transform_3, window_bounds = array<i64: 1, 1, 8>}, {pipeline_mode = #tpu.pipeline_mode<synchronous>, transform_indices = @transform_4, window_bounds = array<i64: 32, 1152>}, {pipeline_mode = #tpu.pipeline_mode<synchronous>, transform_indices = @transform_5, window_bounds = array<i64: 64, 128>}, {pipeline_mode = #tpu.pipeline_mode<synchronous>, transform_indices = @transform_6, window_bounds = array<i64: 48, 128>}, {transform_indices = @transform_7, window_bounds = array<i64: 1, 8, 128>}]} {
    %c0 = arith.constant 0 : index
    %c0_0 = arith.constant 0 : index
    %c0_1 = arith.constant 0 : index
    %0 = vector.load %arg3[%c0, %c0_0, %c0_1] : memref<1x1x8xf32, #tpu.memory_space<vmem>>, vector<1x1x8xf32>
    %1 = vector.shape_cast %0 : vector<1x1x8xf32> to vector<1x8xf32>
    %cst = arith.constant 5.000000e-01 : f32
    %2 = vector.broadcast %cst : f32 to vector<1x8xf32>
    %3 = arith.cmpf ogt, %1, %2 : vector<1x8xf32>
    %c0_2 = arith.constant 0 : index
    %c0_3 = arith.constant 0 : index
    %c0_4 = arith.constant 0 : index
    %4 = vector.load %arg4[%c0_2, %c0_3, %c0_4] : memref<1x1x8xf32, #tpu.memory_space<vmem>>, vector<1x1x8xf32>
    %5 = vector.shape_cast %4 : vector<1x1x8xf32> to vector<1x8xf32>
    %cst_5 = arith.constant 5.000000e-01 : f32
    %6 = vector.broadcast %cst_5 : f32 to vector<1x8xf32>
    %7 = arith.cmpf ogt, %5, %6 : vector<1x8xf32>
    %8 = tpu.iota {dimensions = array<i32: 0>} : vector<8x8xi32>
    %9 = tpu.iota {dimensions = array<i32: 1>} : vector<8x8xi32>
    %10 = arith.cmpi sge, %8, %9 : vector<8x8xi32>
    %11 = vector.broadcast %7 : vector<1x8xi1> to vector<8x8xi1>
    %12 = arith.andi %11, %10 : vector<8x8xi1>
    %c0_6 = arith.constant 0 : index
    %c0_7 = arith.constant 0 : index
    %c0_8 = arith.constant 0 : index
    %13 = vector.load %arg1[%c0_6, %c0_7, %c0_8] : memref<1x8x32xf32, #tpu.memory_space<vmem>>, vector<1x8x32xf32>
    %14 = vector.shape_cast %13 : vector<1x8x32xf32> to vector<8x32xf32>
    %c0_9 = arith.constant 0 : index
    %c0_10 = arith.constant 0 : index
    %15 = vector.load %arg5[%c0_9, %c0_10] : memref<32x1152xf32, #tpu.memory_space<vmem>>, vector<32x96xf32>
    %c0_11 = arith.constant 0 : index
    %c0_12 = arith.constant 0 : index
    %16 = vector.load %arg7[%c0_11, %c0_12] : memref<48x128xf32, #tpu.memory_space<vmem>>, vector<1x96xf32>
    %cst_13 = arith.constant dense<0.000000e+00> : vector<8x96xf32>
    %17 = tpu.matmul %14, %15, %cst_13 {dimension_numbers = #tpu.dot_dimension_numbers<[1], [0], [0], [1], [0, 0, 1, 1], [], []>} : vector<8x32xf32>, vector<32x96xf32>, vector<8x96xf32> -> vector<8x96xf32>
    %18 = vector.broadcast %16 : vector<1x96xf32> to vector<8x96xf32>
    %19 = arith.addf %17, %18 : vector<8x96xf32>
    %20 = vector.extract_strided_slice %19 {offsets = [0, 0], sizes = [8, 32], strides = [1, 1]} : vector<8x96xf32> to vector<8x32xf32>
    %21 = vector.extract_strided_slice %19 {offsets = [0, 32], sizes = [8, 32], strides = [1, 1]} : vector<8x96xf32> to vector<8x32xf32>
    %22 = vector.extract_strided_slice %19 {offsets = [0, 64], sizes = [8, 32], strides = [1, 1]} : vector<8x96xf32> to vector<8x32xf32>
    %23 = vector.shape_cast %20 : vector<8x32xf32> to vector<8x4x8xf32>
    %24 = vector.shape_cast %21 : vector<8x32xf32> to vector<8x4x8xf32>
    %25 = vector.shape_cast %22 : vector<8x32xf32> to vector<8x4x8xf32>
    "tpu.trace_start"() <{level = 10 : i32, message = "qhd,khd->hqk"}> : () -> ()
    %cst_14 = arith.constant dense<0.000000e+00> : vector<4x8x8xf32>
    %26 = tpu.matmul %23, %24, %cst_14 {dimension_numbers = #tpu.dot_dimension_numbers<[2], [2], [0], [0], [0, 1, 0, 0, 1, 0], [1], [1]>} : vector<8x4x8xf32>, vector<8x4x8xf32>, vector<4x8x8xf32> -> vector<4x8x8xf32>
    %cst_15 = arith.constant -1.000000e+04 : f32
    "tpu.trace_stop"() : () -> ()
    %27 = vector.shape_cast %3 : vector<1x8xi1> to vector<1x1x8xi1>
    %28 = vector.broadcast %27 : vector<1x1x8xi1> to vector<4x8x8xi1>
    %29 = vector.broadcast %cst_15 : f32 to vector<4x8x8xf32>
    %30 = arith.select %28, %26, %29 : vector<4x8x8xi1>, vector<4x8x8xf32>
    %cst_16 = arith.constant dense<0xFF800000> : vector<4x8xf32>
    %31 = vector.multi_reduction <maximumf>, %30, %cst_16 [2] : vector<4x8x8xf32> to vector<4x8xf32>
    %32 = vector.shape_cast %31 : vector<4x8xf32> to vector<4x8x1xf32>
    %33 = vector.broadcast %32 : vector<4x8x1xf32> to vector<4x8x8xf32>
    %34 = arith.subf %30, %33 : vector<4x8x8xf32>
    %35 = math.exp %34 : vector<4x8x8xf32>
    %cst_17 = arith.constant dense<0.000000e+00> : vector<4x8xf32>
    %36 = vector.multi_reduction <add>, %35, %cst_17 [2] : vector<4x8x8xf32> to vector<4x8xf32>
    %37 = vector.shape_cast %36 : vector<4x8xf32> to vector<4x8x1xf32>
    %38 = tpu.reciprocal %37 {approx = true} : vector<4x8x1xf32> -> vector<4x8x1xf32>
    %39 = vector.broadcast %38 : vector<4x8x1xf32> to vector<4x8x8xf32>
    %40 = arith.mulf %35, %39 : vector<4x8x8xf32>
    "tpu.trace_start"() <{level = 10 : i32, message = "hqk,khd->qhd"}> : () -> ()
    %cst_18 = arith.constant dense<0.000000e+00> : vector<4x8x8xf32>
    %41 = tpu.matmul %25, %40, %cst_18 {dimension_numbers = #tpu.dot_dimension_numbers<[0], [2], [2], [1], [0, 1, 0, 2, 1, 1], [1], [0]>} : vector<8x4x8xf32>, vector<4x8x8xf32>, vector<4x8x8xf32> -> vector<4x8x8xf32>
    %42 = tpu.transpose %41, [2, 0, 1] : vector<4x8x8xf32> -> vector<8x4x8xf32>
    "tpu.trace_stop"() : () -> ()
    %43 = vector.shape_cast %42 : vector<8x4x8xf32> to vector<8x32xf32>
    %c0_19 = arith.constant 0 : index
    %c96 = arith.constant 96 : index
    %44 = vector.load %arg5[%c0_19, %c96] : memref<32x1152xf32, #tpu.memory_space<vmem>>, vector<32x32xf32>
    %c1 = arith.constant 1 : index
    %c0_20 = arith.constant 0 : index
    %45 = vector.load %arg7[%c1, %c0_20] : memref<48x128xf32, #tpu.memory_space<vmem>>, vector<1x32xf32>
    %cst_21 = arith.constant dense<0.000000e+00> : vector<8x32xf32>
    %46 = tpu.matmul %43, %44, %cst_21 {dimension_numbers = #tpu.dot_dimension_numbers<[1], [0], [0], [1], [0, 0, 1, 1], [], []>} : vector<8x32xf32>, vector<32x32xf32>, vector<8x32xf32> -> vector<8x32xf32>
    %47 = vector.broadcast %45 : vector<1x32xf32> to vector<8x32xf32>
    %48 = arith.addf %46, %47 : vector<8x32xf32>
    %49 = arith.addf %48, %14 : vector<8x32xf32>
    %c2 = arith.constant 2 : index
    %c0_22 = arith.constant 0 : index
    %50 = vector.load %arg7[%c2, %c0_22] : memref<48x128xf32, #tpu.memory_space<vmem>>, vector<1x32xf32>
    %c3 = arith.constant 3 : index
    %c0_23 = arith.constant 0 : index
    %51 = vector.load %arg7[%c3, %c0_23] : memref<48x128xf32, #tpu.memory_space<vmem>>, vector<1x32xf32>
    %cst_24 = arith.constant dense<0.000000e+00> : vector<8xf32>
    %52 = vector.multi_reduction <add>, %49, %cst_24 [1] : vector<8x32xf32> to vector<8xf32>
    %53 = vector.shape_cast %52 : vector<8xf32> to vector<8x1xf32>
    %cst_25 = arith.constant 3.200000e+01 : f32
    %54 = vector.broadcast %cst_25 : f32 to vector<8x1xf32>
    %55 = arith.divf %53, %54 : vector<8x1xf32>
    %56 = vector.broadcast %55 : vector<8x1xf32> to vector<8x32xf32>
    %57 = arith.subf %49, %56 : vector<8x32xf32>
    %58 = arith.mulf %57, %57 : vector<8x32xf32>
    %cst_26 = arith.constant dense<0.000000e+00> : vector<8xf32>
    %59 = vector.multi_reduction <add>, %58, %cst_26 [1] : vector<8x32xf32> to vector<8xf32>
    %60 = vector.shape_cast %59 : vector<8xf32> to vector<8x1xf32>
    %cst_27 = arith.constant 3.200000e+01 : f32
    %61 = vector.broadcast %cst_27 : f32 to vector<8x1xf32>
    %62 = arith.divf %60, %61 : vector<8x1xf32>
    %63 = vector.broadcast %55 : vector<8x1xf32> to vector<8x32xf32>
    %64 = arith.subf %49, %63 : vector<8x32xf32>
    %cst_28 = arith.constant 9.99999996E-13 : f32
    %65 = vector.broadcast %cst_28 : f32 to vector<8x1xf32>
    %66 = arith.addf %62, %65 : vector<8x1xf32>
    %67 = math.rsqrt %66 : vector<8x1xf32>
    %68 = vector.broadcast %67 : vector<8x1xf32> to vector<8x32xf32>
    %69 = arith.mulf %64, %68 : vector<8x32xf32>
    %70 = vector.broadcast %50 : vector<1x32xf32> to vector<8x32xf32>
    %71 = arith.mulf %69, %70 : vector<8x32xf32>
    %72 = vector.broadcast %51 : vector<1x32xf32> to vector<8x32xf32>
    %73 = arith.addf %71, %72 : vector<8x32xf32>
    %c0_29 = arith.constant 0 : index
    %c128 = arith.constant 128 : index
    %74 = vector.load %arg5[%c0_29, %c128] : memref<32x1152xf32, #tpu.memory_space<vmem>>, vector<32x64xf32>
    %c4 = arith.constant 4 : index
    %c0_30 = arith.constant 0 : index
    %75 = vector.load %arg7[%c4, %c0_30] : memref<48x128xf32, #tpu.memory_space<vmem>>, vector<1x64xf32>
    %cst_31 = arith.constant dense<0.000000e+00> : vector<8x64xf32>
    %76 = tpu.matmul %73, %74, %cst_31 {dimension_numbers = #tpu.dot_dimension_numbers<[1], [0], [0], [1], [0, 0, 1, 1], [], []>} : vector<8x32xf32>, vector<32x64xf32>, vector<8x64xf32> -> vector<8x64xf32>
    %77 = vector.broadcast %75 : vector<1x64xf32> to vector<8x64xf32>
    %78 = arith.addf %76, %77 : vector<8x64xf32>
    %cst_32 = arith.constant 0.000000e+00 : f32
    %79 = vector.broadcast %cst_32 : f32 to vector<8x64xf32>
    %80 = arith.maximumf %78, %79 : vector<8x64xf32>
    %c0_33 = arith.constant 0 : index
    %c0_34 = arith.constant 0 : index
    %81 = vector.load %arg6[%c0_33, %c0_34] : memref<64x128xf32, #tpu.memory_space<vmem>>, vector<64x32xf32>
    %c5 = arith.constant 5 : index
    %c0_35 = arith.constant 0 : index
    %82 = vector.load %arg7[%c5, %c0_35] : memref<48x128xf32, #tpu.memory_space<vmem>>, vector<1x32xf32>
    %cst_36 = arith.constant dense<0.000000e+00> : vector<8x32xf32>
    %83 = tpu.matmul %80, %81, %cst_36 {dimension_numbers = #tpu.dot_dimension_numbers<[1], [0], [0], [1], [0, 0, 1, 1], [], []>} : vector<8x64xf32>, vector<64x32xf32>, vector<8x32xf32> -> vector<8x32xf32>
    %84 = vector.broadcast %82 : vector<1x32xf32> to vector<8x32xf32>
    %85 = arith.addf %83, %84 : vector<8x32xf32>
    %86 = arith.addf %85, %73 : vector<8x32xf32>
    %c6 = arith.constant 6 : index
    %c0_37 = arith.constant 0 : index
    %87 = vector.load %arg7[%c6, %c0_37] : memref<48x128xf32, #tpu.memory_space<vmem>>, vector<1x32xf32>
    %c7 = arith.constant 7 : index
    %c0_38 = arith.constant 0 : index
    %88 = vector.load %arg7[%c7, %c0_38] : memref<48x128xf32, #tpu.memory_space<vmem>>, vector<1x32xf32>
    %cst_39 = arith.constant dense<0.000000e+00> : vector<8xf32>
    %89 = vector.multi_reduction <add>, %86, %cst_39 [1] : vector<8x32xf32> to vector<8xf32>
    %90 = vector.shape_cast %89 : vector<8xf32> to vector<8x1xf32>
    %cst_40 = arith.constant 3.200000e+01 : f32
    %91 = vector.broadcast %cst_40 : f32 to vector<8x1xf32>
    %92 = arith.divf %90, %91 : vector<8x1xf32>
    %93 = vector.broadcast %92 : vector<8x1xf32> to vector<8x32xf32>
    %94 = arith.subf %86, %93 : vector<8x32xf32>
    %95 = arith.mulf %94, %94 : vector<8x32xf32>
    %cst_41 = arith.constant dense<0.000000e+00> : vector<8xf32>
    %96 = vector.multi_reduction <add>, %95, %cst_41 [1] : vector<8x32xf32> to vector<8xf32>
    %97 = vector.shape_cast %96 : vector<8xf32> to vector<8x1xf32>
    %cst_42 = arith.constant 3.200000e+01 : f32
    %98 = vector.broadcast %cst_42 : f32 to vector<8x1xf32>
    %99 = arith.divf %97, %98 : vector<8x1xf32>
    %100 = vector.broadcast %92 : vector<8x1xf32> to vector<8x32xf32>
    %101 = arith.subf %86, %100 : vector<8x32xf32>
    %cst_43 = arith.constant 9.99999996E-13 : f32
    %102 = vector.broadcast %cst_43 : f32 to vector<8x1xf32>
    %103 = arith.addf %99, %102 : vector<8x1xf32>
    %104 = math.rsqrt %103 : vector<8x1xf32>
    %105 = vector.broadcast %104 : vector<8x1xf32> to vector<8x32xf32>
    %106 = arith.mulf %101, %105 : vector<8x32xf32>
    %107 = vector.broadcast %87 : vector<1x32xf32> to vector<8x32xf32>
    %108 = arith.mulf %106, %107 : vector<8x32xf32>
    %109 = vector.broadcast %88 : vector<1x32xf32> to vector<8x32xf32>
    %110 = arith.addf %108, %109 : vector<8x32xf32>
    %c0_44 = arith.constant 0 : index
    %c192 = arith.constant 192 : index
    %111 = vector.load %arg5[%c0_44, %c192] : memref<32x1152xf32, #tpu.memory_space<vmem>>, vector<32x96xf32>
    %c8 = arith.constant 8 : index
    %c0_45 = arith.constant 0 : index
    %112 = vector.load %arg7[%c8, %c0_45] : memref<48x128xf32, #tpu.memory_space<vmem>>, vector<1x96xf32>
    %cst_46 = arith.constant dense<0.000000e+00> : vector<8x96xf32>
    %113 = tpu.matmul %110, %111, %cst_46 {dimension_numbers = #tpu.dot_dimension_numbers<[1], [0], [0], [1], [0, 0, 1, 1], [], []>} : vector<8x32xf32>, vector<32x96xf32>, vector<8x96xf32> -> vector<8x96xf32>
    %114 = vector.broadcast %112 : vector<1x96xf32> to vector<8x96xf32>
    %115 = arith.addf %113, %114 : vector<8x96xf32>
    %116 = vector.extract_strided_slice %115 {offsets = [0, 0], sizes = [8, 32], strides = [1, 1]} : vector<8x96xf32> to vector<8x32xf32>
    %117 = vector.extract_strided_slice %115 {offsets = [0, 32], sizes = [8, 32], strides = [1, 1]} : vector<8x96xf32> to vector<8x32xf32>
    %118 = vector.extract_strided_slice %115 {offsets = [0, 64], sizes = [8, 32], strides = [1, 1]} : vector<8x96xf32> to vector<8x32xf32>
    %119 = vector.shape_cast %116 : vector<8x32xf32> to vector<8x4x8xf32>
    %120 = vector.shape_cast %117 : vector<8x32xf32> to vector<8x4x8xf32>
    %121 = vector.shape_cast %118 : vector<8x32xf32> to vector<8x4x8xf32>
    "tpu.trace_start"() <{level = 10 : i32, message = "qhd,khd->hqk"}> : () -> ()
    %cst_47 = arith.constant dense<0.000000e+00> : vector<4x8x8xf32>
    %122 = tpu.matmul %119, %120, %cst_47 {dimension_numbers = #tpu.dot_dimension_numbers<[2], [2], [0], [0], [0, 1, 0, 0, 1, 0], [1], [1]>} : vector<8x4x8xf32>, vector<8x4x8xf32>, vector<4x8x8xf32> -> vector<4x8x8xf32>
    %cst_48 = arith.constant -1.000000e+04 : f32
    "tpu.trace_stop"() : () -> ()
    %123 = vector.shape_cast %3 : vector<1x8xi1> to vector<1x1x8xi1>
    %124 = vector.broadcast %123 : vector<1x1x8xi1> to vector<4x8x8xi1>
    %125 = vector.broadcast %cst_48 : f32 to vector<4x8x8xf32>
    %126 = arith.select %124, %122, %125 : vector<4x8x8xi1>, vector<4x8x8xf32>
    %cst_49 = arith.constant dense<0xFF800000> : vector<4x8xf32>
    %127 = vector.multi_reduction <maximumf>, %126, %cst_49 [2] : vector<4x8x8xf32> to vector<4x8xf32>
    %128 = vector.shape_cast %127 : vector<4x8xf32> to vector<4x8x1xf32>
    %129 = vector.broadcast %128 : vector<4x8x1xf32> to vector<4x8x8xf32>
    %130 = arith.subf %126, %129 : vector<4x8x8xf32>
    %131 = math.exp %130 : vector<4x8x8xf32>
    %cst_50 = arith.constant dense<0.000000e+00> : vector<4x8xf32>
    %132 = vector.multi_reduction <add>, %131, %cst_50 [2] : vector<4x8x8xf32> to vector<4x8xf32>
    %133 = vector.shape_cast %132 : vector<4x8xf32> to vector<4x8x1xf32>
    %134 = tpu.reciprocal %133 {approx = true} : vector<4x8x1xf32> -> vector<4x8x1xf32>
    %135 = vector.broadcast %134 : vector<4x8x1xf32> to vector<4x8x8xf32>
    %136 = arith.mulf %131, %135 : vector<4x8x8xf32>
    "tpu.trace_start"() <{level = 10 : i32, message = "hqk,khd->qhd"}> : () -> ()
    %cst_51 = arith.constant dense<0.000000e+00> : vector<4x8x8xf32>
    %137 = tpu.matmul %121, %136, %cst_51 {dimension_numbers = #tpu.dot_dimension_numbers<[0], [2], [2], [1], [0, 1, 0, 2, 1, 1], [1], [0]>} : vector<8x4x8xf32>, vector<4x8x8xf32>, vector<4x8x8xf32> -> vector<4x8x8xf32>
    %138 = tpu.transpose %137, [2, 0, 1] : vector<4x8x8xf32> -> vector<8x4x8xf32>
    "tpu.trace_stop"() : () -> ()
    %139 = vector.shape_cast %138 : vector<8x4x8xf32> to vector<8x32xf32>
    %c0_52 = arith.constant 0 : index
    %c288 = arith.constant 288 : index
    %140 = vector.load %arg5[%c0_52, %c288] : memref<32x1152xf32, #tpu.memory_space<vmem>>, vector<32x32xf32>
    %c9 = arith.constant 9 : index
    %c0_53 = arith.constant 0 : index
    %141 = vector.load %arg7[%c9, %c0_53] : memref<48x128xf32, #tpu.memory_space<vmem>>, vector<1x32xf32>
    %cst_54 = arith.constant dense<0.000000e+00> : vector<8x32xf32>
    %142 = tpu.matmul %139, %140, %cst_54 {dimension_numbers = #tpu.dot_dimension_numbers<[1], [0], [0], [1], [0, 0, 1, 1], [], []>} : vector<8x32xf32>, vector<32x32xf32>, vector<8x32xf32> -> vector<8x32xf32>
    %143 = vector.broadcast %141 : vector<1x32xf32> to vector<8x32xf32>
    %144 = arith.addf %142, %143 : vector<8x32xf32>
    %145 = arith.addf %144, %110 : vector<8x32xf32>
    %c10 = arith.constant 10 : index
    %c0_55 = arith.constant 0 : index
    %146 = vector.load %arg7[%c10, %c0_55] : memref<48x128xf32, #tpu.memory_space<vmem>>, vector<1x32xf32>
    %c11 = arith.constant 11 : index
    %c0_56 = arith.constant 0 : index
    %147 = vector.load %arg7[%c11, %c0_56] : memref<48x128xf32, #tpu.memory_space<vmem>>, vector<1x32xf32>
    %cst_57 = arith.constant dense<0.000000e+00> : vector<8xf32>
    %148 = vector.multi_reduction <add>, %145, %cst_57 [1] : vector<8x32xf32> to vector<8xf32>
    %149 = vector.shape_cast %148 : vector<8xf32> to vector<8x1xf32>
    %cst_58 = arith.constant 3.200000e+01 : f32
    %150 = vector.broadcast %cst_58 : f32 to vector<8x1xf32>
    %151 = arith.divf %149, %150 : vector<8x1xf32>
    %152 = vector.broadcast %151 : vector<8x1xf32> to vector<8x32xf32>
    %153 = arith.subf %145, %152 : vector<8x32xf32>
    %154 = arith.mulf %153, %153 : vector<8x32xf32>
    %cst_59 = arith.constant dense<0.000000e+00> : vector<8xf32>
    %155 = vector.multi_reduction <add>, %154, %cst_59 [1] : vector<8x32xf32> to vector<8xf32>
    %156 = vector.shape_cast %155 : vector<8xf32> to vector<8x1xf32>
    %cst_60 = arith.constant 3.200000e+01 : f32
    %157 = vector.broadcast %cst_60 : f32 to vector<8x1xf32>
    %158 = arith.divf %156, %157 : vector<8x1xf32>
    %159 = vector.broadcast %151 : vector<8x1xf32> to vector<8x32xf32>
    %160 = arith.subf %145, %159 : vector<8x32xf32>
    %cst_61 = arith.constant 9.99999996E-13 : f32
    %161 = vector.broadcast %cst_61 : f32 to vector<8x1xf32>
    %162 = arith.addf %158, %161 : vector<8x1xf32>
    %163 = math.rsqrt %162 : vector<8x1xf32>
    %164 = vector.broadcast %163 : vector<8x1xf32> to vector<8x32xf32>
    %165 = arith.mulf %160, %164 : vector<8x32xf32>
    %166 = vector.broadcast %146 : vector<1x32xf32> to vector<8x32xf32>
    %167 = arith.mulf %165, %166 : vector<8x32xf32>
    %168 = vector.broadcast %147 : vector<1x32xf32> to vector<8x32xf32>
    %169 = arith.addf %167, %168 : vector<8x32xf32>
    %c0_62 = arith.constant 0 : index
    %c320 = arith.constant 320 : index
    %170 = vector.load %arg5[%c0_62, %c320] : memref<32x1152xf32, #tpu.memory_space<vmem>>, vector<32x64xf32>
    %c12 = arith.constant 12 : index
    %c0_63 = arith.constant 0 : index
    %171 = vector.load %arg7[%c12, %c0_63] : memref<48x128xf32, #tpu.memory_space<vmem>>, vector<1x64xf32>
    %cst_64 = arith.constant dense<0.000000e+00> : vector<8x64xf32>
    %172 = tpu.matmul %169, %170, %cst_64 {dimension_numbers = #tpu.dot_dimension_numbers<[1], [0], [0], [1], [0, 0, 1, 1], [], []>} : vector<8x32xf32>, vector<32x64xf32>, vector<8x64xf32> -> vector<8x64xf32>
    %173 = vector.broadcast %171 : vector<1x64xf32> to vector<8x64xf32>
    %174 = arith.addf %172, %173 : vector<8x64xf32>
    %cst_65 = arith.constant 0.000000e+00 : f32
    %175 = vector.broadcast %cst_65 : f32 to vector<8x64xf32>
    %176 = arith.maximumf %174, %175 : vector<8x64xf32>
    %c0_66 = arith.constant 0 : index
    %c32 = arith.constant 32 : index
    %177 = vector.load %arg6[%c0_66, %c32] : memref<64x128xf32, #tpu.memory_space<vmem>>, vector<64x32xf32>
    %c13 = arith.constant 13 : index
    %c0_67 = arith.constant 0 : index
    %178 = vector.load %arg7[%c13, %c0_67] : memref<48x128xf32, #tpu.memory_space<vmem>>, vector<1x32xf32>
    %cst_68 = arith.constant dense<0.000000e+00> : vector<8x32xf32>
    %179 = tpu.matmul %176, %177, %cst_68 {dimension_numbers = #tpu.dot_dimension_numbers<[1], [0], [0], [1], [0, 0, 1, 1], [], []>} : vector<8x64xf32>, vector<64x32xf32>, vector<8x32xf32> -> vector<8x32xf32>
    %180 = vector.broadcast %178 : vector<1x32xf32> to vector<8x32xf32>
    %181 = arith.addf %179, %180 : vector<8x32xf32>
    %182 = arith.addf %181, %169 : vector<8x32xf32>
    %c14 = arith.constant 14 : index
    %c0_69 = arith.constant 0 : index
    %183 = vector.load %arg7[%c14, %c0_69] : memref<48x128xf32, #tpu.memory_space<vmem>>, vector<1x32xf32>
    %c15 = arith.constant 15 : index
    %c0_70 = arith.constant 0 : index
    %184 = vector.load %arg7[%c15, %c0_70] : memref<48x128xf32, #tpu.memory_space<vmem>>, vector<1x32xf32>
    %cst_71 = arith.constant dense<0.000000e+00> : vector<8xf32>
    %185 = vector.multi_reduction <add>, %182, %cst_71 [1] : vector<8x32xf32> to vector<8xf32>
    %186 = vector.shape_cast %185 : vector<8xf32> to vector<8x1xf32>
    %cst_72 = arith.constant 3.200000e+01 : f32
    %187 = vector.broadcast %cst_72 : f32 to vector<8x1xf32>
    %188 = arith.divf %186, %187 : vector<8x1xf32>
    %189 = vector.broadcast %188 : vector<8x1xf32> to vector<8x32xf32>
    %190 = arith.subf %182, %189 : vector<8x32xf32>
    %191 = arith.mulf %190, %190 : vector<8x32xf32>
    %cst_73 = arith.constant dense<0.000000e+00> : vector<8xf32>
    %192 = vector.multi_reduction <add>, %191, %cst_73 [1] : vector<8x32xf32> to vector<8xf32>
    %193 = vector.shape_cast %192 : vector<8xf32> to vector<8x1xf32>
    %cst_74 = arith.constant 3.200000e+01 : f32
    %194 = vector.broadcast %cst_74 : f32 to vector<8x1xf32>
    %195 = arith.divf %193, %194 : vector<8x1xf32>
    %196 = vector.broadcast %188 : vector<8x1xf32> to vector<8x32xf32>
    %197 = arith.subf %182, %196 : vector<8x32xf32>
    %cst_75 = arith.constant 9.99999996E-13 : f32
    %198 = vector.broadcast %cst_75 : f32 to vector<8x1xf32>
    %199 = arith.addf %195, %198 : vector<8x1xf32>
    %200 = math.rsqrt %199 : vector<8x1xf32>
    %201 = vector.broadcast %200 : vector<8x1xf32> to vector<8x32xf32>
    %202 = arith.mulf %197, %201 : vector<8x32xf32>
    %203 = vector.broadcast %183 : vector<1x32xf32> to vector<8x32xf32>
    %204 = arith.mulf %202, %203 : vector<8x32xf32>
    %205 = vector.broadcast %184 : vector<1x32xf32> to vector<8x32xf32>
    %206 = arith.addf %204, %205 : vector<8x32xf32>
    %c0_76 = arith.constant 0 : index
    %c0_77 = arith.constant 0 : index
    %c0_78 = arith.constant 0 : index
    %207 = vector.load %arg2[%c0_76, %c0_77, %c0_78] : memref<1x8x32xf32, #tpu.memory_space<vmem>>, vector<1x8x32xf32>
    %208 = vector.shape_cast %207 : vector<1x8x32xf32> to vector<8x32xf32>
    %c0_79 = arith.constant 0 : index
    %c384 = arith.constant 384 : index
    %209 = vector.load %arg5[%c0_79, %c384] : memref<32x1152xf32, #tpu.memory_space<vmem>>, vector<32x96xf32>
    %c16 = arith.constant 16 : index
    %c0_80 = arith.constant 0 : index
    %210 = vector.load %arg7[%c16, %c0_80] : memref<48x128xf32, #tpu.memory_space<vmem>>, vector<1x96xf32>
    %cst_81 = arith.constant dense<0.000000e+00> : vector<8x96xf32>
    %211 = tpu.matmul %208, %209, %cst_81 {dimension_numbers = #tpu.dot_dimension_numbers<[1], [0], [0], [1], [0, 0, 1, 1], [], []>} : vector<8x32xf32>, vector<32x96xf32>, vector<8x96xf32> -> vector<8x96xf32>
    %212 = vector.broadcast %210 : vector<1x96xf32> to vector<8x96xf32>
    %213 = arith.addf %211, %212 : vector<8x96xf32>
    %214 = vector.extract_strided_slice %213 {offsets = [0, 0], sizes = [8, 32], strides = [1, 1]} : vector<8x96xf32> to vector<8x32xf32>
    %215 = vector.extract_strided_slice %213 {offsets = [0, 32], sizes = [8, 32], strides = [1, 1]} : vector<8x96xf32> to vector<8x32xf32>
    %216 = vector.extract_strided_slice %213 {offsets = [0, 64], sizes = [8, 32], strides = [1, 1]} : vector<8x96xf32> to vector<8x32xf32>
    %217 = vector.shape_cast %214 : vector<8x32xf32> to vector<8x4x8xf32>
    %218 = vector.shape_cast %215 : vector<8x32xf32> to vector<8x4x8xf32>
    %219 = vector.shape_cast %216 : vector<8x32xf32> to vector<8x4x8xf32>
    "tpu.trace_start"() <{level = 10 : i32, message = "qhd,khd->hqk"}> : () -> ()
    %cst_82 = arith.constant dense<0.000000e+00> : vector<4x8x8xf32>
    %220 = tpu.matmul %217, %218, %cst_82 {dimension_numbers = #tpu.dot_dimension_numbers<[2], [2], [0], [0], [0, 1, 0, 0, 1, 0], [1], [1]>} : vector<8x4x8xf32>, vector<8x4x8xf32>, vector<4x8x8xf32> -> vector<4x8x8xf32>
    %cst_83 = arith.constant -1.000000e+04 : f32
    "tpu.trace_stop"() : () -> ()
    %221 = vector.shape_cast %12 : vector<8x8xi1> to vector<1x8x8xi1>
    %222 = vector.broadcast %221 : vector<1x8x8xi1> to vector<4x8x8xi1>
    %223 = vector.broadcast %cst_83 : f32 to vector<4x8x8xf32>
    %224 = arith.select %222, %220, %223 : vector<4x8x8xi1>, vector<4x8x8xf32>
    %cst_84 = arith.constant dense<0xFF800000> : vector<4x8xf32>
    %225 = vector.multi_reduction <maximumf>, %224, %cst_84 [2] : vector<4x8x8xf32> to vector<4x8xf32>
    %226 = vector.shape_cast %225 : vector<4x8xf32> to vector<4x8x1xf32>
    %227 = vector.broadcast %226 : vector<4x8x1xf32> to vector<4x8x8xf32>
    %228 = arith.subf %224, %227 : vector<4x8x8xf32>
    %229 = math.exp %228 : vector<4x8x8xf32>
    %cst_85 = arith.constant dense<0.000000e+00> : vector<4x8xf32>
    %230 = vector.multi_reduction <add>, %229, %cst_85 [2] : vector<4x8x8xf32> to vector<4x8xf32>
    %231 = vector.shape_cast %230 : vector<4x8xf32> to vector<4x8x1xf32>
    %232 = tpu.reciprocal %231 {approx = true} : vector<4x8x1xf32> -> vector<4x8x1xf32>
    %233 = vector.broadcast %232 : vector<4x8x1xf32> to vector<4x8x8xf32>
    %234 = arith.mulf %229, %233 : vector<4x8x8xf32>
    "tpu.trace_start"() <{level = 10 : i32, message = "hqk,khd->qhd"}> : () -> ()
    %cst_86 = arith.constant dense<0.000000e+00> : vector<4x8x8xf32>
    %235 = tpu.matmul %219, %234, %cst_86 {dimension_numbers = #tpu.dot_dimension_numbers<[0], [2], [2], [1], [0, 1, 0, 2, 1, 1], [1], [0]>} : vector<8x4x8xf32>, vector<4x8x8xf32>, vector<4x8x8xf32> -> vector<4x8x8xf32>
    %236 = tpu.transpose %235, [2, 0, 1] : vector<4x8x8xf32> -> vector<8x4x8xf32>
    "tpu.trace_stop"() : () -> ()
    %237 = vector.shape_cast %236 : vector<8x4x8xf32> to vector<8x32xf32>
    %c0_87 = arith.constant 0 : index
    %c480 = arith.constant 480 : index
    %238 = vector.load %arg5[%c0_87, %c480] : memref<32x1152xf32, #tpu.memory_space<vmem>>, vector<32x32xf32>
    %c17 = arith.constant 17 : index
    %c0_88 = arith.constant 0 : index
    %239 = vector.load %arg7[%c17, %c0_88] : memref<48x128xf32, #tpu.memory_space<vmem>>, vector<1x32xf32>
    %cst_89 = arith.constant dense<0.000000e+00> : vector<8x32xf32>
    %240 = tpu.matmul %237, %238, %cst_89 {dimension_numbers = #tpu.dot_dimension_numbers<[1], [0], [0], [1], [0, 0, 1, 1], [], []>} : vector<8x32xf32>, vector<32x32xf32>, vector<8x32xf32> -> vector<8x32xf32>
    %241 = vector.broadcast %239 : vector<1x32xf32> to vector<8x32xf32>
    %242 = arith.addf %240, %241 : vector<8x32xf32>
    %243 = arith.addf %242, %208 : vector<8x32xf32>
    %c18 = arith.constant 18 : index
    %c0_90 = arith.constant 0 : index
    %244 = vector.load %arg7[%c18, %c0_90] : memref<48x128xf32, #tpu.memory_space<vmem>>, vector<1x32xf32>
    %c19 = arith.constant 19 : index
    %c0_91 = arith.constant 0 : index
    %245 = vector.load %arg7[%c19, %c0_91] : memref<48x128xf32, #tpu.memory_space<vmem>>, vector<1x32xf32>
    %cst_92 = arith.constant dense<0.000000e+00> : vector<8xf32>
    %246 = vector.multi_reduction <add>, %243, %cst_92 [1] : vector<8x32xf32> to vector<8xf32>
    %247 = vector.shape_cast %246 : vector<8xf32> to vector<8x1xf32>
    %cst_93 = arith.constant 3.200000e+01 : f32
    %248 = vector.broadcast %cst_93 : f32 to vector<8x1xf32>
    %249 = arith.divf %247, %248 : vector<8x1xf32>
    %250 = vector.broadcast %249 : vector<8x1xf32> to vector<8x32xf32>
    %251 = arith.subf %243, %250 : vector<8x32xf32>
    %252 = arith.mulf %251, %251 : vector<8x32xf32>
    %cst_94 = arith.constant dense<0.000000e+00> : vector<8xf32>
    %253 = vector.multi_reduction <add>, %252, %cst_94 [1] : vector<8x32xf32> to vector<8xf32>
    %254 = vector.shape_cast %253 : vector<8xf32> to vector<8x1xf32>
    %cst_95 = arith.constant 3.200000e+01 : f32
    %255 = vector.broadcast %cst_95 : f32 to vector<8x1xf32>
    %256 = arith.divf %254, %255 : vector<8x1xf32>
    %257 = vector.broadcast %249 : vector<8x1xf32> to vector<8x32xf32>
    %258 = arith.subf %243, %257 : vector<8x32xf32>
    %cst_96 = arith.constant 9.99999996E-13 : f32
    %259 = vector.broadcast %cst_96 : f32 to vector<8x1xf32>
    %260 = arith.addf %256, %259 : vector<8x1xf32>
    %261 = math.rsqrt %260 : vector<8x1xf32>
    %262 = vector.broadcast %261 : vector<8x1xf32> to vector<8x32xf32>
    %263 = arith.mulf %258, %262 : vector<8x32xf32>
    %264 = vector.broadcast %244 : vector<1x32xf32> to vector<8x32xf32>
    %265 = arith.mulf %263, %264 : vector<8x32xf32>
    %266 = vector.broadcast %245 : vector<1x32xf32> to vector<8x32xf32>
    %267 = arith.addf %265, %266 : vector<8x32xf32>
    %c0_97 = arith.constant 0 : index
    %c512 = arith.constant 512 : index
    %268 = vector.load %arg5[%c0_97, %c512] : memref<32x1152xf32, #tpu.memory_space<vmem>>, vector<32x32xf32>
    %c20 = arith.constant 20 : index
    %c0_98 = arith.constant 0 : index
    %269 = vector.load %arg7[%c20, %c0_98] : memref<48x128xf32, #tpu.memory_space<vmem>>, vector<1x32xf32>
    %cst_99 = arith.constant dense<0.000000e+00> : vector<8x32xf32>
    %270 = tpu.matmul %267, %268, %cst_99 {dimension_numbers = #tpu.dot_dimension_numbers<[1], [0], [0], [1], [0, 0, 1, 1], [], []>} : vector<8x32xf32>, vector<32x32xf32>, vector<8x32xf32> -> vector<8x32xf32>
    %271 = vector.broadcast %269 : vector<1x32xf32> to vector<8x32xf32>
    %272 = arith.addf %270, %271 : vector<8x32xf32>
    %c0_100 = arith.constant 0 : index
    %c544 = arith.constant 544 : index
    %273 = vector.load %arg5[%c0_100, %c544] : memref<32x1152xf32, #tpu.memory_space<vmem>>, vector<32x64xf32>
    %c21 = arith.constant 21 : index
    %c0_101 = arith.constant 0 : index
    %274 = vector.load %arg7[%c21, %c0_101] : memref<48x128xf32, #tpu.memory_space<vmem>>, vector<1x64xf32>
    %cst_102 = arith.constant dense<0.000000e+00> : vector<8x64xf32>
    %275 = tpu.matmul %206, %273, %cst_102 {dimension_numbers = #tpu.dot_dimension_numbers<[1], [0], [0], [1], [0, 0, 1, 1], [], []>} : vector<8x32xf32>, vector<32x64xf32>, vector<8x64xf32> -> vector<8x64xf32>
    %276 = vector.broadcast %274 : vector<1x64xf32> to vector<8x64xf32>
    %277 = arith.addf %275, %276 : vector<8x64xf32>
    %278 = vector.extract_strided_slice %277 {offsets = [0, 0], sizes = [8, 32], strides = [1, 1]} : vector<8x64xf32> to vector<8x32xf32>
    %279 = vector.extract_strided_slice %277 {offsets = [0, 32], sizes = [8, 32], strides = [1, 1]} : vector<8x64xf32> to vector<8x32xf32>
    %280 = vector.shape_cast %272 : vector<8x32xf32> to vector<8x4x8xf32>
    %281 = vector.shape_cast %278 : vector<8x32xf32> to vector<8x4x8xf32>
    %282 = vector.shape_cast %279 : vector<8x32xf32> to vector<8x4x8xf32>
    "tpu.trace_start"() <{level = 10 : i32, message = "qhd,khd->hqk"}> : () -> ()
    %cst_103 = arith.constant dense<0.000000e+00> : vector<4x8x8xf32>
    %283 = tpu.matmul %280, %281, %cst_103 {dimension_numbers = #tpu.dot_dimension_numbers<[2], [2], [0], [0], [0, 1, 0, 0, 1, 0], [1], [1]>} : vector<8x4x8xf32>, vector<8x4x8xf32>, vector<4x8x8xf32> -> vector<4x8x8xf32>
    %cst_104 = arith.constant -1.000000e+04 : f32
    "tpu.trace_stop"() : () -> ()
    %284 = vector.shape_cast %3 : vector<1x8xi1> to vector<1x1x8xi1>
    %285 = vector.broadcast %284 : vector<1x1x8xi1> to vector<4x8x8xi1>
    %286 = vector.broadcast %cst_104 : f32 to vector<4x8x8xf32>
    %287 = arith.select %285, %283, %286 : vector<4x8x8xi1>, vector<4x8x8xf32>
    %cst_105 = arith.constant dense<0xFF800000> : vector<4x8xf32>
    %288 = vector.multi_reduction <maximumf>, %287, %cst_105 [2] : vector<4x8x8xf32> to vector<4x8xf32>
    %289 = vector.shape_cast %288 : vector<4x8xf32> to vector<4x8x1xf32>
    %290 = vector.broadcast %289 : vector<4x8x1xf32> to vector<4x8x8xf32>
    %291 = arith.subf %287, %290 : vector<4x8x8xf32>
    %292 = math.exp %291 : vector<4x8x8xf32>
    %cst_106 = arith.constant dense<0.000000e+00> : vector<4x8xf32>
    %293 = vector.multi_reduction <add>, %292, %cst_106 [2] : vector<4x8x8xf32> to vector<4x8xf32>
    %294 = vector.shape_cast %293 : vector<4x8xf32> to vector<4x8x1xf32>
    %295 = tpu.reciprocal %294 {approx = true} : vector<4x8x1xf32> -> vector<4x8x1xf32>
    %296 = vector.broadcast %295 : vector<4x8x1xf32> to vector<4x8x8xf32>
    %297 = arith.mulf %292, %296 : vector<4x8x8xf32>
    "tpu.trace_start"() <{level = 10 : i32, message = "hqk,khd->qhd"}> : () -> ()
    %cst_107 = arith.constant dense<0.000000e+00> : vector<4x8x8xf32>
    %298 = tpu.matmul %282, %297, %cst_107 {dimension_numbers = #tpu.dot_dimension_numbers<[0], [2], [2], [1], [0, 1, 0, 2, 1, 1], [1], [0]>} : vector<8x4x8xf32>, vector<4x8x8xf32>, vector<4x8x8xf32> -> vector<4x8x8xf32>
    %299 = tpu.transpose %298, [2, 0, 1] : vector<4x8x8xf32> -> vector<8x4x8xf32>
    "tpu.trace_stop"() : () -> ()
    %300 = vector.shape_cast %299 : vector<8x4x8xf32> to vector<8x32xf32>
    %c0_108 = arith.constant 0 : index
    %c608 = arith.constant 608 : index
    %301 = vector.load %arg5[%c0_108, %c608] : memref<32x1152xf32, #tpu.memory_space<vmem>>, vector<32x32xf32>
    %c22 = arith.constant 22 : index
    %c0_109 = arith.constant 0 : index
    %302 = vector.load %arg7[%c22, %c0_109] : memref<48x128xf32, #tpu.memory_space<vmem>>, vector<1x32xf32>
    %cst_110 = arith.constant dense<0.000000e+00> : vector<8x32xf32>
    %303 = tpu.matmul %300, %301, %cst_110 {dimension_numbers = #tpu.dot_dimension_numbers<[1], [0], [0], [1], [0, 0, 1, 1], [], []>} : vector<8x32xf32>, vector<32x32xf32>, vector<8x32xf32> -> vector<8x32xf32>
    %304 = vector.broadcast %302 : vector<1x32xf32> to vector<8x32xf32>
    %305 = arith.addf %303, %304 : vector<8x32xf32>
    %306 = arith.addf %305, %267 : vector<8x32xf32>
    %c23 = arith.constant 23 : index
    %c0_111 = arith.constant 0 : index
    %307 = vector.load %arg7[%c23, %c0_111] : memref<48x128xf32, #tpu.memory_space<vmem>>, vector<1x32xf32>
    %c24 = arith.constant 24 : index
    %c0_112 = arith.constant 0 : index
    %308 = vector.load %arg7[%c24, %c0_112] : memref<48x128xf32, #tpu.memory_space<vmem>>, vector<1x32xf32>
    %cst_113 = arith.constant dense<0.000000e+00> : vector<8xf32>
    %309 = vector.multi_reduction <add>, %306, %cst_113 [1] : vector<8x32xf32> to vector<8xf32>
    %310 = vector.shape_cast %309 : vector<8xf32> to vector<8x1xf32>
    %cst_114 = arith.constant 3.200000e+01 : f32
    %311 = vector.broadcast %cst_114 : f32 to vector<8x1xf32>
    %312 = arith.divf %310, %311 : vector<8x1xf32>
    %313 = vector.broadcast %312 : vector<8x1xf32> to vector<8x32xf32>
    %314 = arith.subf %306, %313 : vector<8x32xf32>
    %315 = arith.mulf %314, %314 : vector<8x32xf32>
    %cst_115 = arith.constant dense<0.000000e+00> : vector<8xf32>
    %316 = vector.multi_reduction <add>, %315, %cst_115 [1] : vector<8x32xf32> to vector<8xf32>
    %317 = vector.shape_cast %316 : vector<8xf32> to vector<8x1xf32>
    %cst_116 = arith.constant 3.200000e+01 : f32
    %318 = vector.broadcast %cst_116 : f32 to vector<8x1xf32>
    %319 = arith.divf %317, %318 : vector<8x1xf32>
    %320 = vector.broadcast %312 : vector<8x1xf32> to vector<8x32xf32>
    %321 = arith.subf %306, %320 : vector<8x32xf32>
    %cst_117 = arith.constant 9.99999996E-13 : f32
    %322 = vector.broadcast %cst_117 : f32 to vector<8x1xf32>
    %323 = arith.addf %319, %322 : vector<8x1xf32>
    %324 = math.rsqrt %323 : vector<8x1xf32>
    %325 = vector.broadcast %324 : vector<8x1xf32> to vector<8x32xf32>
    %326 = arith.mulf %321, %325 : vector<8x32xf32>
    %327 = vector.broadcast %307 : vector<1x32xf32> to vector<8x32xf32>
    %328 = arith.mulf %326, %327 : vector<8x32xf32>
    %329 = vector.broadcast %308 : vector<1x32xf32> to vector<8x32xf32>
    %330 = arith.addf %328, %329 : vector<8x32xf32>
    %c0_118 = arith.constant 0 : index
    %c640 = arith.constant 640 : index
    %331 = vector.load %arg5[%c0_118, %c640] : memref<32x1152xf32, #tpu.memory_space<vmem>>, vector<32x64xf32>
    %c25 = arith.constant 25 : index
    %c0_119 = arith.constant 0 : index
    %332 = vector.load %arg7[%c25, %c0_119] : memref<48x128xf32, #tpu.memory_space<vmem>>, vector<1x64xf32>
    %cst_120 = arith.constant dense<0.000000e+00> : vector<8x64xf32>
    %333 = tpu.matmul %330, %331, %cst_120 {dimension_numbers = #tpu.dot_dimension_numbers<[1], [0], [0], [1], [0, 0, 1, 1], [], []>} : vector<8x32xf32>, vector<32x64xf32>, vector<8x64xf32> -> vector<8x64xf32>
    %334 = vector.broadcast %332 : vector<1x64xf32> to vector<8x64xf32>
    %335 = arith.addf %333, %334 : vector<8x64xf32>
    %cst_121 = arith.constant 0.000000e+00 : f32
    %336 = vector.broadcast %cst_121 : f32 to vector<8x64xf32>
    %337 = arith.maximumf %335, %336 : vector<8x64xf32>
    %c0_122 = arith.constant 0 : index
    %c64 = arith.constant 64 : index
    %338 = vector.load %arg6[%c0_122, %c64] : memref<64x128xf32, #tpu.memory_space<vmem>>, vector<64x32xf32>
    %c26 = arith.constant 26 : index
    %c0_123 = arith.constant 0 : index
    %339 = vector.load %arg7[%c26, %c0_123] : memref<48x128xf32, #tpu.memory_space<vmem>>, vector<1x32xf32>
    %cst_124 = arith.constant dense<0.000000e+00> : vector<8x32xf32>
    %340 = tpu.matmul %337, %338, %cst_124 {dimension_numbers = #tpu.dot_dimension_numbers<[1], [0], [0], [1], [0, 0, 1, 1], [], []>} : vector<8x64xf32>, vector<64x32xf32>, vector<8x32xf32> -> vector<8x32xf32>
    %341 = vector.broadcast %339 : vector<1x32xf32> to vector<8x32xf32>
    %342 = arith.addf %340, %341 : vector<8x32xf32>
    %343 = arith.addf %342, %330 : vector<8x32xf32>
    %c27 = arith.constant 27 : index
    %c0_125 = arith.constant 0 : index
    %344 = vector.load %arg7[%c27, %c0_125] : memref<48x128xf32, #tpu.memory_space<vmem>>, vector<1x32xf32>
    %c28 = arith.constant 28 : index
    %c0_126 = arith.constant 0 : index
    %345 = vector.load %arg7[%c28, %c0_126] : memref<48x128xf32, #tpu.memory_space<vmem>>, vector<1x32xf32>
    %cst_127 = arith.constant dense<0.000000e+00> : vector<8xf32>
    %346 = vector.multi_reduction <add>, %343, %cst_127 [1] : vector<8x32xf32> to vector<8xf32>
    %347 = vector.shape_cast %346 : vector<8xf32> to vector<8x1xf32>
    %cst_128 = arith.constant 3.200000e+01 : f32
    %348 = vector.broadcast %cst_128 : f32 to vector<8x1xf32>
    %349 = arith.divf %347, %348 : vector<8x1xf32>
    %350 = vector.broadcast %349 : vector<8x1xf32> to vector<8x32xf32>
    %351 = arith.subf %343, %350 : vector<8x32xf32>
    %352 = arith.mulf %351, %351 : vector<8x32xf32>
    %cst_129 = arith.constant dense<0.000000e+00> : vector<8xf32>
    %353 = vector.multi_reduction <add>, %352, %cst_129 [1] : vector<8x32xf32> to vector<8xf32>
    %354 = vector.shape_cast %353 : vector<8xf32> to vector<8x1xf32>
    %cst_130 = arith.constant 3.200000e+01 : f32
    %355 = vector.broadcast %cst_130 : f32 to vector<8x1xf32>
    %356 = arith.divf %354, %355 : vector<8x1xf32>
    %357 = vector.broadcast %349 : vector<8x1xf32> to vector<8x32xf32>
    %358 = arith.subf %343, %357 : vector<8x32xf32>
    %cst_131 = arith.constant 9.99999996E-13 : f32
    %359 = vector.broadcast %cst_131 : f32 to vector<8x1xf32>
    %360 = arith.addf %356, %359 : vector<8x1xf32>
    %361 = math.rsqrt %360 : vector<8x1xf32>
    %362 = vector.broadcast %361 : vector<8x1xf32> to vector<8x32xf32>
    %363 = arith.mulf %358, %362 : vector<8x32xf32>
    %364 = vector.broadcast %344 : vector<1x32xf32> to vector<8x32xf32>
    %365 = arith.mulf %363, %364 : vector<8x32xf32>
    %366 = vector.broadcast %345 : vector<1x32xf32> to vector<8x32xf32>
    %367 = arith.addf %365, %366 : vector<8x32xf32>
    %c0_132 = arith.constant 0 : index
    %c704 = arith.constant 704 : index
    %368 = vector.load %arg5[%c0_132, %c704] : memref<32x1152xf32, #tpu.memory_space<vmem>>, vector<32x96xf32>
    %c29 = arith.constant 29 : index
    %c0_133 = arith.constant 0 : index
    %369 = vector.load %arg7[%c29, %c0_133] : memref<48x128xf32, #tpu.memory_space<vmem>>, vector<1x96xf32>
    %cst_134 = arith.constant dense<0.000000e+00> : vector<8x96xf32>
    %370 = tpu.matmul %367, %368, %cst_134 {dimension_numbers = #tpu.dot_dimension_numbers<[1], [0], [0], [1], [0, 0, 1, 1], [], []>} : vector<8x32xf32>, vector<32x96xf32>, vector<8x96xf32> -> vector<8x96xf32>
    %371 = vector.broadcast %369 : vector<1x96xf32> to vector<8x96xf32>
    %372 = arith.addf %370, %371 : vector<8x96xf32>
    %373 = vector.extract_strided_slice %372 {offsets = [0, 0], sizes = [8, 32], strides = [1, 1]} : vector<8x96xf32> to vector<8x32xf32>
    %374 = vector.extract_strided_slice %372 {offsets = [0, 32], sizes = [8, 32], strides = [1, 1]} : vector<8x96xf32> to vector<8x32xf32>
    %375 = vector.extract_strided_slice %372 {offsets = [0, 64], sizes = [8, 32], strides = [1, 1]} : vector<8x96xf32> to vector<8x32xf32>
    %376 = vector.shape_cast %373 : vector<8x32xf32> to vector<8x4x8xf32>
    %377 = vector.shape_cast %374 : vector<8x32xf32> to vector<8x4x8xf32>
    %378 = vector.shape_cast %375 : vector<8x32xf32> to vector<8x4x8xf32>
    "tpu.trace_start"() <{level = 10 : i32, message = "qhd,khd->hqk"}> : () -> ()
    %cst_135 = arith.constant dense<0.000000e+00> : vector<4x8x8xf32>
    %379 = tpu.matmul %376, %377, %cst_135 {dimension_numbers = #tpu.dot_dimension_numbers<[2], [2], [0], [0], [0, 1, 0, 0, 1, 0], [1], [1]>} : vector<8x4x8xf32>, vector<8x4x8xf32>, vector<4x8x8xf32> -> vector<4x8x8xf32>
    %cst_136 = arith.constant -1.000000e+04 : f32
    "tpu.trace_stop"() : () -> ()
    %380 = vector.shape_cast %12 : vector<8x8xi1> to vector<1x8x8xi1>
    %381 = vector.broadcast %380 : vector<1x8x8xi1> to vector<4x8x8xi1>
    %382 = vector.broadcast %cst_136 : f32 to vector<4x8x8xf32>
    %383 = arith.select %381, %379, %382 : vector<4x8x8xi1>, vector<4x8x8xf32>
    %cst_137 = arith.constant dense<0xFF800000> : vector<4x8xf32>
    %384 = vector.multi_reduction <maximumf>, %383, %cst_137 [2] : vector<4x8x8xf32> to vector<4x8xf32>
    %385 = vector.shape_cast %384 : vector<4x8xf32> to vector<4x8x1xf32>
    %386 = vector.broadcast %385 : vector<4x8x1xf32> to vector<4x8x8xf32>
    %387 = arith.subf %383, %386 : vector<4x8x8xf32>
    %388 = math.exp %387 : vector<4x8x8xf32>
    %cst_138 = arith.constant dense<0.000000e+00> : vector<4x8xf32>
    %389 = vector.multi_reduction <add>, %388, %cst_138 [2] : vector<4x8x8xf32> to vector<4x8xf32>
    %390 = vector.shape_cast %389 : vector<4x8xf32> to vector<4x8x1xf32>
    %391 = tpu.reciprocal %390 {approx = true} : vector<4x8x1xf32> -> vector<4x8x1xf32>
    %392 = vector.broadcast %391 : vector<4x8x1xf32> to vector<4x8x8xf32>
    %393 = arith.mulf %388, %392 : vector<4x8x8xf32>
    "tpu.trace_start"() <{level = 10 : i32, message = "hqk,khd->qhd"}> : () -> ()
    %cst_139 = arith.constant dense<0.000000e+00> : vector<4x8x8xf32>
    %394 = tpu.matmul %378, %393, %cst_139 {dimension_numbers = #tpu.dot_dimension_numbers<[0], [2], [2], [1], [0, 1, 0, 2, 1, 1], [1], [0]>} : vector<8x4x8xf32>, vector<4x8x8xf32>, vector<4x8x8xf32> -> vector<4x8x8xf32>
    %395 = tpu.transpose %394, [2, 0, 1] : vector<4x8x8xf32> -> vector<8x4x8xf32>
    "tpu.trace_stop"() : () -> ()
    %396 = vector.shape_cast %395 : vector<8x4x8xf32> to vector<8x32xf32>
    %c0_140 = arith.constant 0 : index
    %c800 = arith.constant 800 : index
    %397 = vector.load %arg5[%c0_140, %c800] : memref<32x1152xf32, #tpu.memory_space<vmem>>, vector<32x32xf32>
    %c30 = arith.constant 30 : index
    %c0_141 = arith.constant 0 : index
    %398 = vector.load %arg7[%c30, %c0_141] : memref<48x128xf32, #tpu.memory_space<vmem>>, vector<1x32xf32>
    %cst_142 = arith.constant dense<0.000000e+00> : vector<8x32xf32>
    %399 = tpu.matmul %396, %397, %cst_142 {dimension_numbers = #tpu.dot_dimension_numbers<[1], [0], [0], [1], [0, 0, 1, 1], [], []>} : vector<8x32xf32>, vector<32x32xf32>, vector<8x32xf32> -> vector<8x32xf32>
    %400 = vector.broadcast %398 : vector<1x32xf32> to vector<8x32xf32>
    %401 = arith.addf %399, %400 : vector<8x32xf32>
    %402 = arith.addf %401, %367 : vector<8x32xf32>
    %c31 = arith.constant 31 : index
    %c0_143 = arith.constant 0 : index
    %403 = vector.load %arg7[%c31, %c0_143] : memref<48x128xf32, #tpu.memory_space<vmem>>, vector<1x32xf32>
    %c32_144 = arith.constant 32 : index
    %c0_145 = arith.constant 0 : index
    %404 = vector.load %arg7[%c32_144, %c0_145] : memref<48x128xf32, #tpu.memory_space<vmem>>, vector<1x32xf32>
    %cst_146 = arith.constant dense<0.000000e+00> : vector<8xf32>
    %405 = vector.multi_reduction <add>, %402, %cst_146 [1] : vector<8x32xf32> to vector<8xf32>
    %406 = vector.shape_cast %405 : vector<8xf32> to vector<8x1xf32>
    %cst_147 = arith.constant 3.200000e+01 : f32
    %407 = vector.broadcast %cst_147 : f32 to vector<8x1xf32>
    %408 = arith.divf %406, %407 : vector<8x1xf32>
    %409 = vector.broadcast %408 : vector<8x1xf32> to vector<8x32xf32>
    %410 = arith.subf %402, %409 : vector<8x32xf32>
    %411 = arith.mulf %410, %410 : vector<8x32xf32>
    %cst_148 = arith.constant dense<0.000000e+00> : vector<8xf32>
    %412 = vector.multi_reduction <add>, %411, %cst_148 [1] : vector<8x32xf32> to vector<8xf32>
    %413 = vector.shape_cast %412 : vector<8xf32> to vector<8x1xf32>
    %cst_149 = arith.constant 3.200000e+01 : f32
    %414 = vector.broadcast %cst_149 : f32 to vector<8x1xf32>
    %415 = arith.divf %413, %414 : vector<8x1xf32>
    %416 = vector.broadcast %408 : vector<8x1xf32> to vector<8x32xf32>
    %417 = arith.subf %402, %416 : vector<8x32xf32>
    %cst_150 = arith.constant 9.99999996E-13 : f32
    %418 = vector.broadcast %cst_150 : f32 to vector<8x1xf32>
    %419 = arith.addf %415, %418 : vector<8x1xf32>
    %420 = math.rsqrt %419 : vector<8x1xf32>
    %421 = vector.broadcast %420 : vector<8x1xf32> to vector<8x32xf32>
    %422 = arith.mulf %417, %421 : vector<8x32xf32>
    %423 = vector.broadcast %403 : vector<1x32xf32> to vector<8x32xf32>
    %424 = arith.mulf %422, %423 : vector<8x32xf32>
    %425 = vector.broadcast %404 : vector<1x32xf32> to vector<8x32xf32>
    %426 = arith.addf %424, %425 : vector<8x32xf32>
    %c0_151 = arith.constant 0 : index
    %c832 = arith.constant 832 : index
    %427 = vector.load %arg5[%c0_151, %c832] : memref<32x1152xf32, #tpu.memory_space<vmem>>, vector<32x32xf32>
    %c33 = arith.constant 33 : index
    %c0_152 = arith.constant 0 : index
    %428 = vector.load %arg7[%c33, %c0_152] : memref<48x128xf32, #tpu.memory_space<vmem>>, vector<1x32xf32>
    %cst_153 = arith.constant dense<0.000000e+00> : vector<8x32xf32>
    %429 = tpu.matmul %426, %427, %cst_153 {dimension_numbers = #tpu.dot_dimension_numbers<[1], [0], [0], [1], [0, 0, 1, 1], [], []>} : vector<8x32xf32>, vector<32x32xf32>, vector<8x32xf32> -> vector<8x32xf32>
    %430 = vector.broadcast %428 : vector<1x32xf32> to vector<8x32xf32>
    %431 = arith.addf %429, %430 : vector<8x32xf32>
    %c0_154 = arith.constant 0 : index
    %c864 = arith.constant 864 : index
    %432 = vector.load %arg5[%c0_154, %c864] : memref<32x1152xf32, #tpu.memory_space<vmem>>, vector<32x64xf32>
    %c34 = arith.constant 34 : index
    %c0_155 = arith.constant 0 : index
    %433 = vector.load %arg7[%c34, %c0_155] : memref<48x128xf32, #tpu.memory_space<vmem>>, vector<1x64xf32>
    %cst_156 = arith.constant dense<0.000000e+00> : vector<8x64xf32>
    %434 = tpu.matmul %206, %432, %cst_156 {dimension_numbers = #tpu.dot_dimension_numbers<[1], [0], [0], [1], [0, 0, 1, 1], [], []>} : vector<8x32xf32>, vector<32x64xf32>, vector<8x64xf32> -> vector<8x64xf32>
    %435 = vector.broadcast %433 : vector<1x64xf32> to vector<8x64xf32>
    %436 = arith.addf %434, %435 : vector<8x64xf32>
    %437 = vector.extract_strided_slice %436 {offsets = [0, 0], sizes = [8, 32], strides = [1, 1]} : vector<8x64xf32> to vector<8x32xf32>
    %438 = vector.extract_strided_slice %436 {offsets = [0, 32], sizes = [8, 32], strides = [1, 1]} : vector<8x64xf32> to vector<8x32xf32>
    %439 = vector.shape_cast %431 : vector<8x32xf32> to vector<8x4x8xf32>
    %440 = vector.shape_cast %437 : vector<8x32xf32> to vector<8x4x8xf32>
    %441 = vector.shape_cast %438 : vector<8x32xf32> to vector<8x4x8xf32>
    "tpu.trace_start"() <{level = 10 : i32, message = "qhd,khd->hqk"}> : () -> ()
    %cst_157 = arith.constant dense<0.000000e+00> : vector<4x8x8xf32>
    %442 = tpu.matmul %439, %440, %cst_157 {dimension_numbers = #tpu.dot_dimension_numbers<[2], [2], [0], [0], [0, 1, 0, 0, 1, 0], [1], [1]>} : vector<8x4x8xf32>, vector<8x4x8xf32>, vector<4x8x8xf32> -> vector<4x8x8xf32>
    %cst_158 = arith.constant -1.000000e+04 : f32
    "tpu.trace_stop"() : () -> ()
    %443 = vector.shape_cast %3 : vector<1x8xi1> to vector<1x1x8xi1>
    %444 = vector.broadcast %443 : vector<1x1x8xi1> to vector<4x8x8xi1>
    %445 = vector.broadcast %cst_158 : f32 to vector<4x8x8xf32>
    %446 = arith.select %444, %442, %445 : vector<4x8x8xi1>, vector<4x8x8xf32>
    %cst_159 = arith.constant dense<0xFF800000> : vector<4x8xf32>
    %447 = vector.multi_reduction <maximumf>, %446, %cst_159 [2] : vector<4x8x8xf32> to vector<4x8xf32>
    %448 = vector.shape_cast %447 : vector<4x8xf32> to vector<4x8x1xf32>
    %449 = vector.broadcast %448 : vector<4x8x1xf32> to vector<4x8x8xf32>
    %450 = arith.subf %446, %449 : vector<4x8x8xf32>
    %451 = math.exp %450 : vector<4x8x8xf32>
    %cst_160 = arith.constant dense<0.000000e+00> : vector<4x8xf32>
    %452 = vector.multi_reduction <add>, %451, %cst_160 [2] : vector<4x8x8xf32> to vector<4x8xf32>
    %453 = vector.shape_cast %452 : vector<4x8xf32> to vector<4x8x1xf32>
    %454 = tpu.reciprocal %453 {approx = true} : vector<4x8x1xf32> -> vector<4x8x1xf32>
    %455 = vector.broadcast %454 : vector<4x8x1xf32> to vector<4x8x8xf32>
    %456 = arith.mulf %451, %455 : vector<4x8x8xf32>
    "tpu.trace_start"() <{level = 10 : i32, message = "hqk,khd->qhd"}> : () -> ()
    %cst_161 = arith.constant dense<0.000000e+00> : vector<4x8x8xf32>
    %457 = tpu.matmul %441, %456, %cst_161 {dimension_numbers = #tpu.dot_dimension_numbers<[0], [2], [2], [1], [0, 1, 0, 2, 1, 1], [1], [0]>} : vector<8x4x8xf32>, vector<4x8x8xf32>, vector<4x8x8xf32> -> vector<4x8x8xf32>
    %458 = tpu.transpose %457, [2, 0, 1] : vector<4x8x8xf32> -> vector<8x4x8xf32>
    "tpu.trace_stop"() : () -> ()
    %459 = vector.shape_cast %458 : vector<8x4x8xf32> to vector<8x32xf32>
    %c0_162 = arith.constant 0 : index
    %c928 = arith.constant 928 : index
    %460 = vector.load %arg5[%c0_162, %c928] : memref<32x1152xf32, #tpu.memory_space<vmem>>, vector<32x32xf32>
    %c35 = arith.constant 35 : index
    %c0_163 = arith.constant 0 : index
    %461 = vector.load %arg7[%c35, %c0_163] : memref<48x128xf32, #tpu.memory_space<vmem>>, vector<1x32xf32>
    %cst_164 = arith.constant dense<0.000000e+00> : vector<8x32xf32>
    %462 = tpu.matmul %459, %460, %cst_164 {dimension_numbers = #tpu.dot_dimension_numbers<[1], [0], [0], [1], [0, 0, 1, 1], [], []>} : vector<8x32xf32>, vector<32x32xf32>, vector<8x32xf32> -> vector<8x32xf32>
    %463 = vector.broadcast %461 : vector<1x32xf32> to vector<8x32xf32>
    %464 = arith.addf %462, %463 : vector<8x32xf32>
    %465 = arith.addf %464, %426 : vector<8x32xf32>
    %c36 = arith.constant 36 : index
    %c0_165 = arith.constant 0 : index
    %466 = vector.load %arg7[%c36, %c0_165] : memref<48x128xf32, #tpu.memory_space<vmem>>, vector<1x32xf32>
    %c37 = arith.constant 37 : index
    %c0_166 = arith.constant 0 : index
    %467 = vector.load %arg7[%c37, %c0_166] : memref<48x128xf32, #tpu.memory_space<vmem>>, vector<1x32xf32>
    %cst_167 = arith.constant dense<0.000000e+00> : vector<8xf32>
    %468 = vector.multi_reduction <add>, %465, %cst_167 [1] : vector<8x32xf32> to vector<8xf32>
    %469 = vector.shape_cast %468 : vector<8xf32> to vector<8x1xf32>
    %cst_168 = arith.constant 3.200000e+01 : f32
    %470 = vector.broadcast %cst_168 : f32 to vector<8x1xf32>
    %471 = arith.divf %469, %470 : vector<8x1xf32>
    %472 = vector.broadcast %471 : vector<8x1xf32> to vector<8x32xf32>
    %473 = arith.subf %465, %472 : vector<8x32xf32>
    %474 = arith.mulf %473, %473 : vector<8x32xf32>
    %cst_169 = arith.constant dense<0.000000e+00> : vector<8xf32>
    %475 = vector.multi_reduction <add>, %474, %cst_169 [1] : vector<8x32xf32> to vector<8xf32>
    %476 = vector.shape_cast %475 : vector<8xf32> to vector<8x1xf32>
    %cst_170 = arith.constant 3.200000e+01 : f32
    %477 = vector.broadcast %cst_170 : f32 to vector<8x1xf32>
    %478 = arith.divf %476, %477 : vector<8x1xf32>
    %479 = vector.broadcast %471 : vector<8x1xf32> to vector<8x32xf32>
    %480 = arith.subf %465, %479 : vector<8x32xf32>
    %cst_171 = arith.constant 9.99999996E-13 : f32
    %481 = vector.broadcast %cst_171 : f32 to vector<8x1xf32>
    %482 = arith.addf %478, %481 : vector<8x1xf32>
    %483 = math.rsqrt %482 : vector<8x1xf32>
    %484 = vector.broadcast %483 : vector<8x1xf32> to vector<8x32xf32>
    %485 = arith.mulf %480, %484 : vector<8x32xf32>
    %486 = vector.broadcast %466 : vector<1x32xf32> to vector<8x32xf32>
    %487 = arith.mulf %485, %486 : vector<8x32xf32>
    %488 = vector.broadcast %467 : vector<1x32xf32> to vector<8x32xf32>
    %489 = arith.addf %487, %488 : vector<8x32xf32>
    %c0_172 = arith.constant 0 : index
    %c960 = arith.constant 960 : index
    %490 = vector.load %arg5[%c0_172, %c960] : memref<32x1152xf32, #tpu.memory_space<vmem>>, vector<32x64xf32>
    %c38 = arith.constant 38 : index
    %c0_173 = arith.constant 0 : index
    %491 = vector.load %arg7[%c38, %c0_173] : memref<48x128xf32, #tpu.memory_space<vmem>>, vector<1x64xf32>
    %cst_174 = arith.constant dense<0.000000e+00> : vector<8x64xf32>
    %492 = tpu.matmul %489, %490, %cst_174 {dimension_numbers = #tpu.dot_dimension_numbers<[1], [0], [0], [1], [0, 0, 1, 1], [], []>} : vector<8x32xf32>, vector<32x64xf32>, vector<8x64xf32> -> vector<8x64xf32>
    %493 = vector.broadcast %491 : vector<1x64xf32> to vector<8x64xf32>
    %494 = arith.addf %492, %493 : vector<8x64xf32>
    %cst_175 = arith.constant 0.000000e+00 : f32
    %495 = vector.broadcast %cst_175 : f32 to vector<8x64xf32>
    %496 = arith.maximumf %494, %495 : vector<8x64xf32>
    %c0_176 = arith.constant 0 : index
    %c96_177 = arith.constant 96 : index
    %497 = vector.load %arg6[%c0_176, %c96_177] : memref<64x128xf32, #tpu.memory_space<vmem>>, vector<64x32xf32>
    %c39 = arith.constant 39 : index
    %c0_178 = arith.constant 0 : index
    %498 = vector.load %arg7[%c39, %c0_178] : memref<48x128xf32, #tpu.memory_space<vmem>>, vector<1x32xf32>
    %cst_179 = arith.constant dense<0.000000e+00> : vector<8x32xf32>
    %499 = tpu.matmul %496, %497, %cst_179 {dimension_numbers = #tpu.dot_dimension_numbers<[1], [0], [0], [1], [0, 0, 1, 1], [], []>} : vector<8x64xf32>, vector<64x32xf32>, vector<8x32xf32> -> vector<8x32xf32>
    %500 = vector.broadcast %498 : vector<1x32xf32> to vector<8x32xf32>
    %501 = arith.addf %499, %500 : vector<8x32xf32>
    %502 = arith.addf %501, %489 : vector<8x32xf32>
    %c40 = arith.constant 40 : index
    %c0_180 = arith.constant 0 : index
    %503 = vector.load %arg7[%c40, %c0_180] : memref<48x128xf32, #tpu.memory_space<vmem>>, vector<1x32xf32>
    %c41 = arith.constant 41 : index
    %c0_181 = arith.constant 0 : index
    %504 = vector.load %arg7[%c41, %c0_181] : memref<48x128xf32, #tpu.memory_space<vmem>>, vector<1x32xf32>
    %cst_182 = arith.constant dense<0.000000e+00> : vector<8xf32>
    %505 = vector.multi_reduction <add>, %502, %cst_182 [1] : vector<8x32xf32> to vector<8xf32>
    %506 = vector.shape_cast %505 : vector<8xf32> to vector<8x1xf32>
    %cst_183 = arith.constant 3.200000e+01 : f32
    %507 = vector.broadcast %cst_183 : f32 to vector<8x1xf32>
    %508 = arith.divf %506, %507 : vector<8x1xf32>
    %509 = vector.broadcast %508 : vector<8x1xf32> to vector<8x32xf32>
    %510 = arith.subf %502, %509 : vector<8x32xf32>
    %511 = arith.mulf %510, %510 : vector<8x32xf32>
    %cst_184 = arith.constant dense<0.000000e+00> : vector<8xf32>
    %512 = vector.multi_reduction <add>, %511, %cst_184 [1] : vector<8x32xf32> to vector<8xf32>
    %513 = vector.shape_cast %512 : vector<8xf32> to vector<8x1xf32>
    %cst_185 = arith.constant 3.200000e+01 : f32
    %514 = vector.broadcast %cst_185 : f32 to vector<8x1xf32>
    %515 = arith.divf %513, %514 : vector<8x1xf32>
    %516 = vector.broadcast %508 : vector<8x1xf32> to vector<8x32xf32>
    %517 = arith.subf %502, %516 : vector<8x32xf32>
    %cst_186 = arith.constant 9.99999996E-13 : f32
    %518 = vector.broadcast %cst_186 : f32 to vector<8x1xf32>
    %519 = arith.addf %515, %518 : vector<8x1xf32>
    %520 = math.rsqrt %519 : vector<8x1xf32>
    %521 = vector.broadcast %520 : vector<8x1xf32> to vector<8x32xf32>
    %522 = arith.mulf %517, %521 : vector<8x32xf32>
    %523 = vector.broadcast %503 : vector<1x32xf32> to vector<8x32xf32>
    %524 = arith.mulf %522, %523 : vector<8x32xf32>
    %525 = vector.broadcast %504 : vector<1x32xf32> to vector<8x32xf32>
    %526 = arith.addf %524, %525 : vector<8x32xf32>
    %c0_187 = arith.constant 0 : index
    %c1024 = arith.constant 1024 : index
    %527 = vector.load %arg5[%c0_187, %c1024] : memref<32x1152xf32, #tpu.memory_space<vmem>>, vector<32x128xf32>
    %c42 = arith.constant 42 : index
    %c0_188 = arith.constant 0 : index
    %528 = vector.load %arg7[%c42, %c0_188] : memref<48x128xf32, #tpu.memory_space<vmem>>, vector<1x128xf32>
    %cst_189 = arith.constant dense<0.000000e+00> : vector<8x128xf32>
    %529 = tpu.matmul %526, %527, %cst_189 {dimension_numbers = #tpu.dot_dimension_numbers<[1], [0], [0], [1], [0, 0, 1, 1], [], []>} : vector<8x32xf32>, vector<32x128xf32>, vector<8x128xf32> -> vector<8x128xf32>
    %530 = vector.broadcast %528 : vector<1x128xf32> to vector<8x128xf32>
    %531 = arith.addf %529, %530 : vector<8x128xf32>
    %532 = vector.shape_cast %531 : vector<8x128xf32> to vector<1x8x128xf32>
    %c0_190 = arith.constant 0 : index
    %c0_191 = arith.constant 0 : index
    %c0_192 = arith.constant 0 : index
    %533 = vector.load %arg8[%c0_190, %c0_191, %c0_192] : memref<1x8x128xf32, #tpu.memory_space<vmem>>, vector<1x8x128xf32>
    tpu.vector_store %arg8[%c0_190, %c0_191, %c0_192], %532 {strides = array<i32>} : memref<1x8x128xf32, #tpu.memory_space<vmem>>, vector<1x8x128xf32>,
    return
  }
  func.func @transform_0(%arg0: i32) -> (i32, i32, i32) {
    %c0_i32 = arith.constant 0 : i32
    %c0_i32_0 = arith.constant 0 : i32
    %c0_i32_1 = arith.constant 0 : i32
    return %arg0, %c0_i32, %c0_i32_0 : i32, i32, i32
  }
  func.func @transform_1(%arg0: i32) -> (i32, i32, i32) {
    %c0_i32 = arith.constant 0 : i32
    %c0_i32_0 = arith.constant 0 : i32
    %c0_i32_1 = arith.constant 0 : i32
    return %arg0, %c0_i32, %c0_i32_0 : i32, i32, i32
  }
  func.func @transform_2(%arg0: i32) -> (i32, i32, i32) {
    %c0_i32 = arith.constant 0 : i32
    %c0_i32_0 = arith.constant 0 : i32
    %c0_i32_1 = arith.constant 0 : i32
    return %arg0, %c0_i32, %c0_i32_0 : i32, i32, i32
  }
  func.func @transform_3(%arg0: i32) -> (i32, i32, i32) {
    %c0_i32 = arith.constant 0 : i32
    %c0_i32_0 = arith.constant 0 : i32
    %c0_i32_1 = arith.constant 0 : i32
    return %arg0, %c0_i32, %c0_i32_0 : i32, i32, i32
  }
  func.func @transform_4(%arg0: i32) -> (i32, i32) {
    %c0_i32 = arith.constant 0 : i32
    %c0_i32_0 = arith.constant 0 : i32
    %c0_i32_1 = arith.constant 0 : i32
    return %c0_i32, %c0_i32_0 : i32, i32
  }
  func.func @transform_5(%arg0: i32) -> (i32, i32) {
    %c0_i32 = arith.constant 0 : i32
    %c0_i32_0 = arith.constant 0 : i32
    %c0_i32_1 = arith.constant 0 : i32
    return %c0_i32, %c0_i32_0 : i32, i32
  }
  func.func @transform_6(%arg0: i32) -> (i32, i32) {
    %c0_i32 = arith.constant 0 : i32
    %c0_i32_0 = arith.constant 0 : i32
    %c0_i32_1 = arith.constant 0 : i32
    return %c0_i32, %c0_i32_0 : i32, i32
  }
  func.func @transform_7(%arg0: i32) -> (i32, i32, i32) {
    %c0_i32 = arith.constant 0 : i32
    %c0_i32_0 = arith.constant 0 : i32
    %c0_i32_1 = arith.constant 0 : i32
    return %arg0, %c0_i32, %c0_i32_0 : i32, i32, i32
  }
}

</mosaic_0001>

<bundles_post_ra>
// kernel: transformer_forward.1
= control target key start
LH: loop header
LB: loop body
LE: loop exit
PB: predicated region body
PF: predicated region fallthrough
CT: control target
= control target key end

     0   :  { %s13183_s0 = inlined_call_operand.vmem [shape: f32[2,8,32], index: 0, kind: input, shape index: {}]   ;;  %s13184_s1 = inlined_call_operand.vmem [shape: f32[2,8,32], index: 1, kind: input, shape index: {}]   ;;  %s13185_s2 = inlined_call_operand.vmem [shape: f32[2,1,8], index: 2, kind: input, shape index: {}]   ;;  %s13186_s3 = inlined_call_operand.vmem [shape: f32[2,1,8], index: 3, kind: input, shape index: {}]   ;;  %s13187_s4 = inlined_call_operand.vmem [shape: f32[32,1152], index: 4, kind: input, shape index: {}]   ;;  %s13188_s5 = inlined_call_operand.vmem [shape: f32[64,128], index: 5, kind: input, shape index: {}]   ;;  %s13189_s6 = inlined_call_operand.vmem [shape: f32[48,128], index: 6, kind: input, shape index: {}]   ;;  %s13190_s7 = inlined_call_operand.hbm [shape: f32[2,8,128], index: 7, kind: output, shape index: {}]  }
   0x1   :  { %13210 = sst [smem:[#allocation6_spill]] %s13183_s0 }
   0x2   :  { %13211 = sst [smem:[#allocation7_spill]] %s13184_s1 }
   0x3   :  { %13212 = sst [smem:[#allocation8_spill]] %s13185_s2 }
   0x4   :  { %13213 = sst [smem:[#allocation9_spill]] %s13186_s3 }
   0x5   :  { %12 = vsyncpa [#allocation3], 0 }
   0x6   :  { %14 = vsyncpa [#allocation3 + $0x1], 0  ;;  %s11771_s24 = smov 0   ;;  %s11773_s25 = smov 0  }
   0x7   :  { %s11775_s26 = smov 0   ;;  %s11777_s27 = smov 0  }
   0x8 LB: > { %s11792_s28 = sadd.s32 4294967295, %s11713_s27   ;;  %s10186_s29 = sadd.s32 4294967294, %s11713_s27   ;;  %s11713_s27 = sphi %s11777_s27, %s13237_s27   ;;  %s11709_s26 = sphi %s11775_s26, %s13236_s26   ;;  %s11705_s25 = sphi %s11773_s25, %s13235_s25   ;;  %s11701_s24 = sphi %s11771_s24, %s13234_s24  }
   0x9   : > { %s11796_s30 = sadd.s32 1, %s11713_s27   ;;  %s194_s8 = sadd.s32 1, %s11709_s26 }
   0xa   : > { %s191_s9 = ssub.s32 %s11713_s27, %s11796_s30  ;;  %p204_p0 = scmp.ne.s32.totalorder %s11709_s26, %s11705_s25 }
   0xb   : > { %p192_p1 = scmp.eq.s32.totalorder %s191_s9, 0  ;;  %p205_p2 = scmp.eq.s32.totalorder %s11792_s28, 1 }
   0xc   : > { %p210_p3 = scmp.ne.s32.totalorder %s11705_s25, %s11701_s24  ;;  %p211_p4 = scmp.eq.s32.totalorder %s10186_s29, 1 }
   0xd   : > { %s11807_s10 = scalar_select %p192_p1, %s11709_s26, %s194_s8  }
   0xe   : > { %p11809_p5 = por %p205_p2, %p204_p0  ;;  %p11813_p6 = por %p211_p4, %p210_p3 }
   0xf   : > { %13214 = sst [smem:[#allocation5_spill]] %s11807_s10  ;;  %p10189_p7 = scmp.ge.s32.totalorder %s11713_s27, 1 }
  0x10   : > { %p264_p8 = scmp.lt.s32.totalorder %s11713_s27, 3 }
  0x12   : > { %p265_p9 = pnand %p10189_p7, %p264_p8 }
  0x13   : > { %v11822_v0 = vld [vmem:[%s13187_s4] sm:$0xff] (!%p265_p9)  ;;  %v11827_v1 = vld [vmem:[%s13187_s4 + $0x48] sm:$0xff] (!%p265_p9)  ;;  %v11832_v2 = vld [vmem:[%s13187_s4 + $0x90] sm:$0xff] (!%p265_p9)  ;;  %v11715_v3 = vmov (!%p265_p9), 0.0|0.0   ;;  %vm11716_vm0 = vmmov (!%p265_p9), 0   ;;  %v11717_v6 = vmov (!%p265_p9), 0.0   ;;  %v323_v7 = vlaneseq (!%p265_p9) }
  0x14   : > { %268 = sbr.rel (%p265_p9) target bundleno = 15019 (0x3aab), region = 48  ;;  %11099 = vmatprep.subr.bf16.mxu0 (!%p265_p9), %v11715_v3  ;;  %v11100_v4 = vpack.c.bf16 (!%p265_p9), %v11827_v1, %v11822_v0  ;;  %v11840_v5 = vld [vmem:[%s13187_s4 + $0xd8] sm:$0xff] (!%p265_p9)  ;;  %10582 = vmatprep.mubr.msk.f32.mxu0 (!%p265_p9), %vm11716_vm0, %v11717_v6  ;;  %p305_p10 = scmp.lt.s32.totalorder (!%p265_p9), %s11792_s28, 1  ;;  %vm345_vm1 = vcmask (!%p265_p9), 261120   ;;  %v11718_v13 = vmov (!%p265_p9), 0   ;;  %vm566_vm3 = vcmask (!%p265_p9), 64512  }
  0x15   : > { %10590 = vmatprep.subr.mxu1 (!%p265_p9), %v11717_v6  ;;  %10592 = vmatprep.mubr.msk.f32.mxu1 (!%p265_p9), %vm11716_vm0, %v11717_v6  ;;  %v11103_v8 = vpack.c.bf16 (!%p265_p9), %v11840_v5, %v11832_v2  ;;  %v11856_v9 = vshrl.u32 (!%p265_p9), %v323_v7, 7  ;;  %s13217_s0 = sld [smem:[#allocation6_spill]] (!%p265_p9)  ;;  %s13218_s3 = sld [smem:[#allocation9_spill]] (!%p265_p9)  ;;  %v10193_v16 = vld [vmem:[%s13189_s6] ss:$0 sm:$0xff] (!%p265_p9)  ;;  %vm1630_vm6 = vcmask (!%p265_p9), 130048  }
  0x16   : > { %11101 = vmatpush3.bf16.msra.mxu0 (!%p265_p9), %v11100_v4  ;;  %s13202_s17 = smov (!%p265_p9), 104   ;;  %s13208_s18 = smov (!%p265_p9), 120   ;;  %vm1632_vm7 = vcmask (!%p265_p9), 195584   ;;  %vm1855_vm8 = vcmask (!%p265_p9), 523264  }
  0x17   : > { %11102 = vmatprep.subr.bf16.mxu0 (!%p265_p9), %v11715_v3  ;;  %v331_v12 = vsub.s32 (!%p265_p9), 0, %v11856_v9  ;;  %s13204_s19 = smov (!%p265_p9), 96   ;;  %s13206_s20 = smov (!%p265_p9), 112  }
  0x18   : > { %s13219_s2 = sld [smem:[#allocation8_spill]] (!%p265_p9)  ;;  %s13200_s9 = smov (!%p265_p9), 64  }
  0x19   : > { %s13191_s13 = smov (!%p265_p9), 32   ;;  %s13196_s15 = smov (!%p265_p9), 16  }
  0x1a   : > { %11104 = vmatpush3.bf16.msra.mxu0 (!%p265_p9), %v11103_v8  ;;  %s13194_s16 = smov (!%p265_p9), 24   ;;  %s13224_s1 = sld [smem:[#allocation7_spill]] (!%p265_p9) }
  0x1b   : > { %s11851_s21 = scalar_select %p305_p10, %s11792_s28, 1  ;;  %10585 = vmatprep.subr.mxu0 %v11717_v6 }
  0x1d   : > { %s13193_s22 = sshll.u32 %s11851_s21, 3  ;;  %s318_s14 = scalar_lea.vmem %s13218_s3, %s11851_s21 }
  0x1e   : > { %s308_s8 = scalar_lea.vmem %s13217_s0, %s13193_s22  ;;  %v321_v11 = vld [vmem:[%s318_s14] sm:$0x1]  ;;  %s13198_s14 = smov 8  }
  0x1f   : > { %v11867_v10 = vld [vmem:[%s308_s8] sm:$0xff]  ;;  %vm322_vm2 = vcmp.gt.f32.partialorder %v321_v11, 0.5  ;;  %s315_s8 = scalar_lea.vmem %s13219_s2, %s11851_s21  ;;  %s13225_s22 = smov 96  }
  0x20   : > { %v328_v14 = vsel %vm322_vm2, 1, %v11718_v13  ;;  %10583 = vmatmul.mubr.msk.f32.vlgmr.msra.gmra.mrb[0].mxu0 %vm345_vm1, %v11867_v10  ;;  %v319_v31 = vld [vmem:[%s315_s8] sm:$0x1]  ;;  %s13232_s2 = smov 120  }
  0x21   : > { %v11873_v15 = vrot.slane %v328_v14, %v331_v12  ;;  %10587 = vmatprep.mubr.msk.f32.mxu0 %vm11716_vm0, %v11717_v6  ;;  %vm320_vm4 = vcmp.gt.f32.partialorder %v319_v31, 0.5 }
  0x22   : > { %v855_v32 = vsel %vm320_vm4, 1, %v11718_v13 }
  0x23   : > { %v11914_v33 = vrot.slane %v855_v32, %v331_v12  ;;  %vm333_vm9 = vcmp.eq.s32.totalorder %v11873_v15, 1 }
  0x25   : > { %vm860_vm5 = vcmp.eq.s32.totalorder %v11914_v33, 1 }
  0xf3   : > { %v415_v17 = vpop.f32.mrb[0].mxu0 }
  0xf4   : > { %v11880_v18 = vadd.f32 %v10193_v16, %v415_v17  ;;  %v10584_v19 = vpop.f32.mrb[1].mxu0 }
  0xf6   : > { %424 = vrot.lane.b32.xlu1 %v11880_v18, %s13202_s17  ;;  %420 = vrot.lane.b32.xlu0 %v11880_v18, %s13208_s18 }
  0xfa   : > { %426 = vrot.lane.b32.xlu1 %v11880_v18, %s13204_s19  ;;  %422 = vrot.lane.b32.xlu0 %v11880_v18, %s13206_s20 }
 0x168   : > { %v421_v20 = vpop.permute.xlu0 %420  ;;  %v425_v21 = vpop.permute.xlu1 %424 }
 0x169   : > { %428 = vrot.lane.b32.xlu0 %v421_v20, %s13204_s19 }
 0x16c   : > { %v423_v22 = vpop.permute.xlu0 %422  ;;  %v427_v23 = vpop.permute.xlu1 %426 }
 0x16d   : > { %432 = vrot.lane.b32.xlu0 %v425_v21, %s13204_s19  ;;  %430 = vrot.lane.b32.xlu1 %v423_v22, %s13204_s19 }
 0x196   : > { %438 = vxpose.xlu1.b32.start.end [1/1] (short) (narrow) %v427_v23, 8 }
 0x1db   : > { %v429_v24 = vpop.permute.xlu0 %428 }
 0x1dc   : > { %470 = vxpose.xlu0.b32.start.end [1/1] (short) (narrow) %v429_v24, 8 }
 0x1df   : > { %v431_v25 = vpop.permute.xlu1 %430  ;;  %v433_v26 = vpop.permute.xlu0 %432 }
 0x1e0   : > { %502 = vxpose.xlu0.b32.start.end [1/1] (short) (narrow) %v431_v25, 8 }
 0x1e4   : > { %534 = vxpose.xlu0.b32.start.end [1/1] (short) (narrow) %v433_v26, 8 }
 0x216   : > { %v454_v27 = vpop.trf.xlu1 }
 0x217   : > { %10586 = vmatpush3.msra.mxu0 %v454_v27 }
 0x218   : > { %10588 = vmatmul.mubr.msk.f32.vlgmr.msra.gmra.mrb[2].mxu0 %vm566_vm3, %v11880_v18  ;;  %10600 = vmatprep.subr.mxu0 %v11717_v6 }
 0x219   : > { %10602 = vmatprep.mubr.msk.f32.mxu0 %vm11716_vm0, %v11717_v6 }
 0x25c   : > { %v486_v28 = vpop.trf.xlu0 }
 0x25d   : > { %10591 = vmatpush3.msra.mxu1 %v486_v28 }
 0x25e   : > { %10593 = vmatmul.mubr.msk.f32.vlgmr.msra.gmra.mrb[0].mxu1 %vm566_vm3, %v421_v20  ;;  %10595 = vmatprep.subr.mxu1 %v11717_v6 }
 0x25f   : > { %10597 = vmatprep.mubr.msk.f32.mxu1 %vm11716_vm0, %v11717_v6 }
 0x260   : > { %v518_v29 = vpop.trf.xlu0 }
 0x261   : > { %10596 = vmatpush3.msra.mxu1 %v518_v29 }
 0x262   : > { %10598 = vmatmul.mubr.msk.f32.vlgmr.msra.gmra.mrb[2].mxu1 %vm566_vm3, %v423_v22  ;;  %10605 = vmatprep.subr.mxu1 %v11717_v6 }
 0x263   : > { %10607 = vmatprep.mubr.msk.f32.mxu1 %vm11716_vm0, %v11717_v6 }
 0x264   : > { %v550_v30 = vpop.trf.xlu0 }
 0x265   : > { %10601 = vmatpush3.msra.mxu0 %v550_v30 }
 0x266   : > { %10603 = vmatmul.mubr.msk.f32.vlgmr.msra.gmra.mrb[4].mxu0 %vm566_vm3, %v425_v21  ;;  %10610 = vmatprep.subr.mxu0 %v11717_v6 }
 0x267   : > { %10612 = vmatprep.mubr.msk.f32.mxu0 %vm11716_vm0, %v11717_v6 }
 0x2eb   : > { %v635_v34 = vpop.f32.mrb[2].mxu0 }
 0x2ec   : > { %v861_v35 = vsel %vm860_vm5, %v635_v34, -10000.0  ;;  %v10589_v36 = vpop.f32.mrb[3].mxu0 }
 0x2ed   : > { %v865_v37 = vsel %vm566_vm3, %v861_v35, -inf }
 0x2ee   : > { %866 = vmax.xlane.f32.xlu1 %v865_v37 }
 0x331   : > { %v707_v38 = vpop.f32.mrb[0].mxu1 }
 0x332   : > { %v862_v39 = vsel %vm860_vm5, %v707_v38, -10000.0  ;;  %v10594_v40 = vpop.f32.mrb[1].mxu1 }
 0x333   : > { %v868_v41 = vsel %vm566_vm3, %v862_v39, -inf }
 0x334   : > { %869 = vmax.xlane.f32.xlu0 %v868_v41 }
 0x335   : > { %v779_v42 = vpop.f32.mrb[2].mxu1 }
 0x336   : > { %v863_v43 = vsel %vm860_vm5, %v779_v42, -10000.0  ;;  %v10599_v44 = vpop.f32.mrb[3].mxu1 }
 0x337   : > { %v871_v45 = vsel %vm566_vm3, %v863_v43, -inf }
 0x338   : > { %872 = vmax.xlane.f32.xlu1 %v871_v45  ;;  %v11315_v45 = vpack.i.bf16 %v11827_v1, %v11822_v0 }
 0x339   : > { %v851_v46 = vpop.f32.mrb[4].mxu0 }
 0x33a   : > { %v864_v47 = vsel %vm860_vm5, %v851_v46, -10000.0  ;;  %v10604_v48 = vpop.f32.mrb[5].mxu0  ;;  %v11320_v46 = vpack.i.bf16 %v11840_v5, %v11832_v2 }
 0x33b   : > { %v874_v49 = vsel %vm566_vm3, %v864_v47, -inf  ;;  %v11725_v48 = vmov 1983009808  }
 0x33c   : > { %875 = vmax.xlane.f32.xlu1 %v874_v49  ;;  %v1484_v49 = vunpack.c.l.s4 %v11725_v48 }
 0x34a   : > { %909 = vrot.lane.b32.xlu0 %v11880_v18, %s13200_s9 }
 0x34d   : > { %911 = vrot.lane.b32.xlu1 %v421_v20, %s13200_s9 }
 0x34e   : > { %915 = vrot.lane.b32.xlu0 %v425_v21, %s13200_s9 }
 0x351   : > { %913 = vrot.lane.b32.xlu1 %v423_v22, %s13200_s9 }
 0x37b   : > { %v867_v50 = vpop.xlane.xlu1 %866 }
 0x37c   : > { %v877_v51 = vsub.f32 %v861_v35, %v867_v50  ;;  %v11726_v50 = vmov 1934713408  }
 0x37e   : > { %v881_v52 = vmul.f32 1.442695, %v877_v51  ;;  %v1516_v51 = vunpack.c.l.s4 %v11726_v50 }
 0x380   : > { %11535 = vpow2.f32 %v881_v52  ;;  %v1485_v52 = vunpack.c.0.s8 %v1484_v49 }
 0x38a   : > { %v11536_v53 = vpop.eup %11535 }
 0x38b   : > { %v889_v54 = vsel %vm566_vm3, %v11536_v53, 0.0 }
 0x38c   : > { %890 = vadd.xlane.f32.xlu1 %v889_v54 }
 0x3c1   : > { %v870_v55 = vpop.xlane.xlu0 %869 }
 0x3c2   : > { %v878_v56 = vsub.f32 %v862_v39, %v870_v55  ;;  %v1517_v55 = vunpack.c.0.s8 %v1516_v51 }
 0x3c4   : > { %v883_v57 = vmul.f32 1.442695, %v878_v56  ;;  %v11965_v56 = vsub.s32 %v1485_v52, %v11856_v9  ;;  %v11968_v2 = vsub.s32 %v1517_v55, %v11856_v9  ;;  %v10209_v52 = vld [vmem:[%s13189_s6 + $0x1] ss:$0 sm:$0xff] }
 0x3c5   : > { %v873_v58 = vpop.xlane.xlu1 %872  ;;  %v910_v17 = vpop.permute.xlu0 %909 }
 0x3c6   : > { %11537 = vpow2.f32 %v883_v57  ;;  %v879_v59 = vsub.f32 %v863_v43, %v873_v58 }
 0x3c8   : > { %v885_v60 = vmul.f32 1.442695, %v879_v59 }
 0x3c9   : > { %v876_v61 = vpop.xlane.xlu1 %875  ;;  %v916_v19 = vpop.permute.xlu0 %915 }
 0x3ca   : > { %11539 = vpow2.f32 %v885_v60  ;;  %v880_v62 = vsub.f32 %v864_v47, %v876_v61 }
 0x3cc   : > { %v887_v63 = vmul.f32 1.442695, %v880_v62 }
 0x3cd   : > { %v912_v16 = vpop.permute.xlu1 %911 }
 0x3ce   : > { %11541 = vpow2.f32 %v887_v63 }
 0x3d0   : > { %v11538_v4 = vpop.eup %11537 }
 0x3d1   : > { %v892_v8 = vsel %vm566_vm3, %v11538_v4, 0.0  ;;  %v914_v18 = vpop.permute.xlu1 %913 }
 0x3d2   : > { %893 = vadd.xlane.f32.xlu0 %v892_v8 }
 0x3d4   : > { %v11540_v11 = vpop.eup %11539 }
 0x3d5   : > { %v895_v12 = vsel %vm566_vm3, %v11540_v11, 0.0 }
 0x3d6   : > { %896 = vadd.xlane.f32.xlu0 %v895_v12 }
 0x3d8   : > { %v11542_v13 = vpop.eup %11541 }
 0x3d9   : > { %v898_v14 = vsel %vm566_vm3, %v11542_v13, 0.0 }
 0x3da   : > { %899 = vadd.xlane.f32.xlu1 %v898_v14 }
 0x403   : > { %921 = vxpose.xlu0.b32.start.end [1/1] (short) (narrow) %v910_v17, 8 }
 0x407   : > { %985 = vxpose.xlu0.b32.start.end [1/1] (short) (narrow) %v914_v18, 8 }
 0x40b   : > { %1017 = vxpose.xlu0.b32.start.end [1/1] (short) (narrow) %v916_v19, 8 }
 0x40d   : > { %953 = vxpose.xlu1.b32.start.end [1/1] (short) (narrow) %v912_v16, 8 }
 0x419   : > { %v891_v20 = vpop.xlane.xlu1 %890 }
 0x41a   : > { %11543 = vrcp.f32 %v891_v20 }
 0x424   : > { %v11544_v21 = vpop.eup %11543 }
 0x425   : > { %v905_v22 = vmul.f32 %v11544_v21, %v11536_v53 }
 0x427   : > { %10606 = vmatpush3.xpose.msk.msra.mxu1 %vm566_vm3, %v905_v22 }
 0x428   : > { %10615 = vmatprep.subr.mxu1 %v11717_v6 }
 0x45f   : > { %v894_v23 = vpop.xlane.xlu0 %893 }
 0x460   : > { %11545 = vrcp.f32 %v894_v23 }
 0x463   : > { %v897_v26 = vpop.xlane.xlu0 %896 }
 0x464   : > { %11547 = vrcp.f32 %v897_v26 }
 0x467   : > { %v900_v27 = vpop.xlane.xlu1 %899 }
 0x468   : > { %11549 = vrcp.f32 %v900_v27 }
 0x46a   : > { %v11546_v24 = vpop.eup %11545 }
 0x46b   : > { %v906_v25 = vmul.f32 %v11546_v24, %v11538_v4 }
 0x46d   : > { %10611 = vmatpush3.xpose.msk.msra.mxu0 %vm566_vm3, %v906_v25 }
 0x46e   : > { %10620 = vmatprep.subr.mxu0 %v11717_v6  ;;  %v11548_v28 = vpop.eup %11547 }
 0x46f   : > { %v907_v30 = vmul.f32 %v11548_v28, %v11540_v11 }
 0x472   : > { %v11550_v32 = vpop.eup %11549 }
 0x473   : > { %v908_v35 = vmul.f32 %v11550_v32, %v11542_v13 }
 0x483   : > { %v937_v29 = vpop.trf.xlu0 }
 0x484   : > { %10608 = vmatmul.mubr.msk.f32.vlgmr.msra.gmra.mrb[4].mxu1 %vm566_vm3, %v937_v29 }
 0x485   : > { %10616 = vmatpush3.xpose.msk.msra.mxu1 %vm566_vm3, %v907_v30  ;;  %10617 = vmatprep.mubr.msk.f32.mxu1 %vm11716_vm0, %v11717_v6 }
 0x486   : > { %11105 = vmatprep.subr.bf16.mxu1 %v11715_v3 }
 0x487   : > { %v1001_v31 = vpop.trf.xlu0 }
 0x488   : > { %10618 = vmatmul.mubr.msk.f32.vlgmr.msra.gmra.mrb[6].mxu1 %vm566_vm3, %v1001_v31 }
 0x489   : > { %10633 = vmatprep.mubr.msk.f32.mxu1 %vm11716_vm0, %v11717_v6 }
 0x48b   : > { %v1033_v36 = vpop.trf.xlu0 }
 0x48d   : > { %v969_v34 = vpop.trf.xlu1 }
 0x48e   : > { %10613 = vmatmul.mubr.msk.f32.vlgmr.msra.gmra.mrb[6].mxu0 %vm566_vm3, %v969_v34 }
 0x48f   : > { %10621 = vmatpush3.xpose.msk.msra.mxu0 %vm566_vm3, %v908_v35  ;;  %10622 = vmatprep.mubr.msk.f32.mxu0 %vm11716_vm0, %v11717_v6 }
 0x490   : > { %11111 = vmatprep.subr.bf16.mxu0 %v11715_v3 }
 0x492   : > { %10623 = vmatmul.mubr.msk.f32.vlgmr.msra.gmra.mrb[8].mxu0 %vm566_vm3, %v1033_v36 }
 0x493   : > { %10644 = vmatprep.mubr.msk.f32.mxu0 %vm11716_vm0, %v11717_v6 }
 0x557   : > { %v1121_v37 = vpop.f32.mrb[4].mxu1 }
 0x558   : > { %v10609_v38 = vpop.f32.mrb[5].mxu1  ;;  %1353 = vxpose.xlu1.b32.start.end [1/1] (short) (narrow) %v1121_v37, 8 }
 0x55b   : > { %v1273_v39 = vpop.f32.mrb[6].mxu1 }
 0x55c   : > { %v10619_v40 = vpop.f32.mrb[7].mxu1  ;;  %1417 = vxpose.xlu1.b32.start.end [1/1] (short) (narrow) %v1273_v39, 8 }
 0x561   : > { %v1197_v41 = vpop.f32.mrb[6].mxu0 }
 0x562   : > { %1385 = vxpose.xlu0.b32.start.end [1/1] (short) (narrow) %v1197_v41, 8  ;;  %v10614_v42 = vpop.f32.mrb[7].mxu0 }
 0x565   : > { %v1349_v43 = vpop.f32.mrb[8].mxu0 }
 0x566   : > { %1449 = vxpose.xlu0.b32.start.end [1/1] (short) (narrow) %v1349_v43, 8  ;;  %v10624_v44 = vpop.f32.mrb[9].mxu0 }
 0x57a   : > { %11316 = vrot.lane.b32.xlu1 %v11315_v45, %s13191_s13 }
 0x58f   : > { %11321 = vrot.lane.b32.xlu0 %v11320_v46, %s13191_s13  ;;  %s13222_s13 = smov 24  }
 0x5d8   : > { %v1369_v47 = vpop.trf.xlu1 }
 0x5dc   : > { %v1433_v53 = vpop.trf.xlu1 }
 0x5dd   : > { %v1481_v0 = vcombine.low %v1369_v47, %v1433_v53  ;;  %v1482_v1 = vcombine.high %v1369_v47, %v1433_v53 }
 0x5df   : > { %v1489_v5 = vrot.slane %v1481_v0, %v11965_v56  ;;  %v1496_v60 = vrot.slane %v1482_v1, %v11965_v56 }
 0x5e2   : > { %v1401_v54 = vpop.trf.xlu0 }
 0x5e6   : > { %v1465_v57 = vpop.trf.xlu0 }
 0x5e7   : > { %v1497_v58 = vcombine.low %v1401_v54, %v1465_v57  ;;  %v1498_v59 = vcombine.high %v1401_v54, %v1465_v57 }
 0x5e9   : > { %v1505_v61 = vrot.slane %v1497_v58, %v11965_v56  ;;  %v1512_v62 = vrot.slane %v1498_v59, %v11965_v56 }
 0x5eb   : > { %v1513_v63 = vcombine.low %v1489_v5, %v1505_v61  ;;  %v1514_v4 = vcombine.high %v1489_v5, %v1505_v61  ;;  %v1529_v8 = vcombine.low %v1496_v60, %v1512_v62  ;;  %v1530_v11 = vcombine.high %v1496_v60, %v1512_v62  ;;  %v1759_v61 = vld [vmem:[%s13187_s4 + $0x8] sm:$0xff]  ;;  %v12009_v62 = vld [vmem:[%s13187_s4 + $0x50] sm:$0xff] }
 0x5ec   : > { %v11317_v12 = vpop.permute.xlu1 %11316 }
 0x5ed   : > { %v1521_v13 = vrot.slane %v1513_v63, %v11968_v2  ;;  %v1528_v14 = vrot.slane %v1514_v4, %v11968_v2  ;;  %v1537_v16 = vrot.slane %v1529_v8, %v11968_v2  ;;  %v1544_v17 = vrot.slane %v1530_v11, %v11968_v2  ;;  %v1761_v63 = vld [vmem:[%s13187_s4 + $0x98] sm:$0xff]  ;;  %v1762_v4 = vld [vmem:[%s13187_s4 + $0xe0] sm:$0xff] }
 0x5ee   : > { %v11319_v18 = vunpack.i.h.bf16 %v11317_v12  ;;  %v11318_v19 = vunpack.i.l.bf16 %v11317_v12  ;;  %v11115_v8 = vpack.c.bf16 %v1762_v4, %v1761_v63  ;;  %v12023_v11 = vld [vmem:[%s13188_s5] sm:$0xff]  ;;  %v12028_v12 = vld [vmem:[%s13188_s5 + $0x8] sm:$0xff] }
 0x5ef   : > { %v1549_v20 = vcombine.low %v1521_v13, %v1528_v14  ;;  %v10207_v21 = vcombine.high %v1521_v13, %v1528_v14  ;;  %v1565_v22 = vcombine.low %v1537_v16, %v1544_v17  ;;  %v10208_v23 = vcombine.high %v1537_v16, %v1544_v17  ;;  %v12033_v13 = vld [vmem:[%s13188_s5 + $0x10] sm:$0xff]  ;;  %v12040_v16 = vld [vmem:[%s13188_s5 + $0x18] sm:$0xff] }
 0x5f0   : > { %v11106_v24 = vpack.c.bf16 %v11319_v18, %v11318_v19  ;;  %v11118_v14 = vpack.c.bf16 %v12028_v12, %v12023_v11  ;;  %v11121_v17 = vpack.c.bf16 %v12040_v16, %v12033_v13  ;;  %v12048_v18 = vld [vmem:[%s13188_s5 + $0x20] sm:$0xff]  ;;  %v12053_v19 = vld [vmem:[%s13188_s5 + $0x28] sm:$0xff] }
 0x5f1   : > { %v1556_v25 = vrot.slane %v1549_v20, %v11965_v56  ;;  %v1564_v26 = vrot.slane %v10207_v21, %v11965_v56  ;;  %v1572_v27 = vrot.slane %v1565_v22, %v11965_v56  ;;  %v1580_v28 = vrot.slane %v10208_v23, %v11965_v56 }
 0x5f2   : > { %11107 = vmatpush3.bf16.msra.mxu1 %v11106_v24  ;;  %v11124_v20 = vpack.c.bf16 %v12053_v19, %v12048_v18 }
 0x5f3   : > { %v1581_v29 = vcombine.low %v1556_v25, %v1564_v26  ;;  %v1597_v30 = vcombine.low %v1572_v27, %v1580_v28  ;;  %v1582_v31 = vcombine.high %v1556_v25, %v1564_v26  ;;  %v1598_v32 = vcombine.high %v1572_v27, %v1580_v28  ;;  %11108 = vmatprep.subr.bf16.mxu1 %v11715_v3  ;;  %v10211_v25 = vld [vmem:[%s13189_s6 + $0x2] ss:$0 sm:$0xff]  ;;  %v10212_v27 = vld [vmem:[%s13189_s6 + $0x3] ss:$0 sm:$0xff] }
 0x5f5   : > { %v1589_v34 = vrot.slane %v1581_v29, %v11968_v2  ;;  %v1605_v35 = vrot.slane %v1597_v30, %v11968_v2  ;;  %v1596_v37 = vrot.slane %v1582_v31, %v11968_v2  ;;  %v1612_v38 = vrot.slane %v1598_v32, %v11968_v2  ;;  %v12071_v30 = vld [vmem:[%s13188_s5 + $0x30] sm:$0xff]  ;;  %v12076_v31 = vld [vmem:[%s13188_s5 + $0x38] sm:$0xff] }
 0x5f6   : > { %v11127_v32 = vpack.c.bf16 %v12076_v31, %v12071_v30 }
 0x5f7   : > { %v1614_v36 = vcombine.high %v1589_v34, %v1605_v35  ;;  %v1613_v39 = vcombine.low %v1589_v34, %v1605_v35  ;;  %v1615_v40 = vcombine.low %v1596_v37, %v1612_v38  ;;  %v1616_v41 = vcombine.high %v1596_v37, %v1612_v38  ;;  %v10213_v34 = vld [vmem:[%s13189_s6 + $0x4] ss:$0 sm:$0xff] }
 0x5f9   : > { %1618 = vrot.lane.b32.xlu1 %v1614_v36, %s13198_s14  ;;  %s13220_s14 = smov 8  }
 0x5fd   : > { %1622 = vrot.lane.b32.xlu1 %v1615_v40, %s13196_s15  ;;  %s13221_s15 = smov 16  }
 0x601   : > { %1626 = vrot.lane.b32.xlu1 %v1616_v41, %s13194_s16  ;;  %v11322_v42 = vpop.permute.xlu0 %11321  ;;  %s13226_s16 = smov 104  }
 0x602   : > { %v11324_v43 = vunpack.i.h.bf16 %v11322_v42  ;;  %v11323_v44 = vunpack.i.l.bf16 %v11322_v42 }
 0x604   : > { %v11109_v45 = vpack.c.bf16 %v11324_v43, %v11323_v44 }
 0x606   : > { %11110 = vmatpush3.bf16.msra.mxu1 %v11109_v45  ;;  %v12094_v45 = vld [vmem:[%s13187_s4 + $0x10] sm:$0xff] }
 0x607   : > { %11117 = vmatprep.subr.bf16.mxu1 %v11715_v3 }
 0x66b   : > { %v1619_v46 = vpop.permute.xlu1 %1618 }
 0x66c   : > { %v1629_v48 = vsel %vm566_vm3, %v1613_v39, %v1619_v46  ;;  %v10215_v39 = vld [vmem:[%s13189_s6 + $0x5] ss:$0 sm:$0xff] }
 0x66d   : > { %v12099_v46 = vld [vmem:[%s13187_s4 + $0xa0] sm:$0xff] }
 0x66f   : > { %v1623_v47 = vpop.permute.xlu1 %1622 }
 0x670   : > { %v1631_v49 = vsel %vm1630_vm6, %v1629_v48, %v1623_v47  ;;  %v11325_v47 = vpack.i.bf16 %v12094_v45, %v1759_v61  ;;  %v11335_v48 = vpack.i.bf16 %v12099_v46, %v1761_v63 }
 0x673   : > { %v1627_v50 = vpop.permute.xlu1 %1626 }
 0x674   : > { %v1633_v51 = vsel %vm1632_vm7, %v1631_v49, %v1627_v50  ;;  %v12108_v49 = vld [vmem:[%s13187_s4 + $0xe8] sm:$0xff] }
 0x675   : > { %10634 = vmatmul.mubr.msk.f32.vlgmr.msra.gmra.mrb[8].mxu1 %vm345_vm1, %v1633_v51  ;;  %v11340_v50 = vpack.i.bf16 %v12108_v49, %v1762_v4 }
 0x676   : > { %10663 = vmatprep.mubr.msk.f32.mxu1 %vm11716_vm0, %v11717_v6  ;;  %11119 = vmatpush3.bf16.msra.mxu1 %v11118_v14 }
 0x677   : > { %11120 = vmatprep.subr.bf16.mxu1 %v11715_v3 }
 0x67a   : > { %11122 = vmatpush3.bf16.msra.mxu1 %v11121_v17 }
 0x67b   : > { %11123 = vmatprep.subr.bf16.mxu1 %v11715_v3 }
 0x67e   : > { %11125 = vmatpush3.bf16.msra.mxu1 %v11124_v20 }
 0x67f   : > { %11126 = vmatprep.subr.bf16.mxu1 %v11715_v3 }
 0x682   : > { %11128 = vmatpush3.bf16.msra.mxu1 %v11127_v32 }
 0x683   : > { %10687 = vmatprep.subr.mxu1 %v11717_v6 }
 0x748   : > { %v1728_v53 = vpop.f32.mrb[8].mxu1 }
 0x749   : > { %v1729_v54 = vadd.f32 %v10209_v52, %v1728_v53  ;;  %v10635_v55 = vpop.f32.mrb[9].mxu1 }
 0x74b   : > { %v1732_v0 = vadd.f32 %v1729_v54, %v11867_v10  ;;  %v11112_v10 = vpack.c.bf16 %v12009_v62, %v1759_v61 }
 0x74d   : > { %v1735_v1 = vsel %vm345_vm1, %v1732_v0, 0.0  ;;  %11113 = vmatpush3.bf16.msra.mxu0 %v11112_v10 }
 0x74e   : > { %1736 = vadd.xlane.f32.xlu0 %v1735_v1  ;;  %11114 = vmatprep.subr.bf16.mxu0 %v11715_v3 }
 0x751   : > { %11116 = vmatpush3.bf16.msra.mxu0 %v11115_v8 }
 0x752   : > { %11129 = vmatprep.subr.bf16.mxu0 %v11715_v3 }
 0x7db   : > { %v1737_v57 = vpop.xlane.xlu0 %1736 }
 0x7dc   : > { %v1739_v58 = vmul.f32 0.03125, %v1737_v57 }
 0x7de   : > { %v1740_v59 = vsub.f32 %v1732_v0, %v1739_v58  ;;  %v12116_v0 = vld [vmem:[%s13187_s4 + $0x58] sm:$0xff] }
 0x7df   : > { %v11330_v1 = vpack.i.bf16 %v12116_v0, %v12009_v62 }
 0x7e0   : > { %v1741_v5 = vmul.f32 %v1740_v59, %v1740_v59 }
 0x7e2   : > { %v1742_v60 = vsel %vm345_vm1, %v1741_v5, 0.0 }
 0x7e3   : > { %1743 = vadd.xlane.f32.xlu1 %v1742_v60 }
 0x7f4   : > { %11326 = vrot.lane.b32.xlu1 %v11325_v47, %s13200_s9 }
 0x7f8   : > { %11336 = vrot.lane.b32.xlu1 %v11335_v48, %s13200_s9 }
 0x7fc   : > { %11341 = vrot.lane.b32.xlu1 %v11340_v50, %s13200_s9 }
 0x870   : > { %v1744_v21 = vpop.xlane.xlu1 %1743 }
 0x871   : > { %v1745_v22 = vmul.f32 0.03125, %v1744_v21 }
 0x873   : > { %v1746_v23 = vadd.f32 1e-12, %v1745_v22 }
 0x874   : > { %v11327_v57 = vpop.permute.xlu1 %11326 }
 0x875   : > { %11551 = vrsqrt.f32 %v1746_v23  ;;  %v11329_v61 = vunpack.i.h.bf16 %v11327_v57  ;;  %v11328_v10 = vunpack.i.l.bf16 %v11327_v57 }
 0x877   : > { %v1992_v21 = vsel %vm1855_vm8, %v11328_v10, %v11329_v61 }
 0x878   : > { %v11337_v58 = vpop.permute.xlu1 %11336 }
 0x879   : > { %v11339_v63 = vunpack.i.h.bf16 %v11337_v58  ;;  %v11338_v8 = vunpack.i.l.bf16 %v11337_v58 }
 0x87b   : > { %v1994_v23 = vsel %vm1855_vm8, %v11338_v8, %v11339_v63 }
 0x87c   : > { %v11342_v5 = vpop.permute.xlu1 %11341 }
 0x87d   : > { %v11344_v14 = vunpack.i.h.bf16 %v11342_v5  ;;  %v11343_v17 = vunpack.i.l.bf16 %v11342_v5 }
 0x87f   : > { %v11552_v24 = vpop.eup %11551 }
 0x880   : > { %v1748_v26 = vmul.f32 %v11552_v24, %v1740_v59 }
 0x882   : > { %v1753_v28 = vmul.f32 %v10211_v25, %v1748_v26  ;;  %v1995_v25 = vsel %vm1855_vm8, %v11343_v17, %v11344_v14 }
 0x884   : > { %v1758_v29 = vadd.f32 %v10212_v27, %v1753_v28  ;;  %v11133_v27 = vpack.c.bf16 %v1995_v25, %v1994_v23 }
 0x886   : > { %10645 = vmatmul.mubr.msk.f32.vlgmr.msra.gmra.mrb[10].mxu0 %vm345_vm1, %v1758_v29 }
 0x887   : > { %10674 = vmatprep.mubr.msk.f32.mxu0 %vm11716_vm0, %v11717_v6 }
 0x959   : > { %v1837_v35 = vpop.f32.mrb[10].mxu0 }
 0x95a   : > { %v1838_v36 = vadd.f32 %v10213_v34, %v1837_v35  ;;  %v10646_v37 = vpop.f32.mrb[11].mxu0  ;;  %v10218_v34 = vld [vmem:[%s13189_s6 + $0x7] ss:$0 sm:$0xff] }
 0x95b   : > { %v10219_v37 = vld [vmem:[%s13189_s6 + $0x8] ss:$0 sm:$0xff] }
 0x95c   : > { %v1841_v38 = vmax.f32 %v1838_v36, 0.0 }
 0x95e   : > { %10664 = vmatmul.mubr.msk.f32.vlgmr.msra.gmra.mrb[10].mxu1 %vm1855_vm8, %v1841_v38 }
 0x95f   : > { %10689 = vmatprep.mubr.msk.f32.mxu1 %vm11716_vm0, %v11717_v6 }
 0xa31   : > { %v1925_v40 = vpop.f32.mrb[10].mxu1 }
 0xa32   : > { %v1926_v41 = vadd.f32 %v10215_v39, %v1925_v40  ;;  %v10665_v42 = vpop.f32.mrb[11].mxu1 }
 0xa34   : > { %v1929_v43 = vadd.f32 %v1926_v41, %v1758_v29  ;;  %v10217_v29 = vld [vmem:[%s13189_s6 + $0x6] ss:$0 sm:$0xff] }
 0xa36   : > { %v1932_v44 = vsel %vm345_vm1, %v1929_v43, 0.0 }
 0xa37   : > { %1933 = vadd.xlane.f32.xlu0 %v1932_v44 }
 0xac4   : > { %v1934_v51 = vpop.xlane.xlu0 %1933 }
 0xac5   : > { %v1935_v52 = vmul.f32 0.03125, %v1934_v51 }
 0xac7   : > { %v1936_v53 = vsub.f32 %v1929_v43, %v1935_v52 }
 0xac9   : > { %v1937_v54 = vmul.f32 %v1936_v53, %v1936_v53 }
 0xacb   : > { %v1938_v55 = vsel %vm345_vm1, %v1937_v54, 0.0 }
 0xacc   : > { %1939 = vadd.xlane.f32.xlu0 %v1938_v55 }
 0xae2   : > { %11331 = vrot.lane.b32.xlu0 %v11330_v1, %s13200_s9 }
 0xb59   : > { %v1940_v59 = vpop.xlane.xlu0 %1939 }
 0xb5a   : > { %v1941_v60 = vmul.f32 0.03125, %v1940_v59 }
 0xb5c   : > { %v1942_v4 = vadd.f32 1e-12, %v1941_v60 }
 0xb5d   : > { %v11332_v20 = vpop.permute.xlu0 %11331 }
 0xb5e   : > { %11553 = vrsqrt.f32 %v1942_v4  ;;  %v11334_v22 = vunpack.i.h.bf16 %v11332_v20  ;;  %v11333_v62 = vunpack.i.l.bf16 %v11332_v20 }
 0xb60   : > { %v1993_v24 = vsel %vm1855_vm8, %v11333_v62, %v11334_v22 }
 0xb61   : > { %v11130_v26 = vpack.c.bf16 %v1993_v24, %v1992_v21 }
 0xb63   : > { %11131 = vmatpush3.bf16.msra.mxu0 %v11130_v26 }
 0xb64   : > { %11132 = vmatprep.subr.bf16.mxu0 %v11715_v3 }
 0xb67   : > { %11134 = vmatpush3.bf16.msra.mxu0 %v11133_v27 }
 0xb68   : > { %v11554_v28 = vpop.eup %11553  ;;  %10677 = vmatprep.subr.mxu0 %v11717_v6 }
 0xb69   : > { %v1944_v32 = vmul.f32 %v11554_v28, %v1936_v53 }
 0xb6b   : > { %v1949_v35 = vmul.f32 %v10217_v29, %v1944_v32 }
 0xb6d   : > { %v12133_v36 = vadd.f32 %v10218_v34, %v1949_v35 }
 0xb6f   : > { %10675 = vmatmul.mubr.msk.f32.vlgmr.msra.gmra.mrb[12].mxu0 %vm345_vm1, %v12133_v36 }
 0xb70   : > { %10679 = vmatprep.mubr.msk.f32.mxu0 %vm11716_vm0, %v11717_v6 }
 0xc42   : > { %v2069_v38 = vpop.f32.mrb[12].mxu0 }
 0xc43   : > { %v2070_v39 = vadd.f32 %v10219_v37, %v2069_v38  ;;  %v10676_v40 = vpop.f32.mrb[13].mxu0 }
 0xc45   : > { %2076 = vrot.lane.b32.xlu1 %v2070_v39, %s13206_s20  ;;  %2074 = vrot.lane.b32.xlu0 %v2070_v39, %s13208_s18 }
 0xc49   : > { %2080 = vrot.lane.b32.xlu1 %v2070_v39, %s13204_s19  ;;  %2078 = vrot.lane.b32.xlu0 %v2070_v39, %s13202_s17  ;;  %s13223_s17 = sshll.u32 %s11851_s21, 3 }
 0xc4a   : > { %s312_s23 = scalar_lea.vmem %s13224_s1, %s13223_s17  ;;  %s13231_s17 = smov 112  }
 0xcb7   : > { %v2077_v41 = vpop.permute.xlu1 %2076  ;;  %v2075_v42 = vpop.permute.xlu0 %2074 }
 0xcb8   : > { %2084 = vrot.lane.b32.xlu1 %v2077_v41, %s13204_s19  ;;  %2082 = vrot.lane.b32.xlu0 %v2075_v42, %s13204_s19 }
 0xcbb   : > { %v2079_v43 = vpop.permute.xlu0 %2078  ;;  %v2081_v44 = vpop.permute.xlu1 %2080 }
 0xcbc   : > { %2086 = vrot.lane.b32.xlu0 %v2079_v43, %s13204_s19 }
 0xce1   : > { %2092 = vxpose.xlu1.b32.start.end [1/1] (short) (narrow) %v2081_v44, 8 }
 0xd2a   : > { %v2083_v47 = vpop.permute.xlu0 %2082  ;;  %v2085_v48 = vpop.permute.xlu1 %2084 }
 0xd2b   : > { %2124 = vxpose.xlu0.b32.start.end [1/1] (short) (narrow) %v2083_v47, 8 }
 0xd2e   : > { %v2087_v50 = vpop.permute.xlu0 %2086 }
 0xd2f   : > { %2156 = vxpose.xlu0.b32.start.end [1/1] (short) (narrow) %v2085_v48, 8 }
 0xd33   : > { %2188 = vxpose.xlu0.b32.start.end [1/1] (short) (narrow) %v2087_v50, 8 }
 0xd61   : > { %v2108_v51 = vpop.trf.xlu1 }
 0xd62   : > { %10678 = vmatpush3.msra.mxu0 %v2108_v51 }
 0xd63   : > { %10680 = vmatmul.mubr.msk.f32.vlgmr.msra.gmra.mrb[14].mxu0 %vm566_vm3, %v2070_v39  ;;  %10682 = vmatprep.subr.mxu0 %v11717_v6 }
 0xd64   : > { %10684 = vmatprep.mubr.msk.f32.mxu0 %vm11716_vm0, %v11717_v6 }
 0xdab   : > { %v2140_v52 = vpop.trf.xlu0 }
 0xdac   : > { %10683 = vmatpush3.msra.mxu0 %v2140_v52 }
 0xdad   : > { %10685 = vmatmul.mubr.msk.f32.vlgmr.msra.gmra.mrb[16].mxu0 %vm566_vm3, %v2075_v42  ;;  %10692 = vmatprep.subr.mxu0 %v11717_v6 }
 0xdae   : > { %10694 = vmatprep.mubr.msk.f32.mxu0 %vm11716_vm0, %v11717_v6 }
 0xdaf   : > { %v2172_v53 = vpop.trf.xlu0 }
 0xdb0   : > { %10688 = vmatpush3.msra.mxu1 %v2172_v53 }
 0xdb1   : > { %10690 = vmatmul.mubr.msk.f32.vlgmr.msra.gmra.mrb[12].mxu1 %vm566_vm3, %v2077_v41  ;;  %10697 = vmatprep.subr.mxu1 %v11717_v6 }
 0xdb2   : > { %10699 = vmatprep.mubr.msk.f32.mxu1 %vm11716_vm0, %v11717_v6 }
 0xdb3   : > { %v2204_v54 = vpop.trf.xlu0 }
 0xdb4   : > { %10693 = vmatpush3.msra.mxu0 %v2204_v54 }
 0xdb5   : > { %10695 = vmatmul.mubr.msk.f32.vlgmr.msra.gmra.mrb[18].mxu0 %vm566_vm3, %v2079_v43  ;;  %10702 = vmatprep.subr.mxu0 %v11717_v6 }
 0xdb6   : > { %10704 = vmatprep.mubr.msk.f32.mxu0 %vm11716_vm0, %v11717_v6 }
 0xe36   : > { %v2288_v55 = vpop.f32.mrb[14].mxu0 }
 0xe37   : > { %v2508_v1 = vsel %vm860_vm5, %v2288_v55, -10000.0  ;;  %v10681_v57 = vpop.f32.mrb[15].mxu0 }
 0xe38   : > { %v2512_v58 = vsel %vm566_vm3, %v2508_v1, -inf }
 0xe39   : > { %2513 = vmax.xlane.f32.xlu1 %v2512_v58 }
 0xe80   : > { %v2360_v59 = vpop.f32.mrb[16].mxu0 }
 0xe81   : > { %v2509_v5 = vsel %vm860_vm5, %v2360_v59, -10000.0  ;;  %v10686_v60 = vpop.f32.mrb[17].mxu0 }
 0xe82   : > { %v2515_v61 = vsel %vm566_vm3, %v2509_v5, -inf }
 0xe83   : > { %2516 = vmax.xlane.f32.xlu0 %v2515_v61 }
 0xe84   : > { %v2432_v10 = vpop.f32.mrb[12].mxu1 }
 0xe85   : > { %v2510_v63 = vsel %vm860_vm5, %v2432_v10, -10000.0  ;;  %v10691_v4 = vpop.f32.mrb[13].mxu1 }
 0xe86   : > { %v2518_v8 = vsel %vm566_vm3, %v2510_v63, -inf }
 0xe87   : > { %2519 = vmax.xlane.f32.xlu1 %v2518_v8 }
 0xe88   : > { %v2504_v14 = vpop.f32.mrb[18].mxu0 }
 0xe89   : > { %v2511_v17 = vsel %vm860_vm5, %v2504_v14, -10000.0  ;;  %v10696_v20 = vpop.f32.mrb[19].mxu0 }
 0xe8a   : > { %v2521_v21 = vsel %vm566_vm3, %v2511_v17, -inf }
 0xe8b   : > { %2522 = vmax.xlane.f32.xlu1 %v2521_v21 }
 0xe99   : > { %2556 = vrot.lane.b32.xlu0 %v2070_v39, %s13200_s9 }
 0xe9c   : > { %2558 = vrot.lane.b32.xlu1 %v2075_v42, %s13200_s9 }
 0xe9d   : > { %2562 = vrot.lane.b32.xlu0 %v2079_v43, %s13200_s9 }
 0xea0   : > { %2560 = vrot.lane.b32.xlu1 %v2077_v41, %s13200_s9 }
 0xec6   : > { %v2514_v22 = vpop.xlane.xlu1 %2513 }
 0xec7   : > { %v2524_v62 = vsub.f32 %v2508_v1, %v2514_v22 }
 0xec9   : > { %v2528_v23 = vmul.f32 1.442695, %v2524_v62 }
 0xecb   : > { %11555 = vpow2.f32 %v2528_v23 }
 0xed5   : > { %v11556_v24 = vpop.eup %11555 }
 0xed6   : > { %v2536_v25 = vsel %vm566_vm3, %v11556_v24, 0.0 }
 0xed7   : > { %2537 = vadd.xlane.f32.xlu1 %v2536_v25 }
 0xf10   : > { %v2517_v26 = vpop.xlane.xlu0 %2516 }
 0xf11   : > { %v2525_v27 = vsub.f32 %v2509_v5, %v2517_v26  ;;  %v12207_v26 = vpack.i.bf16 %v12116_v0, %v12094_v45 }
 0xf13   : > { %v2530_v28 = vmul.f32 1.442695, %v2525_v27  ;;  %v12213_v27 = vpack.i.bf16 %v12108_v49, %v12099_v46 }
 0xf14   : > { %v2520_v29 = vpop.xlane.xlu1 %2519  ;;  %v2557_v48 = vpop.permute.xlu0 %2556 }
 0xf15   : > { %11557 = vpow2.f32 %v2530_v28  ;;  %v2526_v32 = vsub.f32 %v2510_v63, %v2520_v29 }
 0xf17   : > { %v2532_v34 = vmul.f32 1.442695, %v2526_v32 }
 0xf18   : > { %v2523_v35 = vpop.xlane.xlu1 %2522  ;;  %v2563_v51 = vpop.permute.xlu0 %2562 }
 0xf19   : > { %11559 = vpow2.f32 %v2532_v34  ;;  %v2527_v37 = vsub.f32 %v2511_v17, %v2523_v35 }
 0xf1b   : > { %v2534_v38 = vmul.f32 1.442695, %v2527_v37 }
 0xf1c   : > { %v2559_v47 = vpop.permute.xlu1 %2558 }
 0xf1d   : > { %11561 = vpow2.f32 %v2534_v38 }
 0xf1f   : > { %v11558_v39 = vpop.eup %11557 }
 0xf20   : > { %v2539_v40 = vsel %vm566_vm3, %v11558_v39, 0.0  ;;  %v2561_v50 = vpop.permute.xlu1 %2560 }
 0xf21   : > { %2540 = vadd.xlane.f32.xlu0 %v2539_v40 }
 0xf23   : > { %v11560_v41 = vpop.eup %11559 }
 0xf24   : > { %v2542_v42 = vsel %vm566_vm3, %v11560_v41, 0.0 }
 0xf25   : > { %2543 = vadd.xlane.f32.xlu0 %v2542_v42 }
 0xf27   : > { %v11562_v43 = vpop.eup %11561 }
 0xf28   : > { %v2545_v44 = vsel %vm566_vm3, %v11562_v43, 0.0 }
 0xf29   : > { %2546 = vadd.xlane.f32.xlu1 %v2545_v44 }
 0xf52   : > { %2568 = vxpose.xlu0.b32.start.end [1/1] (short) (narrow) %v2557_v48, 8 }
 0xf56   : > { %2632 = vxpose.xlu0.b32.start.end [1/1] (short) (narrow) %v2561_v50, 8 }
 0xf5a   : > { %2664 = vxpose.xlu0.b32.start.end [1/1] (short) (narrow) %v2563_v51, 8 }
 0xf5c   : > { %2600 = vxpose.xlu1.b32.start.end [1/1] (short) (narrow) %v2559_v47, 8 }
 0xf64   : > { %v2538_v52 = vpop.xlane.xlu1 %2537 }
 0xf65   : > { %11563 = vrcp.f32 %v2538_v52 }
 0xf6f   : > { %v11564_v53 = vpop.eup %11563 }
 0xf70   : > { %v2552_v54 = vmul.f32 %v11564_v53, %v11556_v24 }
 0xf72   : > { %10698 = vmatpush3.xpose.msk.msra.mxu1 %vm566_vm3, %v2552_v54 }
 0xf73   : > { %10707 = vmatprep.subr.mxu1 %v11717_v6 }
 0xfae   : > { %v2541_v55 = vpop.xlane.xlu0 %2540 }
 0xfaf   : > { %11565 = vrcp.f32 %v2541_v55 }
 0xfb2   : > { %v2544_v58 = vpop.xlane.xlu0 %2543 }
 0xfb3   : > { %11567 = vrcp.f32 %v2544_v58 }
 0xfb6   : > { %v2547_v59 = vpop.xlane.xlu1 %2546 }
 0xfb7   : > { %11569 = vrcp.f32 %v2547_v59 }
 0xfb9   : > { %v11566_v1 = vpop.eup %11565 }
 0xfba   : > { %v2553_v57 = vmul.f32 %v11566_v1, %v11558_v39 }
 0xfbc   : > { %10703 = vmatpush3.xpose.msk.msra.mxu0 %vm566_vm3, %v2553_v57 }
 0xfbd   : > { %10712 = vmatprep.subr.mxu0 %v11717_v6  ;;  %v11568_v5 = vpop.eup %11567 }
 0xfbe   : > { %v2554_v61 = vmul.f32 %v11568_v5, %v11560_v41 }
 0xfc1   : > { %v11570_v63 = vpop.eup %11569 }
 0xfc2   : > { %v2555_v8 = vmul.f32 %v11570_v63, %v11562_v43 }
 0xfd2   : > { %v2584_v60 = vpop.trf.xlu0 }
 0xfd3   : > { %10700 = vmatmul.mubr.msk.f32.vlgmr.msra.gmra.mrb[14].mxu1 %vm566_vm3, %v2584_v60 }
 0xfd4   : > { %10708 = vmatpush3.xpose.msk.msra.mxu1 %vm566_vm3, %v2554_v61  ;;  %10709 = vmatprep.mubr.msk.f32.mxu1 %vm11716_vm0, %v11717_v6 }
 0xfd5   : > { %11135 = vmatprep.subr.bf16.mxu1 %v11715_v3 }
 0xfd6   : > { %v2648_v10 = vpop.trf.xlu0 }
 0xfd7   : > { %10710 = vmatmul.mubr.msk.f32.vlgmr.msra.gmra.mrb[16].mxu1 %vm566_vm3, %v2648_v10 }
 0xfd8   : > { %10725 = vmatprep.mubr.msk.f32.mxu1 %vm11716_vm0, %v11717_v6 }
 0xfda   : > { %v2680_v14 = vpop.trf.xlu0 }
 0xfdc   : > { %v2616_v4 = vpop.trf.xlu1 }
 0xfdd   : > { %10705 = vmatmul.mubr.msk.f32.vlgmr.msra.gmra.mrb[20].mxu0 %vm566_vm3, %v2616_v4 }
 0xfde   : > { %10713 = vmatpush3.xpose.msk.msra.mxu0 %vm566_vm3, %v2555_v8  ;;  %10714 = vmatprep.mubr.msk.f32.mxu0 %vm11716_vm0, %v11717_v6 }
 0xfdf   : > { %11141 = vmatprep.subr.bf16.mxu0 %v11715_v3 }
 0xfe1   : > { %10715 = vmatmul.mubr.msk.f32.vlgmr.msra.gmra.mrb[22].mxu0 %vm566_vm3, %v2680_v14 }
 0xfe2   : > { %10736 = vmatprep.mubr.msk.f32.mxu0 %vm11716_vm0, %v11717_v6 }
0x10a6   : > { %v2768_v17 = vpop.f32.mrb[14].mxu1 }
0x10a7   : > { %v10701_v20 = vpop.f32.mrb[15].mxu1  ;;  %3000 = vxpose.xlu1.b32.start.end [1/1] (short) (narrow) %v2768_v17, 8 }
0x10aa   : > { %v2920_v21 = vpop.f32.mrb[16].mxu1 }
0x10ab   : > { %v10711_v22 = vpop.f32.mrb[17].mxu1  ;;  %3064 = vxpose.xlu1.b32.start.end [1/1] (short) (narrow) %v2920_v21, 8 }
0x10b0   : > { %v2844_v62 = vpop.f32.mrb[20].mxu0 }
0x10b1   : > { %3032 = vxpose.xlu0.b32.start.end [1/1] (short) (narrow) %v2844_v62, 8  ;;  %v10706_v23 = vpop.f32.mrb[21].mxu0 }
0x10b4   : > { %v2996_v24 = vpop.f32.mrb[22].mxu0 }
0x10b5   : > { %3096 = vxpose.xlu0.b32.start.end [1/1] (short) (narrow) %v2996_v24, 8  ;;  %v10716_v25 = vpop.f32.mrb[23].mxu0 }
0x10c9   : > { %11346 = vrot.lane.b32.xlu1 %v12207_v26, %s13204_s19 }
0x10de   : > { %11351 = vrot.lane.b32.xlu0 %v12213_v27, %s13204_s19  ;;  %s13229_s19 = smov 64  }
0x1127   : > { %v3016_v28 = vpop.trf.xlu1 }
0x112b   : > { %v3080_v29 = vpop.trf.xlu1 }
0x112c   : > { %v3128_v34 = vcombine.low %v3016_v28, %v3080_v29  ;;  %v3129_v35 = vcombine.high %v3016_v28, %v3080_v29 }
0x112e   : > { %v3136_v45 = vrot.slane %v3128_v34, %v11965_v56  ;;  %v3143_v0 = vrot.slane %v3129_v35, %v11965_v56 }
0x1131   : > { %v3048_v32 = vpop.trf.xlu0 }
0x1135   : > { %v3112_v37 = vpop.trf.xlu0 }
0x1136   : > { %v3144_v38 = vcombine.low %v3048_v32, %v3112_v37  ;;  %v3145_v39 = vcombine.high %v3048_v32, %v3112_v37 }
0x1138   : > { %v3152_v40 = vrot.slane %v3144_v38, %v11965_v56  ;;  %v3159_v46 = vrot.slane %v3145_v39, %v11965_v56 }
0x113a   : > { %v3160_v49 = vcombine.low %v3136_v45, %v3152_v40  ;;  %v3161_v41 = vcombine.high %v3136_v45, %v3152_v40  ;;  %v3176_v42 = vcombine.low %v3143_v0, %v3159_v46  ;;  %v3177_v43 = vcombine.high %v3143_v0, %v3159_v46  ;;  %v10235_v0 = vld [vmem:[%s13189_s6 + $0x9] ss:$0 sm:$0xff] }
0x113b   : > { %v11347_v44 = vpop.permute.xlu1 %11346 }
0x113c   : > { %v3168_v47 = vrot.slane %v3160_v49, %v11968_v2  ;;  %v3175_v48 = vrot.slane %v3161_v41, %v11968_v2  ;;  %v3184_v50 = vrot.slane %v3176_v42, %v11968_v2  ;;  %v3191_v51 = vrot.slane %v3177_v43, %v11968_v2 }
0x113d   : > { %v11349_v52 = vunpack.i.h.bf16 %v11347_v44  ;;  %v11348_v53 = vunpack.i.l.bf16 %v11347_v44 }
0x113e   : > { %v3196_v54 = vcombine.low %v3168_v47, %v3175_v48  ;;  %v10233_v55 = vcombine.high %v3168_v47, %v3175_v48  ;;  %v3212_v1 = vcombine.low %v3184_v50, %v3191_v51  ;;  %v10234_v57 = vcombine.high %v3184_v50, %v3191_v51 }
0x113f   : > { %v11136_v58 = vpack.c.bf16 %v11349_v52, %v11348_v53 }
0x1140   : > { %v3203_v59 = vrot.slane %v3196_v54, %v11965_v56  ;;  %v3211_v5 = vrot.slane %v10233_v55, %v11965_v56  ;;  %v3219_v60 = vrot.slane %v3212_v1, %v11965_v56  ;;  %v3227_v61 = vrot.slane %v10234_v57, %v11965_v56 }
0x1141   : > { %11137 = vmatpush3.bf16.msra.mxu1 %v11136_v58 }
0x1142   : > { %v3228_v10 = vcombine.low %v3203_v59, %v3211_v5  ;;  %v3244_v63 = vcombine.low %v3219_v60, %v3227_v61  ;;  %v3229_v4 = vcombine.high %v3203_v59, %v3211_v5  ;;  %v3245_v8 = vcombine.high %v3219_v60, %v3227_v61  ;;  %11138 = vmatprep.subr.bf16.mxu1 %v11715_v3  ;;  %v10237_v5 = vld [vmem:[%s13189_s6 + $0xa] ss:$0 sm:$0xff]  ;;  %v12262_v61 = vld [vmem:[%s13187_s4 + $0x18] sm:$0xff] }
0x1144   : > { %v3236_v14 = vrot.slane %v3228_v10, %v11968_v2  ;;  %v3252_v17 = vrot.slane %v3244_v63, %v11968_v2  ;;  %v3243_v21 = vrot.slane %v3229_v4, %v11968_v2  ;;  %v3259_v22 = vrot.slane %v3245_v8, %v11968_v2  ;;  %v12267_v10 = vld [vmem:[%s13187_s4 + $0x60] sm:$0xff]  ;;  %v10238_v63 = vld [vmem:[%s13189_s6 + $0xb] ss:$0 sm:$0xff] }
0x1145   : > { %v11160_v8 = vpack.c.bf16 %v12267_v10, %v12262_v61 }
0x1146   : > { %v3261_v20 = vcombine.high %v3236_v14, %v3252_v17  ;;  %v3260_v62 = vcombine.low %v3236_v14, %v3252_v17  ;;  %v3262_v23 = vcombine.low %v3243_v21, %v3259_v22  ;;  %v3263_v24 = vcombine.high %v3243_v21, %v3259_v22  ;;  %v12279_v17 = vld [vmem:[%s13187_s4 + $0xa8] sm:$0xff]  ;;  %v12298_v22 = vld [vmem:[%s312_s23] sm:$0xff] }
0x1148   : > { %3265 = vrot.lane.b32.xlu1 %v3261_v20, %s13220_s14  ;;  %v12284_v20 = vld [vmem:[%s13187_s4 + $0xf0] sm:$0xff] }
0x1149   : > { %v11163_v21 = vpack.c.bf16 %v12284_v20, %v12279_v17 }
0x114c   : > { %3269 = vrot.lane.b32.xlu1 %v3262_v23, %s13221_s15 }
0x1150   : > { %3273 = vrot.lane.b32.xlu1 %v3263_v24, %s13222_s13  ;;  %v11352_v25 = vpop.permute.xlu0 %11351  ;;  %v10245_v24 = vld [vmem:[%s13189_s6 + $0x10] ss:$0 sm:$0xff] }
0x1151   : > { %v11354_v28 = vunpack.i.h.bf16 %v11352_v25  ;;  %v11353_v29 = vunpack.i.l.bf16 %v11352_v25 }
0x1153   : > { %v11139_v32 = vpack.c.bf16 %v11354_v28, %v11353_v29 }
0x1155   : > { %11140 = vmatpush3.bf16.msra.mxu1 %v11139_v32 }
0x1156   : > { %11147 = vmatprep.subr.bf16.mxu1 %v11715_v3 }
0x11ba   : > { %v3266_v34 = vpop.permute.xlu1 %3265 }
0x11bb   : > { %v3276_v37 = vsel %vm566_vm3, %v3260_v62, %v3266_v34 }
0x11be   : > { %v3270_v35 = vpop.permute.xlu1 %3269 }
0x11bf   : > { %v3277_v38 = vsel %vm1630_vm6, %v3276_v37, %v3270_v35  ;;  %v11365_v35 = vpack.i.bf16 %v12028_v12, %v12023_v11  ;;  %v11380_v11 = vpack.i.bf16 %v12076_v31, %v12071_v30 }
0x11c2   : > { %v3274_v39 = vpop.permute.xlu1 %3273 }
0x11c3   : > { %v3278_v45 = vsel %vm1632_vm7, %v3277_v38, %v3274_v39  ;;  %v11375_v38 = vpack.i.bf16 %v12053_v19, %v12048_v18  ;;  %v11370_v39 = vpack.i.bf16 %v12040_v16, %v12033_v13 }
0x11c4   : > { %10726 = vmatmul.mubr.msk.f32.vlgmr.msra.gmra.mrb[18].mxu1 %vm345_vm1, %v3278_v45 }
0x11c5   : > { %10755 = vmatprep.mubr.msk.f32.mxu1 %vm11716_vm0, %v11717_v6 }
0x1297   : > { %v3373_v40 = vpop.f32.mrb[18].mxu1 }
0x1298   : > { %v3374_v46 = vadd.f32 %v10235_v0, %v3373_v40  ;;  %v10727_v49 = vpop.f32.mrb[19].mxu1 }
0x129a   : > { %v3377_v41 = vadd.f32 %v3374_v46, %v12133_v36 }
0x129c   : > { %v3380_v42 = vsel %vm345_vm1, %v3377_v41, 0.0 }
0x129d   : > { %3381 = vadd.xlane.f32.xlu0 %v3380_v42 }
0x12b3   : > { %11356 = vrot.lane.b32.xlu0 %v12207_v26, %s13200_s9 }
0x132a   : > { %v3382_v43 = vpop.xlane.xlu0 %3381 }
0x132b   : > { %v3383_v44 = vmul.f32 0.03125, %v3382_v43 }
0x132d   : > { %v3384_v47 = vsub.f32 %v3377_v41, %v3383_v44 }
0x132e   : > { %v11357_v51 = vpop.permute.xlu0 %11356 }
0x132f   : > { %v3385_v48 = vmul.f32 %v3384_v47, %v3384_v47  ;;  %v11359_v52 = vunpack.i.h.bf16 %v11357_v51  ;;  %v11358_v53 = vunpack.i.l.bf16 %v11357_v51  ;;  %v10239_v51 = vld [vmem:[%s13189_s6 + $0xc] ss:$0 sm:$0xff] }
0x1331   : > { %v3386_v50 = vsel %vm345_vm1, %v3385_v48, 0.0  ;;  %v11142_v36 = vpack.c.bf16 %v11359_v52, %v11358_v53 }
0x1332   : > { %3387 = vadd.xlane.f32.xlu1 %v3386_v50 }
0x1333   : > { %11143 = vmatpush3.bf16.msra.mxu0 %v11142_v36 }
0x1334   : > { %11144 = vmatprep.subr.bf16.mxu0 %v11715_v3 }
0x1343   : > { %11361 = vrot.lane.b32.xlu1 %v12213_v27, %s13200_s9  ;;  %s13230_s9 = smov 32  }
0x13bf   : > { %v3388_v54 = vpop.xlane.xlu1 %3387 }
0x13c0   : > { %v3389_v55 = vmul.f32 0.03125, %v3388_v54 }
0x13c2   : > { %v3390_v26 = vadd.f32 1e-12, %v3389_v55 }
0x13c3   : > { %v11362_v1 = vpop.permute.xlu1 %11361 }
0x13c4   : > { %11571 = vrsqrt.f32 %v3390_v26  ;;  %v11364_v57 = vunpack.i.h.bf16 %v11362_v1  ;;  %v11363_v58 = vunpack.i.l.bf16 %v11362_v1 }
0x13c6   : > { %v11145_v59 = vpack.c.bf16 %v11364_v57, %v11363_v58 }
0x13c8   : > { %11146 = vmatpush3.bf16.msra.mxu0 %v11145_v59  ;;  %v326_v59 = vand.u32 127, %v323_v7 }
0x13c9   : > { %11159 = vmatprep.subr.bf16.mxu0 %v11715_v3 }
0x13ca   : > { %vm327_vm10 = vcmp.ge.s32.totalorder %v11856_v9, %v326_v59 }
0x13cb   : > { %vm12377_vm11 = vmand %vm333_vm9, %vm327_vm10 }
0x13ce   : > { %v11572_v27 = vpop.eup %11571 }
0x13cf   : > { %v3392_v60 = vmul.f32 %v11572_v27, %v3384_v47 }
0x13d1   : > { %v3397_v4 = vmul.f32 %v10237_v5, %v3392_v60 }
0x13d3   : > { %v12274_v14 = vadd.f32 %v10238_v63, %v3397_v4 }
0x13d5   : > { %10737 = vmatmul.mubr.msk.f32.vlgmr.msra.gmra.mrb[24].mxu0 %vm345_vm1, %v12274_v14 }
0x13d6   : > { %11161 = vmatpush3.bf16.msra.mxu0 %v11160_v8  ;;  %10766 = vmatprep.mubr.msk.f32.mxu0 %vm11716_vm0, %v11717_v6 }
0x13d7   : > { %11162 = vmatprep.subr.bf16.mxu0 %v11715_v3 }
0x13da   : > { %11164 = vmatpush3.bf16.msra.mxu0 %v11163_v21 }
0x13db   : > { %10769 = vmatprep.subr.mxu0 %v11717_v6 }
0x13dd   : > { %10767 = vmatmul.mubr.msk.f32.vlgmr.msra.gmra.mrb[26].mxu0 %vm345_vm1, %v12298_v22 }
0x13de   : > { %10771 = vmatprep.mubr.msk.f32.mxu0 %vm11716_vm0, %v11717_v6 }
0x14a8   : > { %v3489_v62 = vpop.f32.mrb[24].mxu0 }
0x14a9   : > { %v10738_v23 = vpop.f32.mrb[25].mxu0  ;;  %v3490_v53 = vadd.f32 %v10239_v51, %v3489_v62 }
0x14ab   : > { %v3493_v36 = vmax.f32 %v3490_v53, 0.0 }
0x14b0   : > { %v3717_v25 = vpop.f32.mrb[26].mxu0 }
0x14b1   : > { %v12308_v28 = vadd.f32 %v10245_v24, %v3717_v25  ;;  %v10768_v29 = vpop.f32.mrb[27].mxu0 }
0x14b3   : > { %3724 = vrot.lane.b32.xlu1 %v12308_v28, %s13206_s20  ;;  %3722 = vrot.lane.b32.xlu0 %v12308_v28, %s13208_s18 }
0x14b7   : > { %3728 = vrot.lane.b32.xlu1 %v12308_v28, %s13225_s22  ;;  %3726 = vrot.lane.b32.xlu0 %v12308_v28, %s13226_s16 }
0x1525   : > { %v12318_v32 = vpop.permute.xlu1 %3724  ;;  %v12320_v34 = vpop.permute.xlu0 %3722 }
0x1526   : > { %3732 = vrot.lane.b32.xlu1 %v12318_v32, %s13225_s22  ;;  %3730 = vrot.lane.b32.xlu0 %v12320_v34, %s13225_s22 }
0x1529   : > { %v12328_v37 = vpop.permute.xlu0 %3726  ;;  %v3729_v12 = vpop.permute.xlu1 %3728 }
0x152a   : > { %11366 = vrot.lane.b32.xlu1 %v11365_v35, %s13225_s22  ;;  %3734 = vrot.lane.b32.xlu0 %v12328_v37, %s13225_s22 }
0x152e   : > { %11376 = vrot.lane.b32.xlu1 %v11375_v38, %s13225_s22  ;;  %11371 = vrot.lane.b32.xlu0 %v11370_v39, %s13225_s22 }
0x1532   : > { %11381 = vrot.lane.b32.xlu0 %v11380_v11, %s13225_s22 }
0x1557   : > { %3740 = vxpose.xlu1.b32.start.end [1/1] (short) (narrow) %v3729_v12, 8 }
0x1598   : > { %v3733_v45 = vpop.permute.xlu1 %3732  ;;  %v3731_v0 = vpop.permute.xlu0 %3730 }
0x1599   : > { %3772 = vxpose.xlu0.b32.start.end [1/1] (short) (narrow) %v3731_v0, 8 }
0x159c   : > { %v11367_v40 = vpop.permute.xlu1 %11366  ;;  %v3735_v46 = vpop.permute.xlu0 %3734 }
0x159d   : > { %v11369_v18 = vunpack.i.h.bf16 %v11367_v40  ;;  %v11368_v19 = vunpack.i.l.bf16 %v11367_v40  ;;  %3804 = vxpose.xlu0.b32.start.end [1/1] (short) (narrow) %v3733_v45, 8 }
0x159f   : > { %v11148_v13 = vpack.c.bf16 %v11369_v18, %v11368_v19 }
0x15a0   : > { %v11372_v16 = vpop.permute.xlu0 %11371  ;;  %v11377_v49 = vpop.permute.xlu1 %11376 }
0x15a1   : > { %v11374_v41 = vunpack.i.h.bf16 %v11372_v16  ;;  %v11373_v42 = vunpack.i.l.bf16 %v11372_v16  ;;  %11149 = vmatpush3.bf16.msra.mxu1 %v11148_v13  ;;  %3836 = vxpose.xlu0.b32.start.end [1/1] (short) (narrow) %v3735_v46, 8  ;;  %v11379_v30 = vunpack.i.h.bf16 %v11377_v49  ;;  %v11378_v31 = vunpack.i.l.bf16 %v11377_v49 }
0x15a2   : > { %11150 = vmatprep.subr.bf16.mxu1 %v11715_v3 }
0x15a3   : > { %v11151_v43 = vpack.c.bf16 %v11374_v41, %v11373_v42  ;;  %v11154_v47 = vpack.c.bf16 %v11379_v30, %v11378_v31 }
0x15a4   : > { %v11382_v44 = vpop.permute.xlu0 %11381 }
0x15a5   : > { %11152 = vmatpush3.bf16.msra.mxu1 %v11151_v43  ;;  %v11384_v48 = vunpack.i.h.bf16 %v11382_v44  ;;  %v11383_v50 = vunpack.i.l.bf16 %v11382_v44 }
0x15a6   : > { %11153 = vmatprep.subr.bf16.mxu1 %v11715_v3 }
0x15a7   : > { %v11157_v52 = vpack.c.bf16 %v11384_v48, %v11383_v50 }
0x15a9   : > { %11155 = vmatpush3.bf16.msra.mxu1 %v11154_v47 }
0x15aa   : > { %11156 = vmatprep.subr.bf16.mxu1 %v11715_v3 }
0x15ad   : > { %11158 = vmatpush3.bf16.msra.mxu1 %v11157_v52 }
0x15ae   : > { %10779 = vmatprep.subr.mxu1 %v11717_v6 }
0x15b0   : > { %10756 = vmatmul.mubr.msk.f32.vlgmr.msra.gmra.mrb[20].mxu1 %vm1855_vm8, %v3493_v36 }
0x15b1   : > { %10781 = vmatprep.mubr.msk.f32.mxu1 %vm11716_vm0, %v11717_v6 }
0x15d7   : > { %v3756_v54 = vpop.trf.xlu1 }
0x15d8   : > { %10770 = vmatpush3.msra.mxu0 %v3756_v54 }
0x15d9   : > { %10772 = vmatmul.mubr.msk.f32.vlgmr.msra.gmra.mrb[28].mxu0 %vm566_vm3, %v12308_v28  ;;  %10774 = vmatprep.subr.mxu0 %v11717_v6 }
0x15da   : > { %10776 = vmatprep.mubr.msk.f32.mxu0 %vm11716_vm0, %v11717_v6 }
0x1619   : > { %v3788_v55 = vpop.trf.xlu0 }
0x161a   : > { %10775 = vmatpush3.msra.mxu0 %v3788_v55 }
0x161b   : > { %10777 = vmatmul.mubr.msk.f32.vlgmr.msra.gmra.mrb[30].mxu0 %vm566_vm3, %v12320_v34  ;;  %10784 = vmatprep.subr.mxu0 %v11717_v6 }
0x161c   : > { %10786 = vmatprep.mubr.msk.f32.mxu0 %vm11716_vm0, %v11717_v6 }
0x161d   : > { %v3820_v26 = vpop.trf.xlu0 }
0x161e   : > { %10780 = vmatpush3.msra.mxu1 %v3820_v26 }
0x161f   : > { %10782 = vmatmul.mubr.msk.f32.vlgmr.msra.gmra.mrb[22].mxu1 %vm566_vm3, %v12318_v32  ;;  %10789 = vmatprep.subr.mxu1 %v11717_v6 }
0x1620   : > { %10791 = vmatprep.mubr.msk.f32.mxu1 %vm11716_vm0, %v11717_v6 }
0x1621   : > { %v3852_v1 = vpop.trf.xlu0 }
0x1622   : > { %10785 = vmatpush3.msra.mxu0 %v3852_v1 }
0x1623   : > { %10787 = vmatmul.mubr.msk.f32.vlgmr.msra.gmra.mrb[32].mxu0 %vm566_vm3, %v12328_v37  ;;  %10794 = vmatprep.subr.mxu0 %v11717_v6 }
0x1624   : > { %10796 = vmatprep.mubr.msk.f32.mxu0 %vm11716_vm0, %v11717_v6 }
0x1683   : > { %v12372_v57 = vpop.f32.mrb[20].mxu1 }
0x1684   : > { %v10757_v58 = vpop.f32.mrb[21].mxu1 }
0x16ac   : > { %v3936_v5 = vpop.f32.mrb[28].mxu0 }
0x16ad   : > { %v4158_v60 = vsel %vm12377_vm11, %v3936_v5, -10000.0  ;;  %v10773_v63 = vpop.f32.mrb[29].mxu0 }
0x16ae   : > { %v4162_v4 = vsel %vm566_vm3, %v4158_v60, -inf }
0x16af   : > { %4163 = vmax.xlane.f32.xlu1 %v4162_v4 }
0x16ee   : > { %v4008_v8 = vpop.f32.mrb[30].mxu0 }
0x16ef   : > { %v4159_v7 = vsel %vm12377_vm11, %v4008_v8, -10000.0  ;;  %v10778_v21 = vpop.f32.mrb[31].mxu0 }
0x16f0   : > { %v4165_v15 = vsel %vm566_vm3, %v4159_v7, -inf }
0x16f1   : > { %4166 = vmax.xlane.f32.xlu0 %v4165_v15 }
0x16f2   : > { %v4080_v9 = vpop.f32.mrb[22].mxu1 }
0x16f3   : > { %v4160_v62 = vsel %vm12377_vm11, %v4080_v9, -10000.0  ;;  %v10783_v23 = vpop.f32.mrb[23].mxu1 }
0x16f4   : > { %v4168_v24 = vsel %vm566_vm3, %v4160_v62, -inf }
0x16f5   : > { %4169 = vmax.xlane.f32.xlu1 %v4168_v24 }
0x16f6   : > { %v4152_v25 = vpop.f32.mrb[32].mxu0 }
0x16f7   : > { %v4161_v29 = vsel %vm12377_vm11, %v4152_v25, -10000.0  ;;  %v10788_v35 = vpop.f32.mrb[33].mxu0 }
0x16f8   : > { %v4171_v38 = vsel %vm566_vm3, %v4161_v29, -inf  ;;  %v11390_v35 = vpack.i.bf16 %v12284_v20, %v12279_v17 }
0x16f9   : > { %4172 = vmax.xlane.f32.xlu1 %v4171_v38  ;;  %v10241_v38 = vld [vmem:[%s13189_s6 + $0xd] ss:$0 sm:$0xff] }
0x1707   : > { %4206 = vrot.lane.b32.xlu0 %v12308_v28, %s13229_s19 }
0x170a   : > { %4208 = vrot.lane.b32.xlu1 %v12320_v34, %s13229_s19 }
0x170b   : > { %4212 = vrot.lane.b32.xlu0 %v12328_v37, %s13229_s19 }
0x170e   : > { %4210 = vrot.lane.b32.xlu1 %v12318_v32, %s13229_s19 }
0x173c   : > { %v4164_v39 = vpop.xlane.xlu1 %4163 }
0x173d   : > { %v4174_v11 = vsub.f32 %v4158_v60, %v4164_v39  ;;  %v3609_v39 = vadd.f32 %v10241_v38, %v12372_v57 }
0x173f   : > { %v4178_v12 = vmul.f32 1.442695, %v4174_v11  ;;  %v3612_v11 = vadd.f32 %v3609_v39, %v12274_v14 }
0x1741   : > { %11573 = vpow2.f32 %v4178_v12  ;;  %v3615_v12 = vsel %vm345_vm1, %v3612_v11, 0.0 }
0x174b   : > { %v11574_v45 = vpop.eup %11573 }
0x174c   : > { %v4186_v0 = vsel %vm566_vm3, %v11574_v45, 0.0 }
0x174d   : > { %4187 = vadd.xlane.f32.xlu1 %v4186_v0 }
0x177e   : > { %v4167_v40 = vpop.xlane.xlu0 %4166 }
0x177f   : > { %v4175_v46 = vsub.f32 %v4159_v7, %v4167_v40 }
0x1781   : > { %v4180_v28 = vmul.f32 1.442695, %v4175_v46 }
0x1782   : > { %v4170_v18 = vpop.xlane.xlu1 %4169  ;;  %v4207_v44 = vpop.permute.xlu0 %4206 }
0x1783   : > { %11575 = vpow2.f32 %v4180_v28  ;;  %v4176_v34 = vsub.f32 %v4160_v62, %v4170_v18 }
0x1785   : > { %v4182_v19 = vmul.f32 1.442695, %v4176_v34 }
0x1786   : > { %v4173_v13 = vpop.xlane.xlu1 %4172  ;;  %v4213_v48 = vpop.permute.xlu0 %4212 }
0x1787   : > { %11577 = vpow2.f32 %v4182_v19  ;;  %v4177_v37 = vsub.f32 %v4161_v29, %v4173_v13  ;;  %v11385_v29 = vpack.i.bf16 %v12267_v10, %v12262_v61 }
0x1789   : > { %v4184_v16 = vmul.f32 1.442695, %v4177_v37 }
0x178a   : > { %v4209_v43 = vpop.permute.xlu1 %4208 }
0x178b   : > { %11579 = vpow2.f32 %v4184_v16 }
0x178d   : > { %v11576_v32 = vpop.eup %11575 }
0x178e   : > { %v4189_v49 = vsel %vm566_vm3, %v11576_v32, 0.0  ;;  %v4211_v47 = vpop.permute.xlu1 %4210 }
0x178f   : > { %4190 = vadd.xlane.f32.xlu0 %v4189_v49 }
0x1791   : > { %v11578_v41 = vpop.eup %11577 }
0x1792   : > { %v4192_v42 = vsel %vm566_vm3, %v11578_v41, 0.0 }
0x1793   : > { %4193 = vadd.xlane.f32.xlu0 %v4192_v42 }
0x1795   : > { %v11580_v30 = vpop.eup %11579 }
0x1796   : > { %v4195_v31 = vsel %vm566_vm3, %v11580_v30, 0.0 }
0x1797   : > { %4196 = vadd.xlane.f32.xlu1 %v4195_v31 }
0x17c0   : > { %4218 = vxpose.xlu0.b32.start.end [1/1] (short) (narrow) %v4207_v44, 8 }
0x17c4   : > { %4282 = vxpose.xlu0.b32.start.end [1/1] (short) (narrow) %v4211_v47, 8 }
0x17c8   : > { %4314 = vxpose.xlu0.b32.start.end [1/1] (short) (narrow) %v4213_v48, 8 }
0x17ca   : > { %4250 = vxpose.xlu1.b32.start.end [1/1] (short) (narrow) %v4209_v43, 8 }
0x17da   : > { %v4188_v50 = vpop.xlane.xlu1 %4187 }
0x17db   : > { %11581 = vrcp.f32 %v4188_v50 }
0x17e5   : > { %v11582_v51 = vpop.eup %11581 }
0x17e6   : > { %v4202_v52 = vmul.f32 %v11582_v51, %v11574_v45 }
0x17e8   : > { %10790 = vmatpush3.xpose.msk.msra.mxu1 %vm566_vm3, %v4202_v52 }
0x17e9   : > { %10799 = vmatprep.subr.mxu1 %v11717_v6 }
0x181c   : > { %v4191_v53 = vpop.xlane.xlu0 %4190 }
0x181d   : > { %11583 = vrcp.f32 %v4191_v53 }
0x1820   : > { %v4194_v55 = vpop.xlane.xlu0 %4193 }
0x1821   : > { %11585 = vrcp.f32 %v4194_v55 }
0x1824   : > { %v4197_v26 = vpop.xlane.xlu1 %4196 }
0x1825   : > { %11587 = vrcp.f32 %v4197_v26 }
0x1827   : > { %v11584_v36 = vpop.eup %11583 }
0x1828   : > { %v4203_v54 = vmul.f32 %v11584_v36, %v11576_v32 }
0x182a   : > { %10795 = vmatpush3.xpose.msk.msra.mxu0 %vm566_vm3, %v4203_v54 }
0x182b   : > { %10804 = vmatprep.subr.mxu0 %v11717_v6  ;;  %v11586_v1 = vpop.eup %11585 }
0x182c   : > { %v4204_v59 = vmul.f32 %v11586_v1, %v11578_v41 }
0x182f   : > { %v11588_v60 = vpop.eup %11587 }
0x1830   : > { %v4205_v4 = vmul.f32 %v11588_v60, %v11580_v30 }
0x1840   : > { %v4234_v58 = vpop.trf.xlu0 }
0x1841   : > { %10792 = vmatmul.mubr.msk.f32.vlgmr.msra.gmra.mrb[24].mxu1 %vm566_vm3, %v4234_v58 }
0x1842   : > { %10800 = vmatpush3.xpose.msk.msra.mxu1 %vm566_vm3, %v4204_v59  ;;  %10801 = vmatprep.mubr.msk.f32.mxu1 %vm11716_vm0, %v11717_v6 }
0x1843   : > { %11165 = vmatprep.subr.bf16.mxu1 %v11715_v3 }
0x1844   : > { %v4298_v5 = vpop.trf.xlu0 }
0x1845   : > { %10802 = vmatmul.mubr.msk.f32.vlgmr.msra.gmra.mrb[26].mxu1 %vm566_vm3, %v4298_v5 }
0x1846   : > { %10817 = vmatprep.mubr.msk.f32.mxu1 %vm11716_vm0, %v11717_v6 }
0x1848   : > { %v4330_v8 = vpop.trf.xlu0 }
0x184a   : > { %v4266_v63 = vpop.trf.xlu1 }
0x184b   : > { %10797 = vmatmul.mubr.msk.f32.vlgmr.msra.gmra.mrb[34].mxu0 %vm566_vm3, %v4266_v63 }
0x184c   : > { %10805 = vmatpush3.xpose.msk.msra.mxu0 %vm566_vm3, %v4205_v4  ;;  %10806 = vmatprep.mubr.msk.f32.mxu0 %vm11716_vm0, %v11717_v6 }
0x184d   : > { %11171 = vmatprep.subr.bf16.mxu0 %v11715_v3 }
0x184f   : > { %10807 = vmatmul.mubr.msk.f32.vlgmr.msra.gmra.mrb[36].mxu0 %vm566_vm3, %v4330_v8 }
0x1850   : > { %10828 = vmatprep.mubr.msk.f32.mxu0 %vm11716_vm0, %v11717_v6 }
0x1914   : > { %v4418_v7 = vpop.f32.mrb[24].mxu1 }
0x1915   : > { %v10793_v21 = vpop.f32.mrb[25].mxu1  ;;  %4650 = vxpose.xlu1.b32.start.end [1/1] (short) (narrow) %v4418_v7, 8 }
0x1918   : > { %v4570_v15 = vpop.f32.mrb[26].mxu1 }
0x1919   : > { %v10803_v9 = vpop.f32.mrb[27].mxu1  ;;  %4714 = vxpose.xlu1.b32.start.end [1/1] (short) (narrow) %v4570_v15, 8 }
0x191e   : > { %v4494_v62 = vpop.f32.mrb[34].mxu0 }
0x191f   : > { %4682 = vxpose.xlu0.b32.start.end [1/1] (short) (narrow) %v4494_v62, 8  ;;  %v10798_v23 = vpop.f32.mrb[35].mxu0 }
0x1922   : > { %v4646_v24 = vpop.f32.mrb[36].mxu0 }
0x1923   : > { %4746 = vxpose.xlu0.b32.start.end [1/1] (short) (narrow) %v4646_v24, 8  ;;  %v10808_v25 = vpop.f32.mrb[37].mxu0 }
0x1937   : > { %11386 = vrot.lane.b32.xlu1 %v11385_v29, %s13230_s9 }
0x194c   : > { %11391 = vrot.lane.b32.xlu0 %v11390_v35, %s13230_s9 }
0x196b   : > { %3616 = vadd.xlane.f32.xlu0 %v3615_v12 }
0x1995   : > { %v4666_v45 = vpop.trf.xlu1 }
0x1999   : > { %v4730_v61 = vpop.trf.xlu1 }
0x199a   : > { %v4778_v0 = vcombine.low %v4666_v45, %v4730_v61  ;;  %v4779_v40 = vcombine.high %v4666_v45, %v4730_v61 }
0x199c   : > { %v4786_v28 = vrot.slane %v4778_v0, %v11965_v56  ;;  %v4793_v18 = vrot.slane %v4779_v40, %v11965_v56  ;;  %v5054_v0 = vld [vmem:[%s13187_s4 + $0x68] sm:$0xff] }
0x199f   : > { %v4698_v10 = vpop.trf.xlu0 }
0x19a3   : > { %v4762_v46 = vpop.trf.xlu0 }
0x19a4   : > { %v4794_v17 = vcombine.low %v4698_v10, %v4762_v46  ;;  %v4795_v20 = vcombine.high %v4698_v10, %v4762_v46 }
0x19a6   : > { %v4802_v34 = vrot.slane %v4794_v17, %v11965_v56  ;;  %v4809_v57 = vrot.slane %v4795_v20, %v11965_v56 }
0x19a8   : > { %v4810_v14 = vcombine.low %v4786_v28, %v4802_v34  ;;  %v4811_v19 = vcombine.high %v4786_v28, %v4802_v34  ;;  %v4826_v13 = vcombine.low %v4793_v18, %v4809_v57  ;;  %v4827_v37 = vcombine.high %v4793_v18, %v4809_v57  ;;  %v10261_v18 = vld [vmem:[%s13189_s6 + $0x11] ss:$0 sm:$0xff] }
0x19a9   : > { %v11387_v16 = vpop.permute.xlu1 %11386 }
0x19aa   : > { %v4818_v32 = vrot.slane %v4810_v14, %v11968_v2  ;;  %v4825_v49 = vrot.slane %v4811_v19, %v11968_v2  ;;  %v4834_v41 = vrot.slane %v4826_v13, %v11968_v2  ;;  %v4841_v42 = vrot.slane %v4827_v37, %v11968_v2 }
0x19ab   : > { %v11389_v30 = vunpack.i.h.bf16 %v11387_v16  ;;  %v11388_v31 = vunpack.i.l.bf16 %v11387_v16  ;;  %v5055_v16 = vld [vmem:[%s13187_s4 + $0xb0] sm:$0xff] }
0x19ac   : > { %v4846_v43 = vcombine.low %v4818_v32, %v4825_v49  ;;  %v10259_v44 = vcombine.high %v4818_v32, %v4825_v49  ;;  %v4862_v47 = vcombine.low %v4834_v41, %v4841_v42  ;;  %v10260_v48 = vcombine.high %v4834_v41, %v4841_v42  ;;  %v5056_v32 = vld [vmem:[%s13187_s4 + $0xf8] sm:$0xff] }
0x19ad   : > { %v11166_v50 = vpack.c.bf16 %v11389_v30, %v11388_v31  ;;  %v12487_v49 = vpack.i.bf16 %v5056_v32, %v5055_v16 }
0x19ae   : > { %v4853_v51 = vrot.slane %v4846_v43, %v11965_v56  ;;  %v4861_v52 = vrot.slane %v10259_v44, %v11965_v56  ;;  %v4869_v53 = vrot.slane %v4862_v47, %v11965_v56  ;;  %v4877_v36 = vrot.slane %v10260_v48, %v11965_v56  ;;  %v10243_v47 = vld [vmem:[%s13189_s6 + $0xe] ss:$0 sm:$0xff] }
0x19af   : > { %11167 = vmatpush3.bf16.msra.mxu1 %v11166_v50 }
0x19b0   : > { %v4878_v54 = vcombine.low %v4853_v51, %v4861_v52  ;;  %v4894_v55 = vcombine.low %v4869_v53, %v4877_v36  ;;  %v4879_v26 = vcombine.high %v4853_v51, %v4861_v52  ;;  %v4895_v1 = vcombine.high %v4869_v53, %v4877_v36  ;;  %11168 = vmatprep.subr.bf16.mxu1 %v11715_v3 }
0x19b2   : > { %v4886_v58 = vrot.slane %v4878_v54, %v11968_v2  ;;  %v4902_v59 = vrot.slane %v4894_v55, %v11968_v2  ;;  %v4893_v60 = vrot.slane %v4879_v26, %v11968_v2  ;;  %v4909_v63 = vrot.slane %v4895_v1, %v11968_v2  ;;  %v10244_v55 = vld [vmem:[%s13189_s6 + $0xf] ss:$0 sm:$0xff] }
0x19b4   : > { %v4911_v5 = vcombine.high %v4886_v58, %v4902_v59  ;;  %v4910_v4 = vcombine.low %v4886_v58, %v4902_v59  ;;  %v4912_v8 = vcombine.low %v4893_v60, %v4909_v63  ;;  %v4913_v7 = vcombine.high %v4893_v60, %v4909_v63 }
0x19b5   : > { %v11175_v58 = vpack.c.bf16 %v5056_v32, %v5055_v16 }
0x19b6   : > { %4915 = vrot.lane.b32.xlu1 %v4911_v5, %s13220_s14 }
0x19ba   : > { %4919 = vrot.lane.b32.xlu1 %v4912_v8, %s13221_s15 }
0x19be   : > { %4923 = vrot.lane.b32.xlu1 %v4913_v7, %s13222_s13  ;;  %v11392_v21 = vpop.permute.xlu0 %11391  ;;  %v10264_v7 = vld [vmem:[%s13189_s6 + $0x13] ss:$0 sm:$0xff] }
0x19bf   : > { %v11394_v15 = vunpack.i.h.bf16 %v11392_v21  ;;  %v11393_v9 = vunpack.i.l.bf16 %v11392_v21 }
0x19c1   : > { %v11169_v62 = vpack.c.bf16 %v11394_v15, %v11393_v9  ;;  %v10267_v9 = vld [vmem:[%s13189_s6 + $0x15] ss:$0 sm:$0xff] }
0x19c3   : > { %11170 = vmatpush3.bf16.msra.mxu1 %v11169_v62 }
0x19c4   : > { %11177 = vmatprep.subr.bf16.mxu1 %v11715_v3 }
0x19f8   : > { %v3617_v23 = vpop.xlane.xlu0 %3616 }
0x19f9   : > { %v3618_v24 = vmul.f32 0.03125, %v3617_v23 }
0x19fb   : > { %v3619_v25 = vsub.f32 %v3612_v11, %v3618_v24  ;;  %v5053_v11 = vld [vmem:[%s13187_s4 + $0x20] sm:$0xff] }
0x19fc   : > { %v12471_v40 = vpack.i.bf16 %v5054_v0, %v5053_v11  ;;  %v11172_v1 = vpack.c.bf16 %v5054_v0, %v5053_v11 }
0x19fd   : > { %v3620_v29 = vmul.f32 %v3619_v25, %v3619_v25 }
0x19fe   : > { %11173 = vmatpush3.bf16.msra.mxu0 %v11172_v1 }
0x19ff   : > { %v3621_v35 = vsel %vm345_vm1, %v3620_v29, 0.0  ;;  %11174 = vmatprep.subr.bf16.mxu0 %v11715_v3 }
0x1a00   : > { %3622 = vadd.xlane.f32.xlu0 %v3621_v35  ;;  %v10265_v35 = vld [vmem:[%s13189_s6 + $0x14] ss:$0 sm:$0xff] }
0x1a02   : > { %11176 = vmatpush3.bf16.msra.mxu0 %v11175_v58 }
0x1a03   : > { %10842 = vmatprep.subr.mxu0 %v11717_v6 }
0x1a16   : > { %11396 = vrot.lane.b32.xlu0 %v12471_v40, %s13225_s22 }
0x1a28   : > { %v4916_v38 = vpop.permute.xlu1 %4915 }
0x1a29   : > { %v4926_v12 = vsel %vm566_vm3, %v4910_v4, %v4916_v38  ;;  %v10263_v4 = vld [vmem:[%s13189_s6 + $0x12] ss:$0 sm:$0xff] }
0x1a2c   : > { %v4920_v39 = vpop.permute.xlu1 %4919 }
0x1a2d   : > { %v4927_v45 = vsel %vm1630_vm6, %v4926_v12, %v4920_v39 }
0x1a30   : > { %v4924_v61 = vpop.permute.xlu1 %4923 }
0x1a31   : > { %v4928_v10 = vsel %vm1632_vm7, %v4927_v45, %v4924_v61 }
0x1a32   : > { %10818 = vmatmul.mubr.msk.f32.vlgmr.msra.gmra.mrb[28].mxu1 %vm345_vm1, %v4928_v10 }
0x1a33   : > { %10839 = vmatprep.mubr.msk.f32.mxu1 %vm11716_vm0, %v11717_v6 }
0x1a8d   : > { %v3623_v46 = vpop.xlane.xlu0 %3622 }
0x1a8e   : > { %v3624_v41 = vmul.f32 0.03125, %v3623_v46 }
0x1a90   : > { %v3625_v42 = vadd.f32 1e-12, %v3624_v41 }
0x1a91   : > { %v11397_v17 = vpop.permute.xlu0 %11396 }
0x1a92   : > { %v11399_v20 = vunpack.i.h.bf16 %v11397_v17  ;;  %v11398_v28 = vunpack.i.l.bf16 %v11397_v17  ;;  %11589 = vrsqrt.f32 %v3625_v42 }
0x1a94   : > { %v11178_v34 = vpack.c.bf16 %v11399_v20, %v11398_v28 }
0x1a96   : > { %11179 = vmatpush3.bf16.msra.mxu1 %v11178_v34 }
0x1a97   : > { %11180 = vmatprep.subr.bf16.mxu1 %v11715_v3 }
0x1b05   : > { %v5023_v57 = vpop.f32.mrb[28].mxu1 }
0x1b06   : > { %v5024_v14 = vadd.f32 %v10261_v18, %v5023_v57  ;;  %v10819_v19 = vpop.f32.mrb[29].mxu1 }
0x1b08   : > { %v5027_v13 = vadd.f32 %v5024_v14, %v12298_v22  ;;  %v11590_v22 = vpop.eup %11589 }
0x1b09   : > { %v3627_v43 = vmul.f32 %v11590_v22, %v3619_v25 }
0x1b0a   : > { %v5030_v37 = vsel %vm345_vm1, %v5027_v13, 0.0 }
0x1b0b   : > { %5031 = vadd.xlane.f32.xlu1 %v5030_v37  ;;  %v3632_v53 = vmul.f32 %v10243_v47, %v3627_v43 }
0x1b0d   : > { %v12498_v26 = vadd.f32 %v10244_v55, %v3632_v53 }
0x1b1c   : > { %11401 = vrot.lane.b32.xlu1 %v12487_v49, %s13225_s22 }
0x1b98   : > { %v5032_v30 = vpop.xlane.xlu1 %5031 }
0x1b99   : > { %v5033_v31 = vmul.f32 0.03125, %v5032_v30 }
0x1b9b   : > { %v5034_v44 = vsub.f32 %v5027_v13, %v5033_v31 }
0x1b9c   : > { %v11402_v48 = vpop.permute.xlu1 %11401 }
0x1b9d   : > { %v11404_v50 = vunpack.i.h.bf16 %v11402_v48  ;;  %v11403_v51 = vunpack.i.l.bf16 %v11402_v48  ;;  %v5035_v52 = vmul.f32 %v5034_v44, %v5034_v44 }
0x1b9f   : > { %v11181_v36 = vpack.c.bf16 %v11404_v50, %v11403_v51  ;;  %v5036_v54 = vsel %vm345_vm1, %v5035_v52, 0.0 }
0x1ba0   : > { %5037 = vadd.xlane.f32.xlu1 %v5036_v54 }
0x1ba1   : > { %11182 = vmatpush3.bf16.msra.mxu1 %v11181_v36 }
0x1ba2   : > { %10852 = vmatprep.subr.mxu1 %v11717_v6 }
0x1ba4   : > { %10840 = vmatmul.mubr.msk.f32.vlgmr.msra.gmra.mrb[30].mxu1 %vm345_vm1, %v12498_v26 }
0x1ba5   : > { %10854 = vmatprep.mubr.msk.f32.mxu1 %vm11716_vm0, %v11717_v6 }
0x1c2d   : > { %v5038_v59 = vpop.xlane.xlu1 %5037 }
0x1c2e   : > { %v5039_v5 = vmul.f32 0.03125, %v5038_v59 }
0x1c30   : > { %v5040_v60 = vadd.f32 1e-12, %v5039_v5 }
0x1c32   : > { %11591 = vrsqrt.f32 %v5040_v60 }
0x1c3c   : > { %v11592_v63 = vpop.eup %11591 }
0x1c3d   : > { %v5042_v8 = vmul.f32 %v11592_v63, %v5034_v44 }
0x1c3f   : > { %v5047_v21 = vmul.f32 %v10263_v4, %v5042_v8 }
0x1c41   : > { %v12513_v15 = vadd.f32 %v10264_v7, %v5047_v21 }
0x1c43   : > { %10829 = vmatmul.mubr.msk.f32.vlgmr.msra.gmra.mrb[38].mxu0 %vm345_vm1, %v12513_v15 }
0x1c44   : > { %10844 = vmatprep.mubr.msk.f32.mxu0 %vm11716_vm0, %v11717_v6 }
0x1c77   : > { %v5225_v62 = vpop.f32.mrb[30].mxu1 }
0x1c78   : > { %v12522_v23 = vadd.f32 %v10267_v9, %v5225_v62  ;;  %v10841_v24 = vpop.f32.mrb[31].mxu1 }
0x1c7a   : > { %5237 = vrot.lane.b32.xlu0 %v12522_v23, %s13208_s18 }
0x1c7e   : > { %5240 = vrot.lane.b32.xlu0 %v12522_v23, %s13231_s17 }
0x1c82   : > { %5243 = vrot.lane.b32.xlu0 %v12522_v23, %s13226_s16 }
0x1ca0   : > { %5246 = vxpose.xlu0.b32.start.end [1/1] (short) (narrow) %v12522_v23, 8 }
0x1cec   : > { %v5238_v25 = vpop.permute.xlu0 %5237 }
0x1ced   : > { %5278 = vxpose.xlu1.b32.start.end [1/1] (short) (narrow) %v5238_v25, 8 }
0x1cf0   : > { %v5241_v29 = vpop.permute.xlu0 %5240 }
0x1cf1   : > { %5310 = vxpose.xlu0.b32.start.end [1/1] (short) (narrow) %v5241_v29, 8 }
0x1cf4   : > { %v5244_v45 = vpop.permute.xlu0 %5243 }
0x1d16   : > { %v5131_v38 = vpop.f32.mrb[38].mxu0 }
0x1d17   : > { %v5132_v39 = vadd.f32 %v10265_v35, %v5131_v38  ;;  %v10830_v12 = vpop.f32.mrb[39].mxu0 }
0x1d1a   : > { %5230 = vrot.lane.b32.xlu0 %v5132_v39, %s13208_s18 }
0x1d1e   : > { %5232 = vrot.lane.b32.xlu0 %v5132_v39, %s13231_s17 }
0x1d20   : > { %v5262_v61 = vpop.trf.xlu0 }
0x1d21   : > { %10843 = vmatpush3.msra.mxu0 %v5262_v61 }
0x1d22   : > { %5234 = vrot.lane.b32.xlu0 %v5132_v39, %s13226_s16  ;;  %10845 = vmatmul.mubr.msk.f32.vlgmr.msra.gmra.mrb[40].mxu0 %vm566_vm3, %v5132_v39 }
0x1d23   : > { %10847 = vmatprep.subr.mxu0 %v11717_v6  ;;  %10849 = vmatprep.mubr.msk.f32.mxu0 %vm11716_vm0, %v11717_v6 }
0x1d40   : > { %5342 = vxpose.xlu0.b32.start.end [1/1] (short) (narrow) %v5244_v45, 8 }
0x1d6d   : > { %v5294_v10 = vpop.trf.xlu1 }
0x1d6e   : > { %10848 = vmatpush3.msra.mxu0 %v5294_v10 }
0x1d6f   : > { %10857 = vmatprep.subr.mxu0 %v11717_v6 }
0x1d71   : > { %v5326_v11 = vpop.trf.xlu0 }
0x1d72   : > { %10853 = vmatpush3.msra.mxu1 %v5326_v11 }
0x1d73   : > { %10862 = vmatprep.subr.mxu1 %v11717_v6 }
0x1d8c   : > { %v5231_v0 = vpop.permute.xlu0 %5230 }
0x1d8d   : > { %10850 = vmatmul.mubr.msk.f32.vlgmr.msra.gmra.mrb[42].mxu0 %vm566_vm3, %v5231_v0 }
0x1d8e   : > { %10859 = vmatprep.mubr.msk.f32.mxu0 %vm11716_vm0, %v11717_v6 }
0x1d90   : > { %v5233_v46 = vpop.permute.xlu0 %5232 }
0x1d91   : > { %10855 = vmatmul.mubr.msk.f32.vlgmr.msra.gmra.mrb[32].mxu1 %vm566_vm3, %v5233_v46 }
0x1d92   : > { %10864 = vmatprep.mubr.msk.f32.mxu1 %vm11716_vm0, %v11717_v6 }
0x1d94   : > { %v5235_v17 = vpop.permute.xlu0 %5234 }
0x1dc0   : > { %v5358_v20 = vpop.trf.xlu0 }
0x1dc1   : > { %10858 = vmatpush3.msra.mxu0 %v5358_v20 }
0x1dc2   : > { %10860 = vmatmul.mubr.msk.f32.vlgmr.msra.gmra.mrb[44].mxu0 %vm566_vm3, %v5235_v17  ;;  %10867 = vmatprep.subr.mxu0 %v11717_v6 }
0x1dc3   : > { %10869 = vmatprep.mubr.msk.f32.mxu0 %vm11716_vm0, %v11717_v6 }
0x1df5   : > { %v5442_v28 = vpop.f32.mrb[40].mxu0 }
0x1df6   : > { %v5662_v18 = vsel %vm860_vm5, %v5442_v28, -10000.0  ;;  %v10846_v34 = vpop.f32.mrb[41].mxu0 }
0x1df7   : > { %v5666_v57 = vsel %vm566_vm3, %v5662_v18, -inf }
0x1df8   : > { %5667 = vmax.xlane.f32.xlu0 %v5666_v57 }
0x1e60   : > { %v5514_v14 = vpop.f32.mrb[42].mxu0 }
0x1e61   : > { %v5663_v19 = vsel %vm860_vm5, %v5514_v14, -10000.0  ;;  %v10851_v13 = vpop.f32.mrb[43].mxu0 }
0x1e62   : > { %v5669_v37 = vsel %vm566_vm3, %v5663_v19, -inf }
0x1e63   : > { %5670 = vmax.xlane.f32.xlu1 %v5669_v37 }
0x1e64   : > { %v5586_v16 = vpop.f32.mrb[32].mxu1 }
0x1e65   : > { %v5664_v32 = vsel %vm860_vm5, %v5586_v16, -10000.0  ;;  %v10856_v41 = vpop.f32.mrb[33].mxu1 }
0x1e66   : > { %v5672_v42 = vsel %vm566_vm3, %v5664_v32, -inf }
0x1e67   : > { %5673 = vmax.xlane.f32.xlu0 %v5672_v42 }
0x1e74   : > { %5712 = vrot.lane.b32.xlu1 %v5238_v25, %s13225_s22 }
0x1e78   : > { %5716 = vrot.lane.b32.xlu1 %v5244_v45, %s13225_s22 }
0x1e85   : > { %v5668_v44 = vpop.xlane.xlu0 %5667 }
0x1e86   : > { %v5678_v47 = vsub.f32 %v5662_v18, %v5668_v44 }
0x1e88   : > { %v5682_v48 = vmul.f32 1.442695, %v5678_v47 }
0x1e8a   : > { %11593 = vpow2.f32 %v5682_v48 }
0x1e94   : > { %v11594_v50 = vpop.eup %11593 }
0x1e95   : > { %v5658_v22 = vpop.f32.mrb[44].mxu0  ;;  %v5690_v51 = vsel %vm566_vm3, %v11594_v50, 0.0 }
0x1e96   : > { %v5665_v30 = vsel %vm860_vm5, %v5658_v22, -10000.0  ;;  %v10861_v31 = vpop.f32.mrb[45].mxu0 }
0x1e97   : > { %v5675_v43 = vsel %vm566_vm3, %v5665_v30, -inf }
0x1e98   : > { %5676 = vmax.xlane.f32.xlu0 %v5675_v43 }
0x1eae   : > { %5710 = vrot.lane.b32.xlu0 %v12522_v23, %s13225_s22 }
0x1eb2   : > { %5714 = vrot.lane.b32.xlu0 %v5241_v29, %s13225_s22 }
0x1ed1   : > { %5691 = vadd.xlane.f32.xlu0 %v5690_v51 }
0x1ef0   : > { %v5671_v52 = vpop.xlane.xlu1 %5670 }
0x1ef1   : > { %v5679_v53 = vsub.f32 %v5663_v19, %v5671_v52 }
0x1ef3   : > { %v5684_v36 = vmul.f32 1.442695, %v5679_v53 }
0x1ef4   : > { %v5674_v54 = vpop.xlane.xlu0 %5673  ;;  %v5713_v24 = vpop.permute.xlu1 %5712 }
0x1ef5   : > { %11595 = vpow2.f32 %v5684_v36  ;;  %v5680_v55 = vsub.f32 %v5664_v32, %v5674_v54 }
0x1ef7   : > { %v5686_v1 = vmul.f32 1.442695, %v5680_v55 }
0x1ef8   : > { %v5717_v29 = vpop.permute.xlu1 %5716 }
0x1ef9   : > { %11597 = vpow2.f32 %v5686_v1 }
0x1eff   : > { %v11596_v58 = vpop.eup %11595 }
0x1f00   : > { %v5693_v59 = vsel %vm566_vm3, %v11596_v58, 0.0 }
0x1f01   : > { %5694 = vadd.xlane.f32.xlu1 %v5693_v59 }
0x1f03   : > { %v11598_v5 = vpop.eup %11597 }
0x1f04   : > { %v5696_v60 = vsel %vm566_vm3, %v11598_v5, 0.0 }
0x1f05   : > { %5697 = vadd.xlane.f32.xlu0 %v5696_v60 }
0x1f25   : > { %v5677_v63 = vpop.xlane.xlu0 %5676 }
0x1f26   : > { %v5681_v4 = vsub.f32 %v5665_v30, %v5677_v63 }
0x1f28   : > { %v5688_v8 = vmul.f32 1.442695, %v5681_v4 }
0x1f29   : > { %v5711_v7 = vpop.permute.xlu0 %5710 }
0x1f2a   : > { %11599 = vpow2.f32 %v5688_v8 }
0x1f2d   : > { %v5715_v62 = vpop.permute.xlu0 %5714 }
0x1f34   : > { %v11600_v21 = vpop.eup %11599  ;;  %5722 = vxpose.xlu1.b32.start.end [1/1] (short) (narrow) %v5711_v7, 8 }
0x1f35   : > { %v5699_v9 = vsel %vm566_vm3, %v11600_v21, 0.0 }
0x1f36   : > { %5700 = vadd.xlane.f32.xlu0 %v5699_v9 }
0x1f5e   : > { %v5692_v23 = vpop.xlane.xlu0 %5691 }
0x1f5f   : > { %11601 = vrcp.f32 %v5692_v23 }
0x1f63   : > { %5754 = vxpose.xlu0.b32.start.end [1/1] (short) (narrow) %v5713_v24, 8 }
0x1f67   : > { %5786 = vxpose.xlu0.b32.start.end [1/1] (short) (narrow) %v5715_v62, 8 }
0x1f69   : > { %v11602_v25 = vpop.eup %11601 }
0x1f6a   : > { %v5706_v35 = vmul.f32 %v11602_v25, %v11594_v50 }
0x1f6b   : > { %5818 = vxpose.xlu0.b32.start.end [1/1] (short) (narrow) %v5717_v29, 8 }
0x1f6c   : > { %10863 = vmatpush3.xpose.msk.msra.mxu1 %vm566_vm3, %v5706_v35 }
0x1f6d   : > { %10872 = vmatprep.subr.mxu1 %v11717_v6 }
0x1f8e   : > { %v5695_v38 = vpop.xlane.xlu1 %5694 }
0x1f8f   : > { %11603 = vrcp.f32 %v5695_v38 }
0x1f92   : > { %v5698_v45 = vpop.xlane.xlu0 %5697 }
0x1f93   : > { %11605 = vrcp.f32 %v5698_v45 }
0x1f99   : > { %v11604_v39 = vpop.eup %11603 }
0x1f9a   : > { %v5707_v12 = vmul.f32 %v11604_v39, %v11596_v58 }
0x1f9c   : > { %10868 = vmatpush3.xpose.msk.msra.mxu0 %vm566_vm3, %v5707_v12 }
0x1f9d   : > { %10877 = vmatprep.subr.mxu0 %v11717_v6  ;;  %v11606_v61 = vpop.eup %11605 }
0x1f9e   : > { %v5708_v11 = vmul.f32 %v11606_v61, %v11598_v5 }
0x1fb4   : > { %v5738_v10 = vpop.trf.xlu1 }
0x1fb5   : > { %10865 = vmatmul.mubr.msk.f32.vlgmr.msra.gmra.mrb[34].mxu1 %vm566_vm3, %v5738_v10 }
0x1fb6   : > { %10873 = vmatpush3.xpose.msk.msra.mxu1 %vm566_vm3, %v5708_v11  ;;  %10874 = vmatprep.mubr.msk.f32.mxu1 %vm11716_vm0, %v11717_v6 }
0x1fb7   : > { %11183 = vmatprep.subr.bf16.mxu1 %v11715_v3 }
0x1fc3   : > { %v5701_v0 = vpop.xlane.xlu0 %5700 }
0x1fc4   : > { %11607 = vrcp.f32 %v5701_v0 }
0x1fce   : > { %v11608_v46 = vpop.eup %11607 }
0x1fcf   : > { %v5709_v20 = vmul.f32 %v11608_v46, %v11600_v21 }
0x1fe3   : > { %v5770_v17 = vpop.trf.xlu0 }
0x1fe4   : > { %10870 = vmatmul.mubr.msk.f32.vlgmr.msra.gmra.mrb[46].mxu0 %vm566_vm3, %v5770_v17 }
0x1fe5   : > { %10878 = vmatpush3.xpose.msk.msra.mxu0 %vm566_vm3, %v5709_v20  ;;  %10879 = vmatprep.mubr.msk.f32.mxu0 %vm11716_vm0, %v11717_v6 }
0x1fe6   : > { %11189 = vmatprep.subr.bf16.mxu0 %v11715_v3 }
0x1fe7   : > { %v5802_v28 = vpop.trf.xlu0 }
0x1fe8   : > { %10875 = vmatmul.mubr.msk.f32.vlgmr.msra.gmra.mrb[36].mxu1 %vm566_vm3, %v5802_v28 }
0x1fe9   : > { %10890 = vmatprep.mubr.msk.f32.mxu1 %vm11716_vm0, %v11717_v6 }
0x1feb   : > { %v5834_v18 = vpop.trf.xlu0 }
0x1fec   : > { %10880 = vmatmul.mubr.msk.f32.vlgmr.msra.gmra.mrb[48].mxu0 %vm566_vm3, %v5834_v18 }
0x1fed   : > { %10901 = vmatprep.mubr.msk.f32.mxu0 %vm11716_vm0, %v11717_v6 }
0x2088   : > { %v5922_v34 = vpop.f32.mrb[34].mxu1 }
0x2089   : > { %6154 = vxpose.xlu1.b32.start.end [1/1] (short) (narrow) %v5922_v34, 8  ;;  %v10866_v57 = vpop.f32.mrb[35].mxu1 }
0x20b7   : > { %v5998_v14 = vpop.f32.mrb[46].mxu0 }
0x20b8   : > { %6186 = vxpose.xlu0.b32.start.end [1/1] (short) (narrow) %v5998_v14, 8  ;;  %v10871_v19 = vpop.f32.mrb[47].mxu0 }
0x20bb   : > { %v6074_v13 = vpop.f32.mrb[36].mxu1 }
0x20bc   : > { %6218 = vxpose.xlu1.b32.start.end [1/1] (short) (narrow) %v6074_v13, 8  ;;  %v10876_v37 = vpop.f32.mrb[37].mxu1 }
0x20bf   : > { %v6150_v16 = vpop.f32.mrb[48].mxu0 }
0x20c0   : > { %6250 = vxpose.xlu0.b32.start.end [1/1] (short) (narrow) %v6150_v16, 8  ;;  %v10881_v32 = vpop.f32.mrb[49].mxu0  ;;  %v10283_v16 = vld [vmem:[%s13189_s6 + $0x16] ss:$0 sm:$0xff] }
0x20da   : > { %11406 = vrot.lane.b32.xlu1 %v12471_v40, %s13230_s9 }
0x20e9   : > { %11411 = vrot.lane.b32.xlu0 %v12487_v49, %s13230_s9 }
0x2109   : > { %v6170_v41 = vpop.trf.xlu1 }
0x2138   : > { %v6202_v42 = vpop.trf.xlu0 }
0x213c   : > { %v6234_v22 = vpop.trf.xlu1 }
0x213d   : > { %v6282_v30 = vcombine.low %v6170_v41, %v6234_v22  ;;  %v6283_v31 = vcombine.high %v6170_v41, %v6234_v22 }
0x213f   : > { %v6290_v48 = vrot.slane %v6282_v30, %v11965_v56  ;;  %v6297_v50 = vrot.slane %v6283_v31, %v11965_v56 }
0x2140   : > { %v6266_v43 = vpop.trf.xlu0 }
0x2141   : > { %v6298_v44 = vcombine.low %v6202_v42, %v6266_v43  ;;  %v6299_v47 = vcombine.high %v6202_v42, %v6266_v43 }
0x2143   : > { %v6306_v51 = vrot.slane %v6298_v44, %v11965_v56  ;;  %v6313_v52 = vrot.slane %v6299_v47, %v11965_v56 }
0x2145   : > { %v6314_v40 = vcombine.low %v6290_v48, %v6306_v51  ;;  %v6315_v53 = vcombine.high %v6290_v48, %v6306_v51  ;;  %v6330_v36 = vcombine.low %v6297_v50, %v6313_v52  ;;  %v6331_v49 = vcombine.high %v6297_v50, %v6313_v52  ;;  %v12634_v50 = vld [vmem:[%s13187_s4 + $0x28] sm:$0xff]  ;;  %v12639_v51 = vld [vmem:[%s13187_s4 + $0x70] sm:$0xff]  ;;  %v12646_v52 = vld [vmem:[%s13187_s4 + $0xb8] sm:$0xff] }
0x2147   : > { %v6322_v54 = vrot.slane %v6314_v40, %v11968_v2  ;;  %v6329_v55 = vrot.slane %v6315_v53, %v11968_v2  ;;  %v6338_v1 = vrot.slane %v6330_v36, %v11968_v2  ;;  %v6345_v58 = vrot.slane %v6331_v49, %v11968_v2  ;;  %v12651_v40 = vld [vmem:[%s13187_s4 + $0x100] sm:$0xff]  ;;  %v6641_v49 = vld [vmem:[%s13188_s5 + $0x8] sm:$0xff] }
0x2148   : > { %v11193_v53 = vpack.c.bf16 %v12651_v40, %v12646_v52  ;;  %v6640_v36 = vld [vmem:[%s13188_s5] sm:$0xff] }
0x2149   : > { %v6350_v59 = vcombine.low %v6322_v54, %v6329_v55  ;;  %v10281_v5 = vcombine.high %v6322_v54, %v6329_v55  ;;  %v6366_v60 = vcombine.low %v6338_v1, %v6345_v58  ;;  %v10282_v63 = vcombine.high %v6338_v1, %v6345_v58  ;;  %v6642_v54 = vld [vmem:[%s13188_s5 + $0x10] sm:$0xff]  ;;  %v6643_v1 = vld [vmem:[%s13188_s5 + $0x18] sm:$0xff]  ;;  %v6644_v58 = vld [vmem:[%s13188_s5 + $0x20] sm:$0xff] }
0x214a   : > { %v11415_v55 = vpack.i.bf16 %v6641_v49, %v6640_v36 }
0x214b   : > { %v6357_v4 = vrot.slane %v6350_v59, %v11965_v56  ;;  %v6365_v8 = vrot.slane %v10281_v5, %v11965_v56  ;;  %v6373_v7 = vrot.slane %v6366_v60, %v11965_v56  ;;  %v6381_v21 = vrot.slane %v10282_v63, %v11965_v56  ;;  %v6645_v59 = vld [vmem:[%s13188_s5 + $0x28] sm:$0xff]  ;;  %v6646_v60 = vld [vmem:[%s13188_s5 + $0x30] sm:$0xff]  ;;  %v6647_v63 = vld [vmem:[%s13188_s5 + $0x38] sm:$0xff] }
0x214c   : > { %v11407_v9 = vpop.permute.xlu1 %11406  ;;  %v11420_v5 = vpack.i.bf16 %v6643_v1, %v6642_v54 }
0x214d   : > { %v6382_v62 = vcombine.low %v6357_v4, %v6365_v8  ;;  %v6398_v23 = vcombine.low %v6373_v7, %v6381_v21  ;;  %v6383_v24 = vcombine.high %v6357_v4, %v6365_v8  ;;  %v6399_v25 = vcombine.high %v6373_v7, %v6381_v21 }
0x214e   : > { %v11409_v29 = vunpack.i.h.bf16 %v11407_v9  ;;  %v11408_v35 = vunpack.i.l.bf16 %v11407_v9  ;;  %v11430_v4 = vpack.i.bf16 %v6647_v63, %v6646_v60  ;;  %v11425_v8 = vpack.i.bf16 %v6645_v59, %v6644_v58 }
0x214f   : > { %v6390_v38 = vrot.slane %v6382_v62, %v11968_v2  ;;  %v6406_v39 = vrot.slane %v6398_v23, %v11968_v2  ;;  %v6397_v61 = vrot.slane %v6383_v24, %v11968_v2  ;;  %v6413_v10 = vrot.slane %v6399_v25, %v11968_v2 }
0x2150   : > { %v11184_v12 = vpack.c.bf16 %v11409_v29, %v11408_v35 }
0x2151   : > { %v6415_v45 = vcombine.high %v6390_v38, %v6406_v39  ;;  %v6414_v11 = vcombine.low %v6390_v38, %v6406_v39  ;;  %v6416_v0 = vcombine.low %v6397_v61, %v6413_v10  ;;  %v6417_v46 = vcombine.high %v6397_v61, %v6413_v10 }
0x2152   : > { %11185 = vmatpush3.bf16.msra.mxu1 %v11184_v12  ;;  %v10285_v12 = vld [vmem:[%s13189_s6 + $0x17] ss:$0 sm:$0xff] }
0x2153   : > { %6419 = vrot.lane.b32.xlu1 %v6415_v45, %s13220_s14  ;;  %11186 = vmatprep.subr.bf16.mxu1 %v11715_v3 }
0x2157   : > { %6423 = vrot.lane.b32.xlu1 %v6416_v0, %s13221_s15 }
0x215b   : > { %6427 = vrot.lane.b32.xlu1 %v6417_v46, %s13222_s13  ;;  %v11412_v17 = vpop.permute.xlu0 %11411 }
0x215c   : > { %v11414_v20 = vunpack.i.h.bf16 %v11412_v17  ;;  %v11413_v28 = vunpack.i.l.bf16 %v11412_v17 }
0x215e   : > { %v11187_v18 = vpack.c.bf16 %v11414_v20, %v11413_v28 }
0x2160   : > { %11188 = vmatpush3.bf16.msra.mxu1 %v11187_v18 }
0x2161   : > { %11195 = vmatprep.subr.bf16.mxu1 %v11715_v3 }
0x21c5   : > { %v6420_v34 = vpop.permute.xlu1 %6419 }
0x21c6   : > { %v6430_v14 = vsel %vm566_vm3, %v6414_v11, %v6420_v34  ;;  %v10286_v11 = vld [vmem:[%s13189_s6 + $0x18] ss:$0 sm:$0xff] }
0x21c9   : > { %v6424_v57 = vpop.permute.xlu1 %6423 }
0x21ca   : > { %v6431_v19 = vsel %vm1630_vm6, %v6430_v14, %v6424_v57 }
0x21cd   : > { %v6428_v13 = vpop.permute.xlu1 %6427 }
0x21ce   : > { %v6432_v37 = vsel %vm1632_vm7, %v6431_v19, %v6428_v13  ;;  %v10287_v19 = vld [vmem:[%s13189_s6 + $0x19] ss:$0 sm:$0xff] }
0x21cf   : > { %10891 = vmatmul.mubr.msk.f32.vlgmr.msra.gmra.mrb[38].mxu1 %vm345_vm1, %v6432_v37 }
0x21d0   : > { %10920 = vmatprep.mubr.msk.f32.mxu1 %vm11716_vm0, %v11717_v6 }
0x22a2   : > { %v6527_v32 = vpop.f32.mrb[38].mxu1 }
0x22a3   : > { %v6528_v41 = vadd.f32 %v10283_v16, %v6527_v32  ;;  %v10892_v42 = vpop.f32.mrb[39].mxu1 }
0x22a5   : > { %v6531_v22 = vadd.f32 %v6528_v41, %v12513_v15  ;;  %v11190_v15 = vpack.c.bf16 %v12639_v51, %v12634_v50  ;;  %v12707_v41 = vld [vmem:[%s13187_s4 + $0x30] sm:$0xff] }
0x22a6   : > { %v11435_v42 = vpack.i.bf16 %v12707_v41, %v12634_v50 }
0x22a7   : > { %v6534_v30 = vsel %vm345_vm1, %v6531_v22, 0.0  ;;  %11191 = vmatpush3.bf16.msra.mxu0 %v11190_v15  ;;  %v12727_v15 = vld [vmem:[%s13187_s4 + $0xc0] sm:$0xff] }
0x22a8   : > { %6535 = vadd.xlane.f32.xlu1 %v6534_v30  ;;  %11192 = vmatprep.subr.bf16.mxu0 %v11715_v3 }
0x22ab   : > { %11194 = vmatpush3.bf16.msra.mxu0 %v11193_v53  ;;  %v11445_v53 = vpack.i.bf16 %v12727_v15, %v12646_v52 }
0x22ac   : > { %11207 = vmatprep.subr.bf16.mxu0 %v11715_v3 }
0x22b9   : > { %11421 = vrot.lane.b32.xlu1 %v11420_v5, %s13229_s19 }
0x22bd   : > { %11426 = vrot.lane.b32.xlu1 %v11425_v8, %s13229_s19 }
0x2335   : > { %v6536_v31 = vpop.xlane.xlu1 %6535 }
0x2336   : > { %v6537_v43 = vmul.f32 0.03125, %v6536_v31 }
0x2338   : > { %v6538_v44 = vsub.f32 %v6531_v22, %v6537_v43  ;;  %v10289_v22 = vld [vmem:[%s13189_s6 + $0x1a] ss:$0 sm:$0xff] }
0x2339   : > { %v11422_v25 = vpop.permute.xlu1 %11421 }
0x233a   : > { %v6539_v47 = vmul.f32 %v6538_v44, %v6538_v44  ;;  %v11424_v29 = vunpack.i.h.bf16 %v11422_v25  ;;  %v11423_v35 = vunpack.i.l.bf16 %v11422_v25 }
0x233c   : > { %v6540_v48 = vsel %vm345_vm1, %v6539_v47, 0.0  ;;  %v11199_v61 = vpack.c.bf16 %v11424_v29, %v11423_v35 }
0x233d   : > { %6541 = vadd.xlane.f32.xlu0 %v6540_v48  ;;  %v11427_v10 = vpop.permute.xlu1 %11426  ;;  %v12719_v48 = vld [vmem:[%s13187_s4 + $0x78] sm:$0xff] }
0x233e   : > { %v11429_v0 = vunpack.i.h.bf16 %v11427_v10  ;;  %v11428_v46 = vunpack.i.l.bf16 %v11427_v10  ;;  %v11440_v50 = vpack.i.bf16 %v12719_v48, %v12639_v51  ;;  %v10291_v10 = vld [vmem:[%s13189_s6 + $0x1b] ss:$0 sm:$0xff] }
0x2340   : > { %v11202_v18 = vpack.c.bf16 %v11429_v0, %v11428_v46  ;;  %v10292_v0 = vld [vmem:[%s13189_s6 + $0x1c] ss:$0 sm:$0xff] }
0x2353   : > { %11416 = vrot.lane.b32.xlu0 %v11415_v55, %s13229_s19 }
0x2357   : > { %11431 = vrot.lane.b32.xlu0 %v11430_v4, %s13229_s19 }
0x235b   : > { %11436 = vrot.lane.b32.xlu0 %v11435_v42, %s13229_s19 }
0x23ca   : > { %v6542_v7 = vpop.xlane.xlu0 %6541 }
0x23cb   : > { %v6543_v21 = vmul.f32 0.03125, %v6542_v7  ;;  %v12739_v7 = vld [vmem:[%s13187_s4 + $0x108] sm:$0xff] }
0x23cd   : > { %v6544_v9 = vadd.f32 1e-12, %v6543_v21  ;;  %v11450_v21 = vpack.i.bf16 %v12739_v7, %v12651_v40 }
0x23ce   : > { %v11417_v62 = vpop.permute.xlu0 %11416 }
0x23cf   : > { %11609 = vrsqrt.f32 %v6544_v9  ;;  %v11419_v23 = vunpack.i.h.bf16 %v11417_v62  ;;  %v11418_v24 = vunpack.i.l.bf16 %v11417_v62 }
0x23d1   : > { %v11196_v38 = vpack.c.bf16 %v11419_v23, %v11418_v24 }
0x23d2   : > { %v11432_v17 = vpop.permute.xlu0 %11431 }
0x23d3   : > { %11197 = vmatpush3.bf16.msra.mxu1 %v11196_v38  ;;  %v11434_v34 = vunpack.i.h.bf16 %v11432_v17  ;;  %v11433_v57 = vunpack.i.l.bf16 %v11432_v17 }
0x23d4   : > { %11198 = vmatprep.subr.bf16.mxu1 %v11715_v3 }
0x23d5   : > { %v11205_v14 = vpack.c.bf16 %v11434_v34, %v11433_v57 }
0x23d6   : > { %v11437_v36 = vpop.permute.xlu0 %11436 }
0x23d7   : > { %11200 = vmatpush3.bf16.msra.mxu1 %v11199_v61  ;;  %v11439_v55 = vunpack.i.h.bf16 %v11437_v36  ;;  %v11438_v1 = vunpack.i.l.bf16 %v11437_v36 }
0x23d8   : > { %11201 = vmatprep.subr.bf16.mxu1 %v11715_v3 }
0x23d9   : > { %v11610_v39 = vpop.eup %11609  ;;  %v6821_v5 = vsel %vm1855_vm8, %v11438_v1, %v11439_v55 }
0x23da   : > { %v6546_v45 = vmul.f32 %v11610_v39, %v6538_v44 }
0x23db   : > { %11203 = vmatpush3.bf16.msra.mxu1 %v11202_v18 }
0x23dc   : > { %v6551_v20 = vmul.f32 %v10285_v12, %v6546_v45  ;;  %11204 = vmatprep.subr.bf16.mxu1 %v11715_v3 }
0x23de   : > { %v6556_v28 = vadd.f32 %v10286_v11, %v6551_v20  ;;  %v10293_v20 = vld [vmem:[%s13189_s6 + $0x1d] ss:$0 sm:$0xff] }
0x23df   : > { %11206 = vmatpush3.bf16.msra.mxu1 %v11205_v14 }
0x23e0   : > { %10902 = vmatmul.mubr.msk.f32.vlgmr.msra.gmra.mrb[50].mxu0 %vm345_vm1, %v6556_v28  ;;  %10944 = vmatprep.subr.mxu1 %v11717_v6 }
0x23e1   : > { %10931 = vmatprep.mubr.msk.f32.mxu0 %vm11716_vm0, %v11717_v6 }
0x24b3   : > { %v6635_v13 = vpop.f32.mrb[50].mxu0 }
0x24b4   : > { %v6636_v37 = vadd.f32 %v10287_v19, %v6635_v13  ;;  %v10903_v16 = vpop.f32.mrb[51].mxu0 }
0x24b6   : > { %v6639_v32 = vmax.f32 %v6636_v37, 0.0 }
0x24b8   : > { %10921 = vmatmul.mubr.msk.f32.vlgmr.msra.gmra.mrb[40].mxu1 %vm1855_vm8, %v6639_v32 }
0x24b9   : > { %10946 = vmatprep.mubr.msk.f32.mxu1 %vm11716_vm0, %v11717_v6 }
0x258b   : > { %v6754_v30 = vpop.f32.mrb[40].mxu1 }
0x258c   : > { %v6755_v31 = vadd.f32 %v10289_v22, %v6754_v30  ;;  %v10922_v43 = vpop.f32.mrb[41].mxu1 }
0x258e   : > { %v6758_v44 = vadd.f32 %v6755_v31, %v6556_v28 }
0x2590   : > { %v6761_v47 = vsel %vm345_vm1, %v6758_v44, 0.0 }
0x2591   : > { %6762 = vadd.xlane.f32.xlu1 %v6761_v47 }
0x25a2   : > { %11441 = vrot.lane.b32.xlu1 %v11440_v50, %s13229_s19 }
0x25a6   : > { %11446 = vrot.lane.b32.xlu1 %v11445_v53, %s13229_s19 }
0x261e   : > { %v6763_v49 = vpop.xlane.xlu1 %6762 }
0x261f   : > { %v6764_v54 = vmul.f32 0.03125, %v6763_v49 }
0x2621   : > { %v6765_v58 = vsub.f32 %v6758_v44, %v6764_v54 }
0x2622   : > { %v11442_v59 = vpop.permute.xlu1 %11441 }
0x2623   : > { %v6766_v51 = vmul.f32 %v6765_v58, %v6765_v58  ;;  %v11444_v60 = vunpack.i.h.bf16 %v11442_v59  ;;  %v11443_v63 = vunpack.i.l.bf16 %v11442_v59 }
0x2625   : > { %v6767_v4 = vsel %vm345_vm1, %v6766_v51, 0.0  ;;  %v6822_v8 = vsel %vm1855_vm8, %v11443_v63, %v11444_v60 }
0x2626   : > { %6768 = vadd.xlane.f32.xlu0 %v6767_v4  ;;  %v11208_v52 = vpack.c.bf16 %v6822_v8, %v6821_v5  ;;  %v11447_v9 = vpop.permute.xlu1 %11446 }
0x2627   : > { %v11449_v24 = vunpack.i.h.bf16 %v11447_v9  ;;  %v11448_v25 = vunpack.i.l.bf16 %v11447_v9 }
0x2628   : > { %11209 = vmatpush3.bf16.msra.mxu0 %v11208_v52 }
0x2629   : > { %11210 = vmatprep.subr.bf16.mxu0 %v11715_v3  ;;  %v6823_v12 = vsel %vm1855_vm8, %v11448_v25, %v11449_v24 }
0x263c   : > { %11451 = vrot.lane.b32.xlu0 %v11450_v21, %s13229_s19 }
0x26b3   : > { %v6769_v62 = vpop.xlane.xlu0 %6768 }
0x26b4   : > { %v6770_v23 = vmul.f32 0.03125, %v6769_v62 }
0x26b6   : > { %v6771_v29 = vadd.f32 1e-12, %v6770_v23 }
0x26b7   : > { %v11452_v35 = vpop.permute.xlu0 %11451 }
0x26b8   : > { %11611 = vrsqrt.f32 %v6771_v29  ;;  %v11454_v38 = vunpack.i.h.bf16 %v11452_v35  ;;  %v11453_v39 = vunpack.i.l.bf16 %v11452_v35 }
0x26ba   : > { %v6824_v45 = vsel %vm1855_vm8, %v11453_v39, %v11454_v38 }
0x26bb   : > { %v11211_v61 = vpack.c.bf16 %v6824_v45, %v6823_v12 }
0x26bd   : > { %11212 = vmatpush3.bf16.msra.mxu0 %v11211_v61 }
0x26be   : > { %10934 = vmatprep.subr.mxu0 %v11717_v6 }
0x26c2   : > { %v11612_v40 = vpop.eup %11611 }
0x26c3   : > { %v6773_v11 = vmul.f32 %v11612_v40, %v6765_v58 }
0x26c5   : > { %v6778_v46 = vmul.f32 %v10291_v10, %v6773_v11 }
0x26c7   : > { %v12753_v17 = vadd.f32 %v10292_v0, %v6778_v46 }
0x26c9   : > { %10932 = vmatmul.mubr.msk.f32.vlgmr.msra.gmra.mrb[52].mxu0 %vm345_vm1, %v12753_v17 }
0x26ca   : > { %10936 = vmatprep.mubr.msk.f32.mxu0 %vm11716_vm0, %v11717_v6 }
0x279c   : > { %v6898_v28 = vpop.f32.mrb[52].mxu0 }
0x279d   : > { %v6899_v18 = vadd.f32 %v10293_v20, %v6898_v28  ;;  %v10933_v34 = vpop.f32.mrb[53].mxu0 }
0x279f   : > { %6905 = vrot.lane.b32.xlu0 %v6899_v18, %s13231_s17  ;;  %6903 = vrot.lane.b32.xlu1 %v6899_v18, %s13232_s2 }
0x27a3   : > { %6909 = vrot.lane.b32.xlu0 %v6899_v18, %s13225_s22  ;;  %6907 = vrot.lane.b32.xlu1 %v6899_v18, %s13226_s16 }
0x2811   : > { %v6906_v57 = vpop.permute.xlu0 %6905  ;;  %v6904_v14 = vpop.permute.xlu1 %6903 }
0x2812   : > { %6913 = vrot.lane.b32.xlu0 %v6906_v57, %s13225_s22  ;;  %6911 = vrot.lane.b32.xlu1 %v6904_v14, %s13225_s22 }
0x2815   : > { %v6908_v19 = vpop.permute.xlu1 %6907  ;;  %v6910_v13 = vpop.permute.xlu0 %6909 }
0x2816   : > { %6915 = vrot.lane.b32.xlu1 %v6908_v19, %s13225_s22 }
0x2830   : > { %6921 = vxpose.xlu0.b32.start.end [1/1] (short) (narrow) %v6910_v13, 8 }
0x2884   : > { %v6914_v37 = vpop.permute.xlu0 %6913  ;;  %v6912_v16 = vpop.permute.xlu1 %6911 }
0x2885   : > { %6985 = vxpose.xlu0.b32.start.end [1/1] (short) (narrow) %v6914_v37, 8  ;;  %6953 = vxpose.xlu1.b32.start.end [1/1] (short) (narrow) %v6912_v16, 8 }
0x2888   : > { %v6916_v32 = vpop.permute.xlu1 %6915 }
0x2889   : > { %7017 = vxpose.xlu0.b32.start.end [1/1] (short) (narrow) %v6916_v32, 8 }
0x28b0   : > { %v6937_v42 = vpop.trf.xlu0 }
0x28b1   : > { %10935 = vmatpush3.msra.mxu0 %v6937_v42 }
0x28b2   : > { %10937 = vmatmul.mubr.msk.f32.vlgmr.msra.gmra.mrb[54].mxu0 %vm566_vm3, %v6899_v18  ;;  %10939 = vmatprep.subr.mxu0 %v11717_v6 }
0x28b3   : > { %10941 = vmatprep.mubr.msk.f32.mxu0 %vm11716_vm0, %v11717_v6 }
0x2905   : > { %v7001_v22 = vpop.trf.xlu0  ;;  %v6969_v30 = vpop.trf.xlu1 }
0x2906   : > { %10940 = vmatpush3.msra.mxu0 %v6969_v30  ;;  %10945 = vmatpush3.msra.mxu1 %v7001_v22 }
0x2907   : > { %10942 = vmatmul.mubr.msk.f32.vlgmr.msra.gmra.mrb[56].mxu0 %vm566_vm3, %v6904_v14  ;;  %10947 = vmatmul.mubr.msk.f32.vlgmr.msra.gmra.mrb[42].mxu1 %vm566_vm3, %v6906_v57 }
0x2908   : > { %10949 = vmatprep.subr.mxu0 %v11717_v6  ;;  %10951 = vmatprep.mubr.msk.f32.mxu0 %vm11716_vm0, %v11717_v6 }
0x2909   : > { %v7033_v31 = vpop.trf.xlu0  ;;  %10954 = vmatprep.subr.mxu1 %v11717_v6  ;;  %10956 = vmatprep.mubr.msk.f32.mxu1 %vm11716_vm0, %v11717_v6 }
0x290a   : > { %10950 = vmatpush3.msra.mxu0 %v7033_v31 }
0x290b   : > { %10952 = vmatmul.mubr.msk.f32.vlgmr.msra.gmra.mrb[58].mxu0 %vm566_vm3, %v6908_v19  ;;  %10959 = vmatprep.subr.mxu0 %v11717_v6 }
0x290c   : > { %10961 = vmatprep.mubr.msk.f32.mxu0 %vm11716_vm0, %v11717_v6 }
0x2985   : > { %v7117_v43 = vpop.f32.mrb[54].mxu0 }
0x2986   : > { %v7337_v44 = vsel %vm12377_vm11, %v7117_v43, -10000.0  ;;  %v10938_v47 = vpop.f32.mrb[55].mxu0 }
0x2987   : > { %v7341_v50 = vsel %vm566_vm3, %v7337_v44, -inf }
0x2988   : > { %7342 = vmax.xlane.f32.xlu0 %v7341_v50 }
0x29da   : > { %v7189_v53 = vpop.f32.mrb[56].mxu0  ;;  %v7261_v36 = vpop.f32.mrb[42].mxu1 }
0x29db   : > { %v7338_v49 = vsel %vm12377_vm11, %v7189_v53, -10000.0  ;;  %v10943_v54 = vpop.f32.mrb[57].mxu0  ;;  %v10948_v55 = vpop.f32.mrb[43].mxu1  ;;  %v7339_v58 = vsel %vm12377_vm11, %v7261_v36, -10000.0 }
0x29dc   : > { %v7344_v1 = vsel %vm566_vm3, %v7338_v49, -inf  ;;  %v7347_v60 = vsel %vm566_vm3, %v7339_v58, -inf }
0x29dd   : > { %7345 = vmax.xlane.f32.xlu1 %v7344_v1 }
0x29de   : > { %v7333_v59 = vpop.f32.mrb[58].mxu0 }
0x29df   : > { %v7340_v51 = vsel %vm12377_vm11, %v7333_v59, -10000.0  ;;  %v10953_v5 = vpop.f32.mrb[59].mxu0  ;;  %v12827_v59 = vpack.i.bf16 %v12719_v48, %v12707_v41 }
0x29e0   : > { %v7350_v63 = vsel %vm566_vm3, %v7340_v51, -inf  ;;  %v12838_v5 = vld [vmem:[%s13187_s4 + $0x38] sm:$0xff] }
0x29e1   : > { %7348 = vmax.xlane.f32.xlu1 %v7347_v60  ;;  %7351 = vmax.xlane.f32.xlu0 %v7350_v63  ;;  %v11465_v60 = vpack.i.bf16 %v12838_v5, %v12707_v41  ;;  %v12847_v63 = vld [vmem:[%s13187_s4 + $0x80] sm:$0xff] }
0x29f2   : > { %7385 = vrot.lane.b32.xlu1 %v6899_v18, %s13229_s19 }
0x29f6   : > { %7389 = vrot.lane.b32.xlu1 %v6906_v57, %s13229_s19 }
0x29f7   : > { %7387 = vrot.lane.b32.xlu0 %v6904_v14, %s13229_s19 }
0x29fa   : > { %7391 = vrot.lane.b32.xlu1 %v6908_v19, %s13229_s19 }
0x2a15   : > { %v7343_v4 = vpop.xlane.xlu0 %7342 }
0x2a16   : > { %v7353_v8 = vsub.f32 %v7337_v44, %v7343_v4  ;;  %v11470_v4 = vpack.i.bf16 %v12847_v63, %v12719_v48 }
0x2a18   : > { %v7357_v52 = vmul.f32 1.442695, %v7353_v8  ;;  %v12855_v8 = vld [vmem:[%s13187_s4 + $0xc8] sm:$0xff] }
0x2a19   : > { %v11475_v41 = vpack.i.bf16 %v12855_v8, %v12727_v15 }
0x2a1a   : > { %11613 = vpow2.f32 %v7357_v52  ;;  %v12863_v52 = vld [vmem:[%s13187_s4 + $0x110] sm:$0xff] }
0x2a1b   : > { %v11480_v48 = vpack.i.bf16 %v12863_v52, %v12739_v7 }
0x2a24   : > { %v11614_v27 = vpop.eup %11613 }
0x2a25   : > { %v7365_v21 = vsel %vm566_vm3, %v11614_v27, 0.0 }
0x2a26   : > { %7366 = vadd.xlane.f32.xlu0 %v7365_v21 }
0x2a6a   : > { %v7346_v9 = vpop.xlane.xlu1 %7345 }
0x2a6b   : > { %v7354_v62 = vsub.f32 %v7338_v49, %v7346_v9 }
0x2a6d   : > { %v7359_v23 = vmul.f32 1.442695, %v7354_v62 }
0x2a6e   : > { %v7349_v24 = vpop.xlane.xlu1 %7348  ;;  %v7352_v25 = vpop.xlane.xlu0 %7351 }
0x2a6f   : > { %11615 = vpow2.f32 %v7359_v23  ;;  %v7355_v29 = vsub.f32 %v7339_v58, %v7349_v24  ;;  %v7356_v35 = vsub.f32 %v7340_v51, %v7352_v25  ;;  %v12833_v51 = vpack.i.bf16 %v12739_v7, %v12727_v15 }
0x2a71   : > { %v7361_v38 = vmul.f32 1.442695, %v7355_v29  ;;  %v7363_v39 = vmul.f32 1.442695, %v7356_v35 }
0x2a72   : > { %v7386_v0 = vpop.permute.xlu1 %7385  ;;  %v7388_v46 = vpop.permute.xlu0 %7387 }
0x2a73   : > { %11617 = vpow2.f32 %v7361_v38 }
0x2a74   : > { %11619 = vpow2.f32 %v7363_v39 }
0x2a76   : > { %v7390_v20 = vpop.permute.xlu1 %7389 }
0x2a79   : > { %v11616_v12 = vpop.eup %11615 }
0x2a7a   : > { %v7368_v45 = vsel %vm566_vm3, %v11616_v12, 0.0  ;;  %v7392_v18 = vpop.permute.xlu1 %7391 }
0x2a7b   : > { %7369 = vadd.xlane.f32.xlu1 %v7368_v45 }
0x2a7d   : > { %v11618_v61 = vpop.eup %11617 }
0x2a7e   : > { %v7371_v40 = vsel %vm566_vm3, %v11618_v61, 0.0  ;;  %v11620_v10 = vpop.eup %11619 }
0x2a7f   : > { %7372 = vadd.xlane.f32.xlu0 %v7371_v40  ;;  %v7374_v11 = vsel %vm566_vm3, %v11620_v10, 0.0 }
0x2a83   : > { %7375 = vadd.xlane.f32.xlu0 %v7374_v11 }
0x2aae   : > { %7397 = vxpose.xlu1.b32.start.end [1/1] (short) (narrow) %v7386_v0, 8 }
0x2ab0   : > { %7429 = vxpose.xlu0.b32.start.end [1/1] (short) (narrow) %v7388_v46, 8 }
0x2ab3   : > { %v7367_v28 = vpop.xlane.xlu0 %7366 }
0x2ab4   : > { %11621 = vrcp.f32 %v7367_v28  ;;  %7461 = vxpose.xlu0.b32.start.end [1/1] (short) (narrow) %v7390_v20, 8 }
0x2ab8   : > { %7493 = vxpose.xlu0.b32.start.end [1/1] (short) (narrow) %v7392_v18, 8 }
0x2abe   : > { %v11622_v34 = vpop.eup %11621 }
0x2abf   : > { %v7381_v57 = vmul.f32 %v11622_v34, %v11614_v27 }
0x2ac1   : > { %10955 = vmatpush3.xpose.msk.msra.mxu1 %vm566_vm3, %v7381_v57 }
0x2ac2   : > { %10964 = vmatprep.subr.mxu1 %v11717_v6 }
0x2b08   : > { %v7370_v14 = vpop.xlane.xlu1 %7369 }
0x2b09   : > { %11623 = vrcp.f32 %v7370_v14 }
0x2b0c   : > { %v7373_v37 = vpop.xlane.xlu0 %7372 }
0x2b0d   : > { %11625 = vrcp.f32 %v7373_v37 }
0x2b10   : > { %v7376_v16 = vpop.xlane.xlu0 %7375 }
0x2b11   : > { %11627 = vrcp.f32 %v7376_v16 }
0x2b13   : > { %v11624_v19 = vpop.eup %11623 }
0x2b14   : > { %v7382_v13 = vmul.f32 %v11624_v19, %v11616_v12 }
0x2b16   : > { %10960 = vmatpush3.xpose.msk.msra.mxu0 %vm566_vm3, %v7382_v13 }
0x2b17   : > { %10969 = vmatprep.subr.mxu0 %v11717_v6  ;;  %v11626_v32 = vpop.eup %11625 }
0x2b18   : > { %v7383_v22 = vmul.f32 %v11626_v32, %v11618_v61 }
0x2b1b   : > { %v11628_v42 = vpop.eup %11627 }
0x2b1c   : > { %v7384_v31 = vmul.f32 %v11628_v42, %v11620_v10 }
0x2b2e   : > { %v7413_v30 = vpop.trf.xlu1 }
0x2b2f   : > { %10957 = vmatmul.mubr.msk.f32.vlgmr.msra.gmra.mrb[44].mxu1 %vm566_vm3, %v7413_v30 }
0x2b30   : > { %10965 = vmatpush3.xpose.msk.msra.mxu1 %vm566_vm3, %v7383_v22  ;;  %v7445_v43 = vpop.trf.xlu0  ;;  %10966 = vmatprep.mubr.msk.f32.mxu1 %vm11716_vm0, %v11717_v6 }
0x2b31   : > { %10962 = vmatmul.mubr.msk.f32.vlgmr.msra.gmra.mrb[60].mxu0 %vm566_vm3, %v7445_v43  ;;  %11213 = vmatprep.subr.bf16.mxu1 %v11715_v3 }
0x2b32   : > { %10970 = vmatpush3.xpose.msk.msra.mxu0 %vm566_vm3, %v7384_v31  ;;  %10971 = vmatprep.mubr.msk.f32.mxu0 %vm11716_vm0, %v11717_v6 }
0x2b33   : > { %11219 = vmatprep.subr.bf16.mxu0 %v11715_v3 }
0x2b34   : > { %v7477_v44 = vpop.trf.xlu0 }
0x2b35   : > { %10967 = vmatmul.mubr.msk.f32.vlgmr.msra.gmra.mrb[46].mxu1 %vm566_vm3, %v7477_v44 }
0x2b36   : > { %10982 = vmatprep.mubr.msk.f32.mxu1 %vm11716_vm0, %v11717_v6 }
0x2b38   : > { %v7509_v47 = vpop.trf.xlu0 }
0x2b39   : > { %10972 = vmatmul.mubr.msk.f32.vlgmr.msra.gmra.mrb[62].mxu0 %vm566_vm3, %v7509_v47 }
0x2b3a   : > { %10993 = vmatprep.mubr.msk.f32.mxu0 %vm11716_vm0, %v11717_v6 }
0x2c02   : > { %v7597_v50 = vpop.f32.mrb[44].mxu1 }
0x2c03   : > { %7829 = vxpose.xlu1.b32.start.end [1/1] (short) (narrow) %v7597_v50, 8  ;;  %v10958_v53 = vpop.f32.mrb[45].mxu1 }
0x2c04   : > { %v7673_v36 = vpop.f32.mrb[60].mxu0 }
0x2c05   : > { %7861 = vxpose.xlu0.b32.start.end [1/1] (short) (narrow) %v7673_v36, 8  ;;  %v10963_v49 = vpop.f32.mrb[61].mxu0 }
0x2c08   : > { %v7749_v54 = vpop.f32.mrb[46].mxu1 }
0x2c09   : > { %7893 = vxpose.xlu1.b32.start.end [1/1] (short) (narrow) %v7749_v54, 8  ;;  %v10968_v55 = vpop.f32.mrb[47].mxu1 }
0x2c0c   : > { %v7825_v1 = vpop.f32.mrb[62].mxu0 }
0x2c0d   : > { %7925 = vxpose.xlu0.b32.start.end [1/1] (short) (narrow) %v7825_v1, 8  ;;  %v10973_v58 = vpop.f32.mrb[63].mxu0 }
0x2c27   : > { %11456 = vrot.lane.b32.xlu1 %v12827_v59, %s13225_s22 }
0x2c36   : > { %11461 = vrot.lane.b32.xlu0 %v12833_v51, %s13225_s22 }
0x2c3a   : > { %11466 = vrot.lane.b32.xlu0 %v11465_v60, %s13230_s9 }
0x2c3e   : > { %11471 = vrot.lane.b32.xlu0 %v11470_v4, %s13230_s9 }
0x2c42   : > { %11476 = vrot.lane.b32.xlu0 %v11475_v41, %s13230_s9 }
0x2c46   : > { %11481 = vrot.lane.b32.xlu0 %v11480_v48, %s13230_s9 }
0x2c83   : > { %v7845_v27 = vpop.trf.xlu1 }
0x2c85   : > { %v7877_v21 = vpop.trf.xlu0 }
0x2c89   : > { %v7909_v9 = vpop.trf.xlu1 }
0x2c8a   : > { %v7957_v62 = vcombine.low %v7845_v27, %v7909_v9  ;;  %v7958_v23 = vcombine.high %v7845_v27, %v7909_v9 }
0x2c8c   : > { %v7965_v29 = vrot.slane %v7957_v62, %v11965_v56  ;;  %v7972_v35 = vrot.slane %v7958_v23, %v11965_v56 }
0x2c8d   : > { %v7941_v24 = vpop.trf.xlu0 }
0x2c8e   : > { %v7973_v25 = vcombine.low %v7877_v21, %v7941_v24  ;;  %v7974_v15 = vcombine.high %v7877_v21, %v7941_v24 }
0x2c90   : > { %v7981_v38 = vrot.slane %v7973_v25, %v11965_v56  ;;  %v7988_v39 = vrot.slane %v7974_v15, %v11965_v56 }
0x2c92   : > { %v7989_v12 = vcombine.low %v7965_v29, %v7981_v38  ;;  %v7990_v7 = vcombine.high %v7965_v29, %v7981_v38  ;;  %v8005_v45 = vcombine.low %v7972_v35, %v7988_v39  ;;  %v8006_v61 = vcombine.high %v7972_v35, %v7988_v39 }
0x2c94   : > { %v7997_v40 = vrot.slane %v7989_v12, %v11968_v2  ;;  %v8004_v10 = vrot.slane %v7990_v7, %v11968_v2  ;;  %v8013_v11 = vrot.slane %v8005_v45, %v11968_v2  ;;  %v8020_v0 = vrot.slane %v8006_v61, %v11968_v2 }
0x2c96   : > { %v8025_v46 = vcombine.low %v7997_v40, %v8004_v10  ;;  %v10307_v20 = vcombine.high %v7997_v40, %v8004_v10  ;;  %v8041_v28 = vcombine.low %v8013_v11, %v8020_v0  ;;  %v10308_v18 = vcombine.high %v8013_v11, %v8020_v0 }
0x2c98   : > { %v8032_v34 = vrot.slane %v8025_v46, %v11965_v56  ;;  %v8040_v57 = vrot.slane %v10307_v20, %v11965_v56  ;;  %v8048_v14 = vrot.slane %v8041_v28, %v11965_v56  ;;  %v8056_v19 = vrot.slane %v10308_v18, %v11965_v56  ;;  %v10309_v20 = vld [vmem:[%s13189_s6 + $0x1e] ss:$0 sm:$0xff] }
0x2c99   : > { %v11457_v13 = vpop.permute.xlu1 %11456 }
0x2c9a   : > { %v8057_v37 = vcombine.low %v8032_v34, %v8040_v57  ;;  %v8073_v16 = vcombine.low %v8048_v14, %v8056_v19  ;;  %v8058_v32 = vcombine.high %v8032_v34, %v8040_v57  ;;  %v8074_v42 = vcombine.high %v8048_v14, %v8056_v19 }
0x2c9b   : > { %v11459_v22 = vunpack.i.h.bf16 %v11457_v13  ;;  %v11458_v30 = vunpack.i.l.bf16 %v11457_v13 }
0x2c9c   : > { %v8065_v31 = vrot.slane %v8057_v37, %v11968_v2  ;;  %v8081_v43 = vrot.slane %v8073_v16, %v11968_v2  ;;  %v8072_v50 = vrot.slane %v8058_v32, %v11968_v2  ;;  %v8088_v53 = vrot.slane %v8074_v42, %v11968_v2 }
0x2c9d   : > { %v11214_v44 = vpack.c.bf16 %v11459_v22, %v11458_v30 }
0x2c9e   : > { %v8090_v47 = vcombine.high %v8065_v31, %v8081_v43  ;;  %v8089_v36 = vcombine.low %v8065_v31, %v8081_v43  ;;  %v8091_v49 = vcombine.low %v8072_v50, %v8088_v53  ;;  %v8092_v54 = vcombine.high %v8072_v50, %v8088_v53 }
0x2c9f   : > { %11215 = vmatpush3.bf16.msra.mxu1 %v11214_v44 }
0x2ca0   : > { %8094 = vrot.lane.b32.xlu1 %v8090_v47, %s13220_s14  ;;  %11216 = vmatprep.subr.bf16.mxu1 %v11715_v3 }
0x2ca4   : > { %8098 = vrot.lane.b32.xlu1 %v8091_v49, %s13221_s15 }
0x2ca8   : > { %8102 = vrot.lane.b32.xlu1 %v8092_v54, %s13222_s13  ;;  %v11462_v55 = vpop.permute.xlu0 %11461 }
0x2ca9   : > { %v11464_v1 = vunpack.i.h.bf16 %v11462_v55  ;;  %v11463_v58 = vunpack.i.l.bf16 %v11462_v55 }
0x2cab   : > { %v11217_v60 = vpack.c.bf16 %v11464_v1, %v11463_v58  ;;  %v10311_v58 = vld [vmem:[%s13189_s6 + $0x1f] ss:$0 sm:$0xff] }
0x2cac   : > { %v11467_v4 = vpop.permute.xlu0 %11466 }
0x2cad   : > { %11218 = vmatpush3.bf16.msra.mxu1 %v11217_v60  ;;  %v11469_v27 = vunpack.i.h.bf16 %v11467_v4  ;;  %v11468_v21 = vunpack.i.l.bf16 %v11467_v4  ;;  %v10312_v4 = vld [vmem:[%s13189_s6 + $0x20] ss:$0 sm:$0xff] }
0x2cae   : > { %11225 = vmatprep.subr.bf16.mxu1 %v11715_v3 }
0x2caf   : > { %v8359_v25 = vsel %vm345_vm1, %v11468_v21, %v11469_v27 }
0x2cb0   : > { %v11472_v41 = vpop.permute.xlu0 %11471 }
0x2cb1   : > { %v11474_v9 = vunpack.i.h.bf16 %v11472_v41  ;;  %v11473_v62 = vunpack.i.l.bf16 %v11472_v41 }
0x2cb3   : > { %v8360_v15 = vsel %vm345_vm1, %v11473_v62, %v11474_v9  ;;  %v10313_v9 = vld [vmem:[%s13189_s6 + $0x21] ss:$0 sm:$0xff] }
0x2cb4   : > { %v11477_v48 = vpop.permute.xlu0 %11476  ;;  %v11226_v45 = vpack.c.bf16 %v8360_v15, %v8359_v25 }
0x2cb5   : > { %v11479_v35 = vunpack.i.h.bf16 %v11477_v48  ;;  %v11478_v38 = vunpack.i.l.bf16 %v11477_v48 }
0x2cb7   : > { %v8361_v40 = vsel %vm345_vm1, %v11478_v38, %v11479_v35 }
0x2cb8   : > { %v11482_v24 = vpop.permute.xlu0 %11481 }
0x2cb9   : > { %v11484_v39 = vunpack.i.h.bf16 %v11482_v24  ;;  %v11483_v12 = vunpack.i.l.bf16 %v11482_v24 }
0x2cbb   : > { %v8362_v11 = vsel %vm345_vm1, %v11483_v12, %v11484_v39 }
0x2cbc   : > { %v11229_v46 = vpack.c.bf16 %v8362_v11, %v8361_v40 }
0x2d12   : > { %v8095_v23 = vpop.permute.xlu1 %8094 }
0x2d13   : > { %v8105_v7 = vsel %vm566_vm3, %v8089_v36, %v8095_v23 }
0x2d16   : > { %v8099_v29 = vpop.permute.xlu1 %8098 }
0x2d17   : > { %v8106_v61 = vsel %vm1630_vm6, %v8105_v7, %v8099_v29 }
0x2d1a   : > { %v8103_v10 = vpop.permute.xlu1 %8102 }
0x2d1b   : > { %v8107_v0 = vsel %vm1632_vm7, %v8106_v61, %v8103_v10 }
0x2d1c   : > { %10983 = vmatmul.mubr.msk.f32.vlgmr.msra.gmra.mrb[48].mxu1 %vm345_vm1, %v8107_v0 }
0x2d1d   : > { %11227 = vmatpush3.bf16.msra.mxu1 %v11226_v45  ;;  %11004 = vmatprep.mubr.msk.f32.mxu1 %vm11716_vm0, %v11717_v6 }
0x2d1e   : > { %11228 = vmatprep.subr.bf16.mxu1 %v11715_v3 }
0x2d21   : > { %11230 = vmatpush3.bf16.msra.mxu1 %v11229_v46 }
0x2d22   : > { %11017 = vmatprep.subr.mxu1 %v11717_v6 }
0x2d24   : > { %11005 = vmatmul.mubr.msk.f32.vlgmr.msra.gmra.mrb[50].mxu1 %vm345_vm1, %v12498_v26  ;;  %v10315_v26 = vld [vmem:[%s13189_s6 + $0x22] ss:$0 sm:$0xff] }
0x2d25   : > { %11019 = vmatprep.mubr.msk.f32.mxu1 %vm11716_vm0, %v11717_v6 }
0x2def   : > { %v8202_v28 = vpop.f32.mrb[48].mxu1 }
0x2df0   : > { %v8203_v18 = vadd.f32 %v10309_v20, %v8202_v28  ;;  %v10984_v34 = vpop.f32.mrb[49].mxu1 }
0x2df2   : > { %v8206_v57 = vadd.f32 %v8203_v18, %v12753_v17 }
0x2df4   : > { %v8209_v14 = vsel %vm345_vm1, %v8206_v57, 0.0 }
0x2df5   : > { %8210 = vadd.xlane.f32.xlu1 %v8209_v14 }
0x2df7   : > { %v8433_v19 = vpop.f32.mrb[50].mxu1 }
0x2df8   : > { %v11006_v13 = vpop.f32.mrb[51].mxu1  ;;  %v12916_v37 = vadd.f32 %v10315_v26, %v8433_v19 }
0x2e06   : > { %11486 = vrot.lane.b32.xlu1 %v12827_v59, %s13229_s19 }
0x2e0a   : > { %8445 = vrot.lane.b32.xlu1 %v12916_v37, %s13232_s2 }
0x2e0e   : > { %8448 = vrot.lane.b32.xlu1 %v12916_v37, %s13231_s17 }
0x2e12   : > { %8451 = vrot.lane.b32.xlu1 %v12916_v37, %s13226_s16 }
0x2e82   : > { %v8211_v17 = vpop.xlane.xlu1 %8210 }
0x2e83   : > { %v8212_v16 = vmul.f32 0.03125, %v8211_v17 }
0x2e85   : > { %v8213_v32 = vsub.f32 %v8206_v57, %v8212_v16 }
0x2e86   : > { %v11487_v42 = vpop.permute.xlu1 %11486 }
0x2e87   : > { %v11489_v22 = vunpack.i.h.bf16 %v11487_v42  ;;  %v11488_v30 = vunpack.i.l.bf16 %v11487_v42  ;;  %v8214_v31 = vmul.f32 %v8213_v32, %v8213_v32 }
0x2e89   : > { %v11220_v43 = vpack.c.bf16 %v11489_v22, %v11488_v30  ;;  %v8215_v59 = vsel %vm345_vm1, %v8214_v31, 0.0 }
0x2e8a   : > { %8216 = vadd.xlane.f32.xlu0 %v8215_v59  ;;  %v12928_v44 = vpop.permute.xlu1 %8445 }
0x2e8b   : > { %11221 = vmatpush3.bf16.msra.mxu0 %v11220_v43 }
0x2e8c   : > { %11222 = vmatprep.subr.bf16.mxu0 %v11715_v3 }
0x2e8e   : > { %v12931_v47 = vpop.permute.xlu1 %8448 }
0x2e92   : > { %v8452_v25 = vpop.permute.xlu1 %8451 }
0x2ea0   : > { %11491 = vrot.lane.b32.xlu0 %v12833_v51, %s13229_s19 }
0x2ebe   : > { %8486 = vxpose.xlu0.b32.start.end [1/1] (short) (narrow) %v12928_v44, 8 }
0x2ec2   : > { %8518 = vxpose.xlu0.b32.start.end [1/1] (short) (narrow) %v12931_v47, 8 }
0x2f17   : > { %v8217_v50 = vpop.xlane.xlu0 %8216 }
0x2f18   : > { %v8218_v53 = vmul.f32 0.03125, %v8217_v50 }
0x2f1a   : > { %v8219_v36 = vadd.f32 1e-12, %v8218_v53 }
0x2f1b   : > { %v11492_v49 = vpop.permute.xlu0 %11491 }
0x2f1c   : > { %11629 = vrsqrt.f32 %v8219_v36  ;;  %v11494_v54 = vunpack.i.h.bf16 %v11492_v49  ;;  %v11493_v55 = vunpack.i.l.bf16 %v11492_v49 }
0x2f1e   : > { %v11223_v1 = vpack.c.bf16 %v11494_v54, %v11493_v55 }
0x2f20   : > { %11224 = vmatpush3.bf16.msra.mxu0 %v11223_v1 }
0x2f21   : > { %11007 = vmatprep.subr.mxu0 %v11717_v6 }
0x2f26   : > { %v11630_v51 = vpop.eup %11629 }
0x2f27   : > { %v8221_v60 = vmul.f32 %v11630_v51, %v8213_v32 }
0x2f29   : > { %v8226_v41 = vmul.f32 %v10311_v58, %v8221_v60 }
0x2f2b   : > { %v12941_v48 = vadd.f32 %v10312_v4, %v8226_v41 }
0x2f2d   : > { %10994 = vmatmul.mubr.msk.f32.vlgmr.msra.gmra.mrb[64].mxu0 %vm345_vm1, %v12941_v48 }
0x2f2e   : > { %11009 = vmatprep.mubr.msk.f32.mxu0 %vm11716_vm0, %v11717_v6 }
0x2f3e   : > { %v8502_v27 = vpop.trf.xlu0 }
0x2f42   : > { %v8534_v21 = vpop.trf.xlu0 }
0x2f43   : > { %11018 = vmatpush3.msra.mxu1 %v8534_v21 }
0x2f44   : > { %11027 = vmatprep.subr.mxu1 %v11717_v6 }
0x3000   : > { %v8318_v62 = vpop.f32.mrb[64].mxu0 }
0x3001   : > { %v8319_v23 = vadd.f32 %v10313_v9, %v8318_v62  ;;  %v10995_v24 = vpop.f32.mrb[65].mxu0 }
0x3003   : > { %8442 = vrot.lane.b32.xlu0 %v8319_v23, %s13226_s16  ;;  %8438 = vrot.lane.b32.xlu1 %v8319_v23, %s13232_s2  ;;  %s10344_s16 = sshll.u32 %s11792_s28, 7  ;;  %s11730_s28 = smov [#allocation2]  }
0x3004   : > { %s13141_s21 = scalar_lea.hbm %s13190_s7, %s10344_s16  ;;  %s11655_s0 = sshll.u32 %s11730_s28, 4  ;;  %s11656_s0 = int_to_ptr.vmem [resolvable:$false] %s11655_s0 }
0x3005   : > { %s11657_s1 = scalar_lea.vmem %s11656_s0, 256 }
0x3007   : > { %8440 = vrot.lane.b32.xlu1 %v8319_v23, %s13231_s17 }
0x3021   : > { %8550 = vxpose.xlu0.b32.start.end [1/1] (short) (narrow) %v8452_v25, 8 }
0x3030   : > { %8454 = vxpose.xlu1.b32.start.end [1/1] (short) (narrow) %v12916_v37, 8 }
0x3075   : > { %v8439_v15 = vpop.permute.xlu1 %8438  ;;  %v8443_v35 = vpop.permute.xlu0 %8442 }
0x3079   : > { %v8441_v29 = vpop.permute.xlu1 %8440 }
0x307a   : > { %11020 = vmatmul.mubr.msk.f32.vlgmr.msra.gmra.mrb[52].mxu1 %vm566_vm3, %v8441_v29 }
0x307b   : > { %11029 = vmatprep.mubr.msk.f32.mxu1 %vm11716_vm0, %v11717_v6 }
0x30a1   : > { %v8566_v39 = vpop.trf.xlu0 }
0x30b0   : > { %v8470_v38 = vpop.trf.xlu1 }
0x30b1   : > { %11008 = vmatpush3.msra.mxu0 %v8470_v38 }
0x30b2   : > { %11010 = vmatmul.mubr.msk.f32.vlgmr.msra.gmra.mrb[66].mxu0 %vm566_vm3, %v8319_v23  ;;  %11012 = vmatprep.subr.mxu0 %v11717_v6 }
0x30b3   : > { %11013 = vmatpush3.msra.mxu0 %v8502_v27  ;;  %11014 = vmatprep.mubr.msk.f32.mxu0 %vm11716_vm0, %v11717_v6 }
0x30b4   : > { %11022 = vmatprep.subr.mxu0 %v11717_v6 }
0x30b6   : > { %11015 = vmatmul.mubr.msk.f32.vlgmr.msra.gmra.mrb[68].mxu0 %vm566_vm3, %v8439_v15 }
0x30b7   : > { %11023 = vmatpush3.msra.mxu0 %v8566_v39  ;;  %11024 = vmatprep.mubr.msk.f32.mxu0 %vm11716_vm0, %v11717_v6 }
0x30b8   : > { %11032 = vmatprep.subr.mxu0 %v11717_v6 }
0x30ba   : > { %11025 = vmatmul.mubr.msk.f32.vlgmr.msra.gmra.mrb[70].mxu0 %vm566_vm3, %v8443_v35 }
0x30bb   : > { %11034 = vmatprep.mubr.msk.f32.mxu0 %vm11716_vm0, %v11717_v6 }
0x314d   : > { %v8794_v12 = vpop.f32.mrb[52].mxu1 }
0x314e   : > { %v11021_v7 = vpop.f32.mrb[53].mxu1  ;;  %v8872_v28 = vsel %vm860_vm5, %v8794_v12, -10000.0 }
0x314f   : > { %v8880_v57 = vsel %vm566_vm3, %v8872_v28, -inf }
0x3185   : > { %v8650_v45 = vpop.f32.mrb[66].mxu0 }
0x3186   : > { %v8870_v61 = vsel %vm860_vm5, %v8650_v45, -10000.0  ;;  %v11011_v40 = vpop.f32.mrb[67].mxu0 }
0x3187   : > { %v8874_v10 = vsel %vm566_vm3, %v8870_v61, -inf }
0x3188   : > { %8875 = vmax.xlane.f32.xlu0 %v8874_v10 }
0x3189   : > { %v8722_v11 = vpop.f32.mrb[68].mxu0 }
0x318a   : > { %v8871_v0 = vsel %vm860_vm5, %v8722_v11, -10000.0  ;;  %v11016_v46 = vpop.f32.mrb[69].mxu0 }
0x318b   : > { %v8877_v20 = vsel %vm566_vm3, %v8871_v0, -inf }
0x318c   : > { %8878 = vmax.xlane.f32.xlu1 %v8877_v20  ;;  %v13015_v20 = vpack.i.bf16 %v12863_v52, %v12855_v8 }
0x318d   : > { %v8866_v18 = vpop.f32.mrb[70].mxu0 }
0x318e   : > { %v11026_v34 = vpop.f32.mrb[71].mxu0  ;;  %v8873_v14 = vsel %vm860_vm5, %v8866_v18, -10000.0 }
0x318f   : > { %v8883_v19 = vsel %vm566_vm3, %v8873_v14, -inf }
0x3190   : > { %8881 = vmax.xlane.f32.xlu1 %v8880_v57 }
0x3194   : > { %8884 = vmax.xlane.f32.xlu1 %v8883_v19 }
0x319e   : > { %8918 = vrot.lane.b32.xlu0 %v12916_v37, %s13225_s22 }
0x31a2   : > { %8924 = vrot.lane.b32.xlu0 %v8452_v25, %s13225_s22 }
0x31a5   : > { %8920 = vrot.lane.b32.xlu1 %v12928_v44, %s13225_s22 }
0x31a9   : > { %8922 = vrot.lane.b32.xlu1 %v12931_v47, %s13225_s22 }
0x3215   : > { %v8876_v13 = vpop.xlane.xlu0 %8875 }
0x3216   : > { %v8886_v26 = vsub.f32 %v8870_v61, %v8876_v13 }
0x3218   : > { %v8890_v17 = vmul.f32 1.442695, %v8886_v26 }
0x3219   : > { %v8879_v33 = vpop.xlane.xlu1 %8878  ;;  %v8919_v1 = vpop.permute.xlu0 %8918 }
0x321a   : > { %11631 = vpow2.f32 %v8890_v17  ;;  %v8887_v16 = vsub.f32 %v8871_v0, %v8879_v33 }
0x321c   : > { %v8892_v32 = vmul.f32 1.442695, %v8887_v16 }
0x321d   : > { %v8882_v42 = vpop.xlane.xlu1 %8881  ;;  %v8925_v58 = vpop.permute.xlu0 %8924 }
0x321e   : > { %11633 = vpow2.f32 %v8892_v32  ;;  %v8888_v22 = vsub.f32 %v8872_v28, %v8882_v42  ;;  %v13019_v28 = vpack.i.bf16 %v12847_v63, %v12838_v5 }
0x3220   : > { %v8894_v30 = vmul.f32 1.442695, %v8888_v22 }
0x3221   : > { %v8885_v37 = vpop.xlane.xlu1 %8884 }
0x3222   : > { %11635 = vpow2.f32 %v8894_v30  ;;  %v8889_v31 = vsub.f32 %v8873_v14, %v8885_v37 }
0x3224   : > { %v11632_v43 = vpop.eup %11631  ;;  %v8896_v59 = vmul.f32 1.442695, %v8889_v31 }
0x3225   : > { %v8898_v44 = vsel %vm566_vm3, %v11632_v43, 0.0  ;;  %v8921_v55 = vpop.permute.xlu1 %8920 }
0x3226   : > { %11637 = vpow2.f32 %v8896_v59  ;;  %8899 = vadd.xlane.f32.xlu1 %v8898_v44 }
0x3228   : > { %v11634_v47 = vpop.eup %11633 }
0x3229   : > { %v8901_v50 = vsel %vm566_vm3, %v11634_v47, 0.0  ;;  %v8923_v51 = vpop.permute.xlu1 %8922 }
0x322a   : > { %8902 = vadd.xlane.f32.xlu0 %v8901_v50 }
0x322c   : > { %v11636_v53 = vpop.eup %11635 }
0x322d   : > { %v8904_v36 = vsel %vm566_vm3, %v11636_v53, 0.0 }
0x322e   : > { %8905 = vadd.xlane.f32.xlu0 %v8904_v36 }
0x3230   : > { %v11638_v49 = vpop.eup %11637 }
0x3231   : > { %v8907_v54 = vsel %vm566_vm3, %v11638_v49, 0.0 }
0x3232   : > { %8908 = vadd.xlane.f32.xlu1 %v8907_v54 }
0x325b   : > { %8930 = vxpose.xlu0.b32.start.end [1/1] (short) (narrow) %v8919_v1, 8 }
0x325f   : > { %8994 = vxpose.xlu0.b32.start.end [1/1] (short) (narrow) %v8923_v51, 8 }
0x3263   : > { %9026 = vxpose.xlu0.b32.start.end [1/1] (short) (narrow) %v8925_v58, 8 }
0x3265   : > { %8962 = vxpose.xlu1.b32.start.end [1/1] (short) (narrow) %v8921_v55, 8 }
0x32b3   : > { %v8900_v60 = vpop.xlane.xlu1 %8899 }
0x32b4   : > { %11639 = vrcp.f32 %v8900_v60 }
0x32b7   : > { %v8903_v4 = vpop.xlane.xlu0 %8902 }
0x32b8   : > { %11641 = vrcp.f32 %v8903_v4 }
0x32bb   : > { %v8906_v62 = vpop.xlane.xlu0 %8905 }
0x32bc   : > { %11643 = vrcp.f32 %v8906_v62 }
0x32be   : > { %v11640_v41 = vpop.eup %11639 }
0x32bf   : > { %v8914_v27 = vmul.f32 %v11640_v41, %v11632_v43  ;;  %v8909_v23 = vpop.xlane.xlu1 %8908 }
0x32c0   : > { %11645 = vrcp.f32 %v8909_v23 }
0x32c1   : > { %11028 = vmatpush3.xpose.msk.msra.mxu1 %vm566_vm3, %v8914_v27 }
0x32c2   : > { %v11642_v21 = vpop.eup %11641  ;;  %11037 = vmatprep.subr.mxu1 %v11717_v6 }
0x32c3   : > { %v8915_v9 = vmul.f32 %v11642_v21, %v11634_v47 }
0x32c5   : > { %11033 = vmatpush3.xpose.msk.msra.mxu0 %vm566_vm3, %v8915_v9 }
0x32c6   : > { %11042 = vmatprep.subr.mxu0 %v11717_v6  ;;  %v11644_v24 = vpop.eup %11643 }
0x32c7   : > { %v8916_v25 = vmul.f32 %v11644_v24, %v11636_v53 }
0x32ca   : > { %v11646_v35 = vpop.eup %11645 }
0x32cb   : > { %v8917_v38 = vmul.f32 %v11646_v35, %v11638_v49 }
0x32db   : > { %v8946_v15 = vpop.trf.xlu0 }
0x32dc   : > { %11030 = vmatmul.mubr.msk.f32.vlgmr.msra.gmra.mrb[54].mxu1 %vm566_vm3, %v8946_v15 }
0x32dd   : > { %11038 = vmatpush3.xpose.msk.msra.mxu1 %vm566_vm3, %v8916_v25  ;;  %11039 = vmatprep.mubr.msk.f32.mxu1 %vm11716_vm0, %v11717_v6 }
0x32de   : > { %11231 = vmatprep.subr.bf16.mxu1 %v11715_v3 }
0x32df   : > { %v9010_v29 = vpop.trf.xlu0 }
0x32e0   : > { %11040 = vmatmul.mubr.msk.f32.vlgmr.msra.gmra.mrb[56].mxu1 %vm566_vm3, %v9010_v29 }
0x32e1   : > { %11055 = vmatprep.mubr.msk.f32.mxu1 %vm11716_vm0, %v11717_v6 }
0x32e3   : > { %v9042_v12 = vpop.trf.xlu0 }
0x32e5   : > { %v8978_v39 = vpop.trf.xlu1 }
0x32e6   : > { %11035 = vmatmul.mubr.msk.f32.vlgmr.msra.gmra.mrb[72].mxu0 %vm566_vm3, %v8978_v39 }
0x32e7   : > { %11043 = vmatpush3.xpose.msk.msra.mxu0 %vm566_vm3, %v8917_v38  ;;  %11044 = vmatprep.mubr.msk.f32.mxu0 %vm11716_vm0, %v11717_v6 }
0x32e8   : > { %11237 = vmatprep.subr.bf16.mxu0 %v11715_v3 }
0x32ea   : > { %11045 = vmatmul.mubr.msk.f32.vlgmr.msra.gmra.mrb[74].mxu0 %vm566_vm3, %v9042_v12 }
0x32eb   : > { %11066 = vmatprep.mubr.msk.f32.mxu0 %vm11716_vm0, %v11717_v6 }
0x33af   : > { %v9130_v7 = vpop.f32.mrb[54].mxu1 }
0x33b0   : > { %v11031_v45 = vpop.f32.mrb[55].mxu1  ;;  %9362 = vxpose.xlu0.b32.start.end [1/1] (short) (narrow) %v9130_v7, 8 }
0x33b3   : > { %v9282_v61 = vpop.f32.mrb[56].mxu1 }
0x33b4   : > { %v11041_v40 = vpop.f32.mrb[57].mxu1  ;;  %9426 = vxpose.xlu0.b32.start.end [1/1] (short) (narrow) %v9282_v61, 8 }
0x33b5   : > { %v10331_v40 = vld [vmem:[%s13189_s6 + $0x23] ss:$0 sm:$0xff] }
0x33b9   : > { %v9206_v10 = vpop.f32.mrb[72].mxu0 }
0x33ba   : > { %9394 = vxpose.xlu1.b32.start.end [1/1] (short) (narrow) %v9206_v10, 8  ;;  %v11036_v11 = vpop.f32.mrb[73].mxu0 }
0x33bd   : > { %v9358_v0 = vpop.f32.mrb[74].mxu0 }
0x33be   : > { %9458 = vxpose.xlu1.b32.start.end [1/1] (short) (narrow) %v9358_v0, 8  ;;  %v11046_v46 = vpop.f32.mrb[75].mxu0 }
0x33dc   : > { %11501 = vrot.lane.b32.xlu1 %v13015_v20, %s13225_s22 }
0x33dd   : > { %11496 = vrot.lane.b32.xlu0 %v13019_v28, %s13225_s22 }
0x3430   : > { %v9378_v18 = vpop.trf.xlu0 }
0x3434   : > { %v9442_v57 = vpop.trf.xlu0 }
0x3435   : > { %v9490_v14 = vcombine.low %v9378_v18, %v9442_v57  ;;  %v9491_v19 = vcombine.high %v9378_v18, %v9442_v57 }
0x3437   : > { %v9498_v8 = vrot.slane %v9490_v14, %v11965_v56  ;;  %v9505_v52 = vrot.slane %v9491_v19, %v11965_v56 }
0x343a   : > { %v9410_v34 = vpop.trf.xlu1 }
0x343e   : > { %v9474_v13 = vpop.trf.xlu1 }
0x343f   : > { %v9506_v26 = vcombine.low %v9410_v34, %v9474_v13  ;;  %v9507_v17 = vcombine.high %v9410_v34, %v9474_v13 }
0x3441   : > { %v9514_v5 = vrot.slane %v9506_v26, %v11965_v56  ;;  %v9521_v63 = vrot.slane %v9507_v17, %v11965_v56 }
0x3443   : > { %v9522_v33 = vcombine.low %v9498_v8, %v9514_v5  ;;  %v9523_v16 = vcombine.high %v9498_v8, %v9514_v5  ;;  %v9538_v32 = vcombine.low %v9505_v52, %v9521_v63  ;;  %v9539_v42 = vcombine.high %v9505_v52, %v9521_v63  ;;  %v9857_v52 = vld [vmem:[%s13188_s5 + $0x8] sm:$0xff]  ;;  %v9858_v5 = vld [vmem:[%s13188_s5 + $0x10] sm:$0xff]  ;;  %v9859_v63 = vld [vmem:[%s13188_s5 + $0x18] sm:$0xff] }
0x3445   : > { %v9530_v22 = vrot.slane %v9522_v33, %v11968_v2  ;;  %v9537_v30 = vrot.slane %v9523_v16, %v11968_v2  ;;  %v9546_v37 = vrot.slane %v9538_v32, %v11968_v2  ;;  %v9553_v31 = vrot.slane %v9539_v42, %v11968_v2  ;;  %v9860_v33 = vld [vmem:[%s13188_s5 + $0x20] sm:$0xff]  ;;  %v9861_v16 = vld [vmem:[%s13188_s5 + $0x28] sm:$0xff]  ;;  %v9862_v42 = vld [vmem:[%s13188_s5 + $0x30] sm:$0xff] }
0x3446   : > { %v11520_v32 = vpack.i.bf16 %v9859_v63, %v9858_v5 }
0x3447   : > { %v9558_v43 = vcombine.low %v9530_v22, %v9537_v30  ;;  %v10329_v59 = vcombine.high %v9530_v22, %v9537_v30  ;;  %v9574_v44 = vcombine.low %v9546_v37, %v9553_v31  ;;  %v10330_v47 = vcombine.high %v9546_v37, %v9553_v31  ;;  %v9863_v22 = vld [vmem:[%s13188_s5 + $0x38] sm:$0xff] }
0x3448   : > { %v11525_v30 = vpack.i.bf16 %v9861_v16, %v9860_v33  ;;  %v11530_v37 = vpack.i.bf16 %v9863_v22, %v9862_v42  ;;  %v10340_v33 = vld [vmem:[%s13189_s6 + $0x29] ss:$0 sm:$0xff]  ;;  %v10341_v42 = vld [vmem:[%s13189_s6 + $0x2a] ss:$0 sm:$0xff] }
0x3449   : > { %v9565_v50 = vrot.slane %v9558_v43, %v11965_v56  ;;  %v9573_v53 = vrot.slane %v10329_v59, %v11965_v56  ;;  %v9581_v36 = vrot.slane %v9574_v44, %v11965_v56  ;;  %v9589_v49 = vrot.slane %v10330_v47, %v11965_v56 }
0x344b   : > { %v9590_v54 = vcombine.low %v9565_v50, %v9573_v53  ;;  %v9606_v55 = vcombine.low %v9581_v36, %v9589_v49  ;;  %v9591_v1 = vcombine.high %v9565_v50, %v9573_v53  ;;  %v9607_v51 = vcombine.high %v9581_v36, %v9589_v49 }
0x344d   : > { %v9598_v58 = vrot.slane %v9590_v54, %v11968_v2  ;;  %v9614_v60 = vrot.slane %v9606_v55, %v11968_v2  ;;  %v9605_v27 = vrot.slane %v9591_v1, %v11968_v2  ;;  %v9621_v21 = vrot.slane %v9607_v51, %v11968_v2 }
0x344e   : > { %v11502_v4 = vpop.permute.xlu1 %11501 }
0x344f   : > { %v9623_v41 = vcombine.high %v9598_v58, %v9614_v60  ;;  %v11497_v9 = vpop.permute.xlu0 %11496  ;;  %v11504_v62 = vunpack.i.h.bf16 %v11502_v4  ;;  %v11503_v25 = vunpack.i.l.bf16 %v11502_v4  ;;  %v9622_v56 = vcombine.low %v9598_v58, %v9614_v60  ;;  %v10333_v4 = vld [vmem:[%s13189_s6 + $0x24] ss:$0 sm:$0xff] }
0x3450   : > { %v11499_v23 = vunpack.i.h.bf16 %v11497_v9  ;;  %v11498_v24 = vunpack.i.l.bf16 %v11497_v9  ;;  %v9624_v29 = vcombine.low %v9605_v27, %v9621_v21  ;;  %v9625_v38 = vcombine.high %v9605_v27, %v9621_v21 }
0x3451   : > { %9627 = vrot.lane.b32.xlu1 %v9623_v41, %s13220_s14  ;;  %v11235_v35 = vpack.c.bf16 %v11504_v62, %v11503_v25  ;;  %s302_s14 = sand.u32 1, %s11705_s25  }
0x3452   : > { %v11232_v15 = vpack.c.bf16 %v11499_v23, %v11498_v24  ;;  %v10334_v23 = vld [vmem:[%s13189_s6 + $0x25] ss:$0 sm:$0xff]  ;;  %s10084_s3 = scalar_lea.sflag [#allocation3], %s302_s14 }
0x3454   : > { %11233 = vmatpush3.bf16.msra.mxu1 %v11232_v15 }
0x3455   : > { %9631 = vrot.lane.b32.xlu1 %v9624_v29, %s13221_s15  ;;  %11234 = vmatprep.subr.bf16.mxu1 %v11715_v3  ;;  %s10190_s15 = sshll.u32 %s302_s14, 3 }
0x3456   : > { %s304_s17 = scalar_lea.vmem [#allocation2], %s10190_s15 }
0x3457   : > { %s10097_s2 = sshll.u32 %s304_s17, 4  ;;  %s13143_s2 = int_to_ptr.vmem [resolvable:$true] %s10097_s2 }
0x3458   : > { %11236 = vmatpush3.bf16.msra.mxu1 %v11235_v35  ;;  %s11651_s10 = scalar_lea.vmem %s13143_s2, 128  ;;  %p11658_p0 = scmp.lt.s32.totalorder %s13143_s2, %s11656_s0 }
0x3459   : > { %9635 = vrot.lane.b32.xlu1 %v9625_v38, %s13222_s13  ;;  %11243 = vmatprep.subr.bf16.mxu1 %v11715_v3  ;;  %p11652_p11 = scmp.ne.s32.totalorder %s13143_s2, %s11651_s10  ;;  %p11659_p1 = scmp.lt.s32.totalorder %s11657_s1, %s11651_s10 }
0x345b   : > { %p11653_p12 = pnand %p11652_p11, %p11809_p5  ;;  %p11660_p2 = por %p11659_p1, %p11658_p0 }
0x345d   : > { %p11654_p13 = pneg %p11653_p12 }
0x345f   : > { %p11661_p3 = pnand %p11660_p2, %p11654_p13 }
0x34c3   : > { %v9628_v2 = vpop.permute.xlu1 %9627 }
0x34c4   : > { %v9638_v12 = vsel %vm566_vm3, %v9622_v56, %v9628_v2  ;;  %v10335_v2 = vld [vmem:[%s13189_s6 + $0x26] ss:$0 sm:$0xff] }
0x34c7   : > { %v9632_v39 = vpop.permute.xlu1 %9631 }
0x34c8   : > { %v9639_v7 = vsel %vm1630_vm6, %v9638_v12, %v9632_v39 }
0x34cb   : > { %v9636_v45 = vpop.permute.xlu1 %9635 }
0x34cc   : > { %v9640_v61 = vsel %vm1632_vm7, %v9639_v7, %v9636_v45 }
0x34cd   : > { %11056 = vmatmul.mubr.msk.f32.vlgmr.msra.gmra.mrb[58].mxu1 %vm345_vm1, %v9640_v61  ;;  %v10337_v61 = vld [vmem:[%s13189_s6 + $0x27] ss:$0 sm:$0xff] }
0x34ce   : > { %11085 = vmatprep.mubr.msk.f32.mxu1 %vm11716_vm0, %v11717_v6 }
0x35a0   : > { %v9735_v10 = vpop.f32.mrb[58].mxu1 }
0x35a1   : > { %v9736_v11 = vadd.f32 %v10331_v40, %v9735_v10  ;;  %v11057_v0 = vpop.f32.mrb[59].mxu1 }
0x35a3   : > { %v9739_v46 = vadd.f32 %v9736_v11, %v12941_v48 }
0x35a5   : > { %v9742_v18 = vsel %vm345_vm1, %v9739_v46, 0.0 }
0x35a6   : > { %9743 = vadd.xlane.f32.xlu0 %v9742_v18 }
0x35bc   : > { %11506 = vrot.lane.b32.xlu0 %v13019_v28, %s13229_s19  ;;  %v9856_v28 = vld [vmem:[%s13188_s5] sm:$0xff] }
0x3633   : > { %v9744_v34 = vpop.xlane.xlu0 %9743 }
0x3634   : > { %v9745_v57 = vmul.f32 0.03125, %v9744_v34 }
0x3636   : > { %v9746_v14 = vsub.f32 %v9739_v46, %v9745_v57 }
0x3637   : > { %v11507_v26 = vpop.permute.xlu0 %11506 }
0x3638   : > { %v9747_v19 = vmul.f32 %v9746_v14, %v9746_v14  ;;  %v11509_v17 = vunpack.i.h.bf16 %v11507_v26  ;;  %v11508_v8 = vunpack.i.l.bf16 %v11507_v26 }
0x363a   : > { %v9748_v13 = vsel %vm345_vm1, %v9747_v19, 0.0  ;;  %v11238_v48 = vpack.c.bf16 %v11509_v17, %v11508_v8  ;;  %v10000_v19 = vld [vmem:[%s13187_s4 + $0x40] sm:$0xff]  ;;  %v10002_v17 = vld [vmem:[%s13187_s4 + $0xd0] sm:$0xff]  ;;  %v10003_v8 = vld [vmem:[%s13187_s4 + $0x118] sm:$0xff] }
0x363b   : > { %9749 = vadd.xlane.f32.xlu1 %v9748_v13  ;;  %v10001_v13 = vld [vmem:[%s13187_s4 + $0x88] sm:$0xff] }
0x363c   : > { %11239 = vmatpush3.bf16.msra.mxu0 %v11238_v48  ;;  %v11256_v26 = vpack.c.bf16 %v10001_v13, %v10000_v19  ;;  %v11259_v48 = vpack.c.bf16 %v10003_v8, %v10002_v17 }
0x363d   : > { %11240 = vmatprep.subr.bf16.mxu0 %v11715_v3 }
0x364c   : > { %11511 = vrot.lane.b32.xlu1 %v13015_v20, %s13229_s19  ;;  %v11515_v20 = vpack.i.bf16 %v9857_v52, %v9856_v28 }
0x364e   : > { %11516 = vrot.lane.b32.xlu0 %v11515_v20, %s13230_s9 }
0x3650   : > { %11521 = vrot.lane.b32.xlu1 %v11520_v32, %s13230_s9 }
0x3652   : > { %11526 = vrot.lane.b32.xlu0 %v11525_v30, %s13230_s9 }
0x3654   : > { %11531 = vrot.lane.b32.xlu1 %v11530_v37, %s13230_s9 }
0x36c0   : > { %v11517_v36 = vpop.permute.xlu0 %11516 }
0x36c1   : > { %v11519_v49 = vunpack.i.h.bf16 %v11517_v36  ;;  %v11518_v54 = vunpack.i.l.bf16 %v11517_v36 }
0x36c3   : > { %v11244_v58 = vpack.c.bf16 %v11519_v49, %v11518_v54 }
0x36c4   : > { %v11527_v41 = vpop.permute.xlu0 %11526 }
0x36c5   : > { %11245 = vmatpush3.bf16.msra.mxu1 %v11244_v58  ;;  %v11529_v9 = vunpack.i.h.bf16 %v11527_v41  ;;  %v11528_v62 = vunpack.i.l.bf16 %v11527_v41 }
0x36c6   : > { %11246 = vmatprep.subr.bf16.mxu1 %v11715_v3 }
0x36c7   : > { %v11250_v15 = vpack.c.bf16 %v11529_v9, %v11528_v62 }
0x36c8   : > { %v9750_v31 = vpop.xlane.xlu1 %9749 }
0x36c9   : > { %v9751_v43 = vmul.f32 0.03125, %v9750_v31 }
0x36cb   : > { %v9752_v59 = vadd.f32 1e-12, %v9751_v43 }
0x36cc   : > { %v11512_v44 = vpop.permute.xlu1 %11511 }
0x36cd   : > { %11647 = vrsqrt.f32 %v9752_v59  ;;  %v11514_v47 = vunpack.i.h.bf16 %v11512_v44  ;;  %v11513_v50 = vunpack.i.l.bf16 %v11512_v44 }
0x36cf   : > { %v11241_v53 = vpack.c.bf16 %v11514_v47, %v11513_v50 }
0x36d0   : > { %v11522_v55 = vpop.permute.xlu1 %11521 }
0x36d1   : > { %11242 = vmatpush3.bf16.msra.mxu0 %v11241_v53  ;;  %v11524_v1 = vunpack.i.h.bf16 %v11522_v55  ;;  %v11523_v51 = vunpack.i.l.bf16 %v11522_v55 }
0x36d2   : > { %11255 = vmatprep.subr.bf16.mxu0 %v11715_v3 }
0x36d3   : > { %v11247_v21 = vpack.c.bf16 %v11524_v1, %v11523_v51 }
0x36d4   : > { %v11532_v24 = vpop.permute.xlu1 %11531 }
0x36d5   : > { %11248 = vmatpush3.bf16.msra.mxu1 %v11247_v21  ;;  %v11534_v29 = vunpack.i.h.bf16 %v11532_v24  ;;  %v11533_v35 = vunpack.i.l.bf16 %v11532_v24 }
0x36d6   : > { %11249 = vmatprep.subr.bf16.mxu1 %v11715_v3 }
0x36d7   : > { %v11648_v60 = vpop.eup %11647  ;;  %v11253_v38 = vpack.c.bf16 %v11534_v29, %v11533_v35 }
0x36d8   : > { %v9754_v27 = vmul.f32 %v11648_v60, %v9746_v14 }
0x36d9   : > { %11251 = vmatpush3.bf16.msra.mxu1 %v11250_v15 }
0x36da   : > { %v9759_v25 = vmul.f32 %v10333_v4, %v9754_v27  ;;  %11252 = vmatprep.subr.bf16.mxu1 %v11715_v3 }
0x36dc   : > { %v9764_v56 = vadd.f32 %v10334_v23, %v9759_v25 }
0x36dd   : > { %11254 = vmatpush3.bf16.msra.mxu1 %v11253_v38 }
0x36de   : > { %11067 = vmatmul.mubr.msk.f32.vlgmr.msra.gmra.mrb[76].mxu0 %vm345_vm1, %v9764_v56 }
0x36df   : > { %11096 = vmatprep.mubr.msk.f32.mxu0 %vm11716_vm0, %v11717_v6  ;;  %11257 = vmatpush3.bf16.msra.mxu0 %v11256_v26 }
0x36e0   : > { %11258 = vmatprep.subr.bf16.mxu0 %v11715_v3  ;;  %v10339_v3 = vld [vmem:[%s13189_s6 + $0x28] ss:$0 sm:$0xff] }
0x36e3   : > { %11260 = vmatpush3.bf16.msra.mxu0 %v11259_v48 }
0x37b1   : > { %v9851_v39 = vpop.f32.mrb[76].mxu0 }
0x37b2   : > { %v9852_v12 = vadd.f32 %v10335_v2, %v9851_v39  ;;  %v11068_v7 = vpop.f32.mrb[77].mxu0 }
0x37b4   : > { %v9855_v45 = vmax.f32 %v9852_v12, 0.0 }
0x37b6   : > { %11086 = vmatmul.mubr.msk.f32.vlgmr.msra.gmra.mrb[60].mxu1 %vm1855_vm8, %v9855_v45 }
0x3889   : > { %v9970_v6 = vpop.f32.mrb[60].mxu1 }
0x388a   : > { %v9971_v40 = vadd.f32 %v10337_v61, %v9970_v6  ;;  %v11087_v10 = vpop.f32.mrb[61].mxu1 }
0x388c   : > { %v9974_v11 = vadd.f32 %v9971_v40, %v9764_v56 }
0x388e   : > { %v9977_v0 = vsel %vm345_vm1, %v9974_v11, 0.0 }
0x388f   : > { %9978 = vadd.xlane.f32.xlu0 %v9977_v0 }
0x391c   : > { %v9979_v46 = vpop.xlane.xlu0 %9978 }
0x391d   : > { %v9980_v18 = vmul.f32 0.03125, %v9979_v46 }
0x391f   : > { %v9981_v34 = vsub.f32 %v9974_v11, %v9980_v18 }
0x3921   : > { %v9982_v57 = vmul.f32 %v9981_v34, %v9981_v34 }
0x3923   : > { %v9983_v14 = vsel %vm345_vm1, %v9982_v57, 0.0 }
0x3924   : > { %9984 = vadd.xlane.f32.xlu1 %v9983_v14 }
0x39b1   : > { %v9985_v28 = vpop.xlane.xlu1 %9984 }
0x39b2   : > { %v9986_v52 = vmul.f32 0.03125, %v9985_v28 }
0x39b4   : > { %v9987_v5 = vadd.f32 1e-12, %v9986_v52 }
0x39b6   : > { %11649 = vrsqrt.f32 %v9987_v5 }
0x39c0   : > { %v11650_v20 = vpop.eup %11649 }
0x39c1   : > { %v9989_v63 = vmul.f32 %v11650_v20, %v9981_v34 }
0x39c3   : > { %v9994_v16 = vmul.f32 %v10339_v3, %v9989_v63 }
0x39c5   : > { %v9999_v32 = vadd.f32 %v10340_v33, %v9994_v16 }
0x39c7   : > { %11097 = vmatmul.mubr.msk.f32.vlgmr.msra.gmra.mrb[78].mxu0 %vm345_vm1, %v9999_v32 }
0x3a9a   : > { %v10078_v22 = vpop.f32.mrb[78].mxu0 }
0x3a9b   : > { %v10079_v30 = vadd.f32 %v10341_v42, %v10078_v22  ;;  %v11098_v37 = vpop.f32.mrb[79].mxu0 }
0x3a9d   : > { %10082 = vst [vmem:[%s304_s17] sm:$0xff] %v10079_v30 }
0x3a9e   : > { %11664 = shalt.err (!%p11661_p3)
}
0x3a9f   : > { %s11665_s29 = scalar_lea.hbm %s13141_s21, 128  ;;  %s11669_s18 = scalar_lea.hbm %s13190_s7, 256 }
0x3aa0   : > { %p11666_p4 = scmp.ne.s32.totalorder %s13141_s21, %s11665_s29  ;;  %p11670_p9 = scmp.lt.u32.totalorder %s13141_s21, %s13190_s7 }
0x3aa1   : > { %p11671_p10 = scmp.lt.u32.totalorder %s11669_s18, %s11665_s29  ;;  %p11673_p12 = scmp.lt.u32.totalorder %s11665_s29, %s13141_s21 }
0x3aa2   : > { %p11667_p7 = pnand %p11666_p4, %p11809_p5 }
0x3aa3   : > { %p11672_p11 = por %p11671_p10, %p11670_p9 }
0x3aa4   : > { %p11668_p8 = pneg %p11667_p7 }
0x3aa5   : > { %p11674_p13 = por %p11673_p12, %p11672_p11 }
0x3aa7   : > { %p11675_p0 = pnand %p11674_p13, %p11668_p8 }
0x3aa9   : > { %11678 = shalt.err (!%p11675_p0)
}
0x3aaa   : > { %11261 = dma.vmem_to_hbm [thread:$0]  (%p11809_p5), %s13143_s2, 128, %s13141_s21, %s10084_s3  }
0x3aab PF: > { %p11267_p1 = scmp.ge.s32.totalorder %s11713_s27, 2  ;;  %s10109_s15 = sand.u32 1, %s11701_s24  }
0x3aac   : > { %s10110_s13 = scalar_lea.sflag [#allocation3], %s10109_s15 }
0x3aad   : > { %p11264_p2 = pnand %p11267_p1, %p11813_p6 }
0x3aaf   : > { %11696 = dma.done.wait (!%p11264_p2), %s10110_s13, 128  }
0x3ab0   : > { %11698 = vsyncadd (!%p11264_p2), %s10110_s13, 4294967168  ;;  %s13233_s22 = sld [smem:[#allocation5_spill]]  ;;  %p17_p3 = scmp.ge.s32.totalorder %s11796_s30, 4  }
0x3ab1   : > { %s13234_s24 = smov %s11705_s25  ;;  %s13235_s25 = smov %s11709_s26 }
0x3ab2   : > { %s13237_s27 = smov %s11796_s30  ;;  %19 = sbr.rel (!%p17_p3) target bundleno = 8 (0x8), region = 92 }
0x3ab6   : > { %s13236_s26 = smov %s13233_s22 }
0x3ab9   :  { %10115 = vsyncpa [#allocation3], 1 }
0x3aba   :  { %10117 = vsyncpa [#allocation3 + $0x1], 1 }

</bundles_post_ra>
